<compile_context>
chip_gen: v7x
topology: tpu7x:2x2x1
jax: 0.10.0
libtpu: 0.0.40
codegen_flags: <defaults>
</compile_context>

<pallas_src>
import jax
import jax.numpy as jnp
from jax.experimental import pallas as pl
from jax.experimental.pallas import tpu as pltpu


def _round_up(n, m):
    return (n + m - 1) // m * m


def _make_rec_kernel(seq_len, apply_mask):
    """Recurrent core. One grid step = (one batch block) x (t_blk time steps).

    gx_ref already holds x @ W_ih^T + b_ih + b_hh (precomputed, per-gate
    lane-padded).  The recurrent state is carried across the sequential
    (innermost, "arbitrary") time-block axis in VMEM scratch.
    """

    def kernel(gx_ref, h0_ref, c0_ref, whh_t_ref, out_ref, cy_ref, h_sc, c_sc):
        t_blk = gx_ref.shape[0]
        hp = h_sc.shape[-1]              # padded hidden size (multiple of 128)
        tb = pl.program_id(1)            # time-block index (sequential axis)

        # Initialize the recurrent state at the start of every batch block.
        @pl.when(tb == 0)
        def _():
            h_sc[...] = h0_ref[...].astype(jnp.float32)
            c_sc[...] = c0_ref[...].astype(jnp.float32)

        def step(t, carry):
            h, c = carry
            # Cast the carried state to the weight dtype (bf16 on v6e/v7x when
            # requested); accumulation stays f32 via preferred_element_type.
            h_mm = h.astype(whh_t_ref.dtype)
            gx_t = gx_ref[t]             # (B_blk, 4*H_pad), stored gate dtype

            def gate(g, act):
                # Per-gate matmul + activation so each gate's vregs die before
                # the next one is computed (bounded register pressure).
                pre = gx_t[:, g * hp:(g + 1) * hp].astype(jnp.float32) + jnp.dot(
                    h_mm, whh_t_ref[g], preferred_element_type=jnp.float32)
                return act(pre)

            ingate = gate(0, jax.nn.sigmoid)
            forgetgate = gate(1, jax.nn.sigmoid)
            cellgate = gate(2, jnp.tanh)
            outgate = gate(3, jax.nn.sigmoid)

            c_new = forgetgate * c + ingate * cellgate
            h_new = outgate * jnp.tanh(c_new)

            if apply_mask:
                # Padded tail time steps: keep the carried state unchanged.
                m = ((tb * t_blk + t) < seq_len).astype(jnp.float32)
                h_new = m * h_new + (1.0 - m) * h
                c_new = m * c_new + (1.0 - m) * c

            out_ref[t] = h_new.astype(out_ref.dtype)
            return h_new, c_new

        # Short fixed trip count -> fully unrolled for LLO scheduler visibility.
        h, c = jax.lax.fori_loop(0, t_blk, step,
                                 (h_sc[...], c_sc[...]), unroll=True)

        # Carry state to the next time block.
        h_sc[...] = h
        c_sc[...] = c

        # Final cell state (resident block; written on the last time block).
        @pl.when(tb == pl.num_programs(1) - 1)
        def _():
            cy_ref[...] = c.astype(cy_ref.dtype)

    return kernel


def tnlstm_forward(x, h0, c0, w_ih, b_ih, w_hh, b_hh, *,
                   gate_dtype=None,
                   recurrent_matmul_dtype=jnp.float32,
                   input_precision=jax.lax.Precision.HIGH):
    """x: (S, B, C); h0, c0: (B, H); w_ih: (4H, C); w_hh: (4H, H).

    Returns (outs (S, B, H), (hy, cy)) matching the PyTorch _TNLSTM forward
    in eval mode (dropout = identity).
    """
    S, B, C = x.shape
    H = h0.shape[-1]
    out_dtype = x.dtype
    gate_dtype = jnp.dtype(gate_dtype) if gate_dtype is not None else x.dtype

    # ---- padding / blocking ------------------------------------------------
    B_pad = _round_up(B, 8)
    B_blk = min(B_pad, 128)          # big M => good MXU row utilization
    B_pad = _round_up(B_pad, B_blk)
    H_pad = _round_up(H, 128)
    G4 = 4 * H_pad

    # Time steps per grid iteration; pad S and mask the tail so arbitrary S
    # still amortizes the per-grid-step overhead.
    t_blk = min(16, pl.next_power_of_2(S))
    if H_pad >= 512:                 # bound live vregs of the unrolled loop
        t_blk = min(t_blk, 8)
    S_pad = _round_up(S, t_blk)
    apply_mask = (S_pad != S)

    # ---- hoisted non-recurrent input projection ----------------------------
    # Pre-pad W_ih and the folded bias per gate so the einsum produces the
    # padded layout directly (no gate-tensor reshape/pad round trip in HBM).
    w_ih_p = jnp.pad(w_ih.reshape(4, H, C),
                     ((0, 0), (0, H_pad - H), (0, 0))).reshape(G4, C)
    bias_p = jnp.pad((b_ih + b_hh).reshape(4, H),
                     ((0, 0), (0, H_pad - H))).reshape(G4)
    x_p = jnp.pad(x, ((0, S_pad - S), (0, B_pad - B), (0, 0)))
    gates_x = (jnp.einsum("sbc,gc->sbg", x_p, w_ih_p,
                          precision=input_precision)
               + bias_p).astype(gate_dtype)                # (S_pad,B_pad,G4)

    # Pre-transposed per-gate recurrent weight: (4, H_pad, H_pad),
    # w_hh_t[g, i, j] = W_hh[g*H + j, i] (zero in padded rows/cols).
    w_hh_t = jnp.transpose(w_hh.reshape(4, H, H), (0, 2, 1))
    w_hh_t = jnp.pad(w_hh_t, ((0, 0), (0, H_pad - H), (0, H_pad - H)))
    w_hh_t = w_hh_t.astype(recurrent_matmul_dtype)

    h0_p = jnp.pad(h0, ((0, B_pad - B), (0, H_pad - H))).astype(jnp.float32)
    c0_p = jnp.pad(c0, ((0, B_pad - B), (0, H_pad - H))).astype(jnp.float32)

    grid = (B_pad // B_blk, S_pad // t_blk)

    # ---- VMEM budget (explicit, with headroom) ------------------------------
    def _bytes(dt):
        return jnp.dtype(dt).itemsize

    footprint = (2 * t_blk * B_blk * G4 * _bytes(gate_dtype)      # gates (x2)
                 + 2 * t_blk * B_blk * H_pad * _bytes(out_dtype)  # outs  (x2)
                 + 4 * B_blk * H_pad * 4                          # h0/c0 (x2)
                 + 2 * B_blk * H_pad * _bytes(out_dtype)          # cy    (x2)
                 + 2 * B_blk * H_pad * 4                          # scratch
                 + 2 * 4 * H_pad * H_pad * _bytes(recurrent_matmul_dtype))
    vmem_limit = max(32 << 20, min(int(footprint * 1.5) + (2 << 20), 128 << 20))

    kernel = _make_rec_kernel(S, apply_mask)

    out_shape = (
        jax.ShapeDtypeStruct((S_pad, B_pad, H_pad), out_dtype),   # per-step h
        jax.ShapeDtypeStruct((B_pad, H_pad), out_dtype),          # final cy
    )

    def _build(weight_mode):
        w_kwargs = {} if weight_mode is None else {"pipeline_mode": weight_mode}
        grid_spec = pltpu.PrefetchScalarGridSpec(
            num_scalar_prefetch=0,
            grid=grid,
            in_specs=[
                pl.BlockSpec((t_blk, B_blk, G4), lambda b, t: (t, b, 0)),
                pl.BlockSpec((B_blk, H_pad), lambda b, t: (b, 0)),
                pl.BlockSpec((B_blk, H_pad), lambda b, t: (b, 0)),
                pl.BlockSpec((4, H_pad, H_pad), lambda b, t: (0, 0, 0),
                             **w_kwargs),
            ],
            out_specs=[
                pl.BlockSpec((t_blk, B_blk, H_pad), lambda b, t: (t, b, 0)),
                pl.BlockSpec((B_blk, H_pad), lambda b, t: (b, 0)),
            ],
            scratch_shapes=[
                pltpu.VMEM((B_blk, H_pad), jnp.float32),   # h carry
                pltpu.VMEM((B_blk, H_pad), jnp.float32),   # c carry
            ],
        )
        return pl.pallas_call(
            kernel,
            out_shape=out_shape,
            grid_spec=grid_spec,
            compiler_params=pltpu.CompilerParams(
                # batch blocks are independent (2 TCs on v7x when >=2 blocks);
                # time is the recurrent axis and MUST stay last + "arbitrary".
                dimension_semantics=("parallel", "arbitrary"),
                vmem_limit_bytes=vmem_limit),
        )

    try:
        # Single-buffer the constant recurrent weight (it is never re-fetched).
        outs_p, cy_p = _build(pl.Buffered(1))(gates_x, h0_p, c0_p, w_hh_t)
    except Exception:
        # Fallback if this Pallas build rejects pipeline_mode on a BlockSpec.
        outs_p, cy_p = _build(None)(gates_x, h0_p, c0_p, w_hh_t)

    outs = outs_p[:S, :B, :H]
    hy = outs[S - 1]                     # identical to the dropped hy output
    cy = cy_p[:B, :H]
    return outs, (hy, cy)


def _reference_forward(x, h0, c0, w_ih, b_ih, w_hh, b_hh):
    """Plain JAX reference replicating the PyTorch forward (eval mode)."""
    H = h0.shape[-1]
    hi = jax.lax.Precision.HIGHEST
    h, c = h0, c0
    outs = []
    for t in range(x.shape[0]):
        gates = (jnp.dot(x[t], w_ih.T, precision=hi) + b_ih
                 + jnp.dot(h, w_hh.T, precision=hi) + b_hh)
        i = jax.nn.sigmoid(gates[:, 0 * H:1 * H])
        f = jax.nn.sigmoid(gates[:, 1 * H:2 * H])
        g = jnp.tanh(gates[:, 2 * H:3 * H])
        o = jax.nn.sigmoid(gates[:, 3 * H:4 * H])
        c = f * c + i * g
        h = o * jnp.tanh(c)
        outs.append(h)
    return jnp.stack(outs), (h, c)


if __name__ == "__main__":
    S, B, C, H = 8, 2, 16, 32
    key = jax.random.PRNGKey(0)
    kx, kh, kc, kwi, kbi, kwh = jax.random.split(key, 6)

    x = jax.random.normal(kx, (S, B, C), dtype=jnp.float32)
    h0 = jax.random.normal(kh, (B, H), dtype=jnp.float32)
    c0 = jax.random.normal(kc, (B, H), dtype=jnp.float32)

    # tn_block modelled as dense linear C -> 4H (deterministic init).
    w_ih = jax.random.normal(kwi, (4 * H, C), dtype=jnp.float32) * 0.1
    b_ih = jax.random.normal(kbi, (4 * H,), dtype=jnp.float32) * 0.1
    # weight_hh: orthogonal init (matches nn.init.orthogonal_), bias_hh zeros.
    w_hh_raw = jax.random.normal(kwh, (4 * H, H), dtype=jnp.float32)
    q, _ = jnp.linalg.qr(w_hh_raw)
    w_hh = q.astype(jnp.float32)                 # (4H, H)
    b_hh = jnp.zeros((4 * H,), dtype=jnp.float32)

    ref_outs, (ref_hy, ref_cy) = _reference_forward(
        x, h0, c0, w_ih, b_ih, w_hh, b_hh)

    # 1) Default path (f32 gates / f32 recurrent matmul): tight tolerance.
    outs, (hy, cy) = tnlstm_forward(x, h0, c0, w_ih, b_ih, w_hh, b_hh)
    jax.block_until_ready(outs)
    jax.block_until_ready(hy)
    jax.block_until_ready(cy)
    assert outs.shape == (S, B, H)
    assert hy.shape == (B, H) and cy.shape == (B, H)
    assert jnp.allclose(outs, ref_outs, atol=1e-4, rtol=1e-4)
    assert jnp.allclose(hy, ref_hy, atol=1e-4, rtol=1e-4)
    assert jnp.allclose(cy, ref_cy, atol=1e-4, rtol=1e-4)

    # 2) bf16 gates + bf16 recurrent weights (v6e/v7x fast path), f32 state:
    #    looser tolerance (precision tradeoff flagged in the review).
    outs_bf, (hy_bf, cy_bf) = tnlstm_forward(
        x, h0, c0, w_ih, b_ih, w_hh, b_hh,
        gate_dtype=jnp.bfloat16, recurrent_matmul_dtype=jnp.bfloat16)
    jax.block_until_ready(outs_bf)
    assert jnp.allclose(outs_bf, ref_outs, atol=5e-2, rtol=5e-2)
    assert jnp.allclose(hy_bf, ref_hy, atol=5e-2, rtol=5e-2)
    assert jnp.allclose(cy_bf, ref_cy, atol=5e-2, rtol=5e-2)

    # 3) Odd sequence length (exercises the masked time-tail path).
    S2 = 5
    x2 = x[:S2]
    ref_outs2, (ref_hy2, ref_cy2) = _reference_forward(
        x2, h0, c0, w_ih, b_ih, w_hh, b_hh)
    outs2, (hy2, cy2) = tnlstm_forward(x2, h0, c0, w_ih, b_ih, w_hh, b_hh)
    jax.block_until_ready(outs2)
    assert outs2.shape == (S2, B, H)
    assert jnp.allclose(outs2, ref_outs2, atol=1e-4, rtol=1e-4)
    assert jnp.allclose(hy2, ref_hy2, atol=1e-4, rtol=1e-4)
    assert jnp.allclose(cy2, ref_cy2, atol=1e-4, rtol=1e-4)

    print("KERNEL_OK")
</pallas_src>

<mosaic_0001>
module attributes {stable_mosaic.version = 11 : i64} {
  func.func @kernel(%arg0: i32, %arg1: i32, %arg2: memref<8x8x512xf32, #tpu.memory_space<vmem>>, %arg3: memref<8x128xf32, #tpu.memory_space<vmem>>, %arg4: memref<8x128xf32, #tpu.memory_space<vmem>>, %arg5: memref<4x128x128xf32, #tpu.memory_space<vmem>>, %arg6: memref<8x8x128xf32, #tpu.memory_space<vmem>>, %arg7: memref<8x128xf32, #tpu.memory_space<vmem>>, %arg8: memref<8x128xf32, #tpu.memory_space<vmem>>, %arg9: memref<8x128xf32, #tpu.memory_space<vmem>>) attributes {dimension_semantics = [#tpu.dimension_semantics<parallel>, #tpu.dimension_semantics<arbitrary>], iteration_bounds = array<i64: 1, 1>, scalar_prefetch = 0 : i64, scratch_operands = 2 : i64, tpu.core_type = #tpu.core_type<tc>, window_params = [{transform_indices = @transform_0, window_bounds = array<i64: 8, 8, 512>}, {transform_indices = @transform_1, window_bounds = array<i64: 8, 128>}, {transform_indices = @transform_2, window_bounds = array<i64: 8, 128>}, {pipeline_mode = #tpu.pipeline_mode<synchronous>, transform_indices = @transform_3, window_bounds = array<i64: 4, 128, 128>}, {transform_indices = @transform_4, window_bounds = array<i64: 8, 8, 128>}, {transform_indices = @transform_5, window_bounds = array<i64: 8, 128>}]} {
    %c0_i32 = arith.constant 0 : i32
    %0 = arith.cmpi eq, %arg1, %c0_i32 : i32
    %1 = arith.extui %0 : i1 to i32
    %c0_i32_0 = arith.constant 0 : i32
    %2 = arith.cmpi ne, %1, %c0_i32_0 : i32
    scf.if %2 {
      %c0_191 = arith.constant 0 : index
      %c0_192 = arith.constant 0 : index
      %394 = vector.load %arg3[%c0_191, %c0_192] : memref<8x128xf32, #tpu.memory_space<vmem>>, vector<8x128xf32>
      %c0_193 = arith.constant 0 : index
      %c0_194 = arith.constant 0 : index
      %395 = vector.load %arg8[%c0_193, %c0_194] : memref<8x128xf32, #tpu.memory_space<vmem>>, vector<8x128xf32>
      tpu.vector_store %arg8[%c0_193, %c0_194], %394 {strides = array<i32>} : memref<8x128xf32, #tpu.memory_space<vmem>>, vector<8x128xf32>,
      %c0_195 = arith.constant 0 : index
      %c0_196 = arith.constant 0 : index
      %396 = vector.load %arg4[%c0_195, %c0_196] : memref<8x128xf32, #tpu.memory_space<vmem>>, vector<8x128xf32>
      %c0_197 = arith.constant 0 : index
      %c0_198 = arith.constant 0 : index
      %397 = vector.load %arg9[%c0_197, %c0_198] : memref<8x128xf32, #tpu.memory_space<vmem>>, vector<8x128xf32>
      tpu.vector_store %arg9[%c0_197, %c0_198], %396 {strides = array<i32>} : memref<8x128xf32, #tpu.memory_space<vmem>>, vector<8x128xf32>,
    } else {
    }
    %c0 = arith.constant 0 : index
    %c0_1 = arith.constant 0 : index
    %3 = vector.load %arg8[%c0, %c0_1] : memref<8x128xf32, #tpu.memory_space<vmem>>, vector<8x128xf32>
    %c0_2 = arith.constant 0 : index
    %c0_3 = arith.constant 0 : index
    %4 = vector.load %arg9[%c0_2, %c0_3] : memref<8x128xf32, #tpu.memory_space<vmem>>, vector<8x128xf32>
    %c0_i32_4 = arith.constant 0 : i32
    %5 = arith.index_cast %c0_i32_4 : i32 to index
    %c0_5 = arith.constant 0 : index
    %c0_6 = arith.constant 0 : index
    %6 = vector.load %arg2[%5, %c0_5, %c0_6] : memref<8x8x512xf32, #tpu.memory_space<vmem>>, vector<1x8x512xf32>
    %7 = vector.shape_cast %6 : vector<1x8x512xf32> to vector<8x512xf32>
    %8 = vector.extract_strided_slice %7 {offsets = [0, 0], sizes = [8, 128], strides = [1, 1]} : vector<8x512xf32> to vector<8x128xf32>
    %c0_7 = arith.constant 0 : index
    %c0_8 = arith.constant 0 : index
    %c0_9 = arith.constant 0 : index
    %9 = vector.load %arg5[%c0_7, %c0_8, %c0_9] : memref<4x128x128xf32, #tpu.memory_space<vmem>>, vector<1x128x128xf32>
    %10 = vector.shape_cast %9 : vector<1x128x128xf32> to vector<128x128xf32>
    %cst = arith.constant dense<0.000000e+00> : vector<8x128xf32>
    %11 = tpu.matmul %3, %10, %cst {dimension_numbers = #tpu.dot_dimension_numbers<[1], [0], [0], [1], [0, 0, 1, 1], [], []>} : vector<8x128xf32>, vector<128x128xf32>, vector<8x128xf32> -> vector<8x128xf32>
    %12 = arith.addf %8, %11 : vector<8x128xf32>
    %13 = arith.negf %12 : vector<8x128xf32>
    %14 = math.exp %13 : vector<8x128xf32>
    %cst_10 = arith.constant 1.000000e+00 : f32
    %15 = vector.broadcast %cst_10 : f32 to vector<8x128xf32>
    %16 = arith.addf %15, %14 : vector<8x128xf32>
    %17 = arith.divf %15, %16 : vector<8x128xf32>
    %18 = vector.extract_strided_slice %7 {offsets = [0, 128], sizes = [8, 128], strides = [1, 1]} : vector<8x512xf32> to vector<8x128xf32>
    %c1 = arith.constant 1 : index
    %c0_11 = arith.constant 0 : index
    %c0_12 = arith.constant 0 : index
    %19 = vector.load %arg5[%c1, %c0_11, %c0_12] : memref<4x128x128xf32, #tpu.memory_space<vmem>>, vector<1x128x128xf32>
    %20 = vector.shape_cast %19 : vector<1x128x128xf32> to vector<128x128xf32>
    %cst_13 = arith.constant dense<0.000000e+00> : vector<8x128xf32>
    %21 = tpu.matmul %3, %20, %cst_13 {dimension_numbers = #tpu.dot_dimension_numbers<[1], [0], [0], [1], [0, 0, 1, 1], [], []>} : vector<8x128xf32>, vector<128x128xf32>, vector<8x128xf32> -> vector<8x128xf32>
    %22 = arith.addf %18, %21 : vector<8x128xf32>
    %23 = arith.negf %22 : vector<8x128xf32>
    %24 = math.exp %23 : vector<8x128xf32>
    %cst_14 = arith.constant 1.000000e+00 : f32
    %25 = vector.broadcast %cst_14 : f32 to vector<8x128xf32>
    %26 = arith.addf %25, %24 : vector<8x128xf32>
    %27 = arith.divf %25, %26 : vector<8x128xf32>
    %28 = vector.extract_strided_slice %7 {offsets = [0, 256], sizes = [8, 128], strides = [1, 1]} : vector<8x512xf32> to vector<8x128xf32>
    %c2 = arith.constant 2 : index
    %c0_15 = arith.constant 0 : index
    %c0_16 = arith.constant 0 : index
    %29 = vector.load %arg5[%c2, %c0_15, %c0_16] : memref<4x128x128xf32, #tpu.memory_space<vmem>>, vector<1x128x128xf32>
    %30 = vector.shape_cast %29 : vector<1x128x128xf32> to vector<128x128xf32>
    %cst_17 = arith.constant dense<0.000000e+00> : vector<8x128xf32>
    %31 = tpu.matmul %3, %30, %cst_17 {dimension_numbers = #tpu.dot_dimension_numbers<[1], [0], [0], [1], [0, 0, 1, 1], [], []>} : vector<8x128xf32>, vector<128x128xf32>, vector<8x128xf32> -> vector<8x128xf32>
    %32 = arith.addf %28, %31 : vector<8x128xf32>
    %33 = math.tanh %32 : vector<8x128xf32>
    %34 = vector.extract_strided_slice %7 {offsets = [0, 384], sizes = [8, 128], strides = [1, 1]} : vector<8x512xf32> to vector<8x128xf32>
    %c3 = arith.constant 3 : index
    %c0_18 = arith.constant 0 : index
    %c0_19 = arith.constant 0 : index
    %35 = vector.load %arg5[%c3, %c0_18, %c0_19] : memref<4x128x128xf32, #tpu.memory_space<vmem>>, vector<1x128x128xf32>
    %36 = vector.shape_cast %35 : vector<1x128x128xf32> to vector<128x128xf32>
    %cst_20 = arith.constant dense<0.000000e+00> : vector<8x128xf32>
    %37 = tpu.matmul %3, %36, %cst_20 {dimension_numbers = #tpu.dot_dimension_numbers<[1], [0], [0], [1], [0, 0, 1, 1], [], []>} : vector<8x128xf32>, vector<128x128xf32>, vector<8x128xf32> -> vector<8x128xf32>
    %38 = arith.addf %34, %37 : vector<8x128xf32>
    %39 = arith.negf %38 : vector<8x128xf32>
    %40 = math.exp %39 : vector<8x128xf32>
    %cst_21 = arith.constant 1.000000e+00 : f32
    %41 = vector.broadcast %cst_21 : f32 to vector<8x128xf32>
    %42 = arith.addf %41, %40 : vector<8x128xf32>
    %43 = arith.divf %41, %42 : vector<8x128xf32>
    %44 = arith.mulf %27, %4 : vector<8x128xf32>
    %45 = arith.mulf %17, %33 : vector<8x128xf32>
    %46 = arith.addf %44, %45 : vector<8x128xf32>
    %47 = math.tanh %46 : vector<8x128xf32>
    %48 = arith.mulf %43, %47 : vector<8x128xf32>
    %49 = arith.index_cast %c0_i32_4 : i32 to index
    %c0_22 = arith.constant 0 : index
    %c0_23 = arith.constant 0 : index
    %50 = vector.load %arg6[%49, %c0_22, %c0_23] : memref<8x8x128xf32, #tpu.memory_space<vmem>>, vector<1x8x128xf32>
    %51 = vector.shape_cast %50 : vector<1x8x128xf32> to vector<8x128xf32>
    %52 = vector.shape_cast %48 : vector<8x128xf32> to vector<1x8x128xf32>
    tpu.vector_store %arg6[%49, %c0_22, %c0_23], %52 {strides = array<i32>} : memref<8x8x128xf32, #tpu.memory_space<vmem>>, vector<1x8x128xf32>,
    %c1_i32 = arith.constant 1 : i32
    %53 = arith.index_cast %c1_i32 : i32 to index
    %c0_24 = arith.constant 0 : index
    %c0_25 = arith.constant 0 : index
    %54 = vector.load %arg2[%53, %c0_24, %c0_25] : memref<8x8x512xf32, #tpu.memory_space<vmem>>, vector<1x8x512xf32>
    %55 = vector.shape_cast %54 : vector<1x8x512xf32> to vector<8x512xf32>
    %56 = vector.extract_strided_slice %55 {offsets = [0, 0], sizes = [8, 128], strides = [1, 1]} : vector<8x512xf32> to vector<8x128xf32>
    %c0_26 = arith.constant 0 : index
    %c0_27 = arith.constant 0 : index
    %c0_28 = arith.constant 0 : index
    %57 = vector.load %arg5[%c0_26, %c0_27, %c0_28] : memref<4x128x128xf32, #tpu.memory_space<vmem>>, vector<1x128x128xf32>
    %58 = vector.shape_cast %57 : vector<1x128x128xf32> to vector<128x128xf32>
    %cst_29 = arith.constant dense<0.000000e+00> : vector<8x128xf32>
    %59 = tpu.matmul %48, %58, %cst_29 {dimension_numbers = #tpu.dot_dimension_numbers<[1], [0], [0], [1], [0, 0, 1, 1], [], []>} : vector<8x128xf32>, vector<128x128xf32>, vector<8x128xf32> -> vector<8x128xf32>
    %60 = arith.addf %56, %59 : vector<8x128xf32>
    %61 = arith.negf %60 : vector<8x128xf32>
    %62 = math.exp %61 : vector<8x128xf32>
    %cst_30 = arith.constant 1.000000e+00 : f32
    %63 = vector.broadcast %cst_30 : f32 to vector<8x128xf32>
    %64 = arith.addf %63, %62 : vector<8x128xf32>
    %65 = arith.divf %63, %64 : vector<8x128xf32>
    %66 = vector.extract_strided_slice %55 {offsets = [0, 128], sizes = [8, 128], strides = [1, 1]} : vector<8x512xf32> to vector<8x128xf32>
    %c1_31 = arith.constant 1 : index
    %c0_32 = arith.constant 0 : index
    %c0_33 = arith.constant 0 : index
    %67 = vector.load %arg5[%c1_31, %c0_32, %c0_33] : memref<4x128x128xf32, #tpu.memory_space<vmem>>, vector<1x128x128xf32>
    %68 = vector.shape_cast %67 : vector<1x128x128xf32> to vector<128x128xf32>
    %cst_34 = arith.constant dense<0.000000e+00> : vector<8x128xf32>
    %69 = tpu.matmul %48, %68, %cst_34 {dimension_numbers = #tpu.dot_dimension_numbers<[1], [0], [0], [1], [0, 0, 1, 1], [], []>} : vector<8x128xf32>, vector<128x128xf32>, vector<8x128xf32> -> vector<8x128xf32>
    %70 = arith.addf %66, %69 : vector<8x128xf32>
    %71 = arith.negf %70 : vector<8x128xf32>
    %72 = math.exp %71 : vector<8x128xf32>
    %cst_35 = arith.constant 1.000000e+00 : f32
    %73 = vector.broadcast %cst_35 : f32 to vector<8x128xf32>
    %74 = arith.addf %73, %72 : vector<8x128xf32>
    %75 = arith.divf %73, %74 : vector<8x128xf32>
    %76 = vector.extract_strided_slice %55 {offsets = [0, 256], sizes = [8, 128], strides = [1, 1]} : vector<8x512xf32> to vector<8x128xf32>
    %c2_36 = arith.constant 2 : index
    %c0_37 = arith.constant 0 : index
    %c0_38 = arith.constant 0 : index
    %77 = vector.load %arg5[%c2_36, %c0_37, %c0_38] : memref<4x128x128xf32, #tpu.memory_space<vmem>>, vector<1x128x128xf32>
    %78 = vector.shape_cast %77 : vector<1x128x128xf32> to vector<128x128xf32>
    %cst_39 = arith.constant dense<0.000000e+00> : vector<8x128xf32>
    %79 = tpu.matmul %48, %78, %cst_39 {dimension_numbers = #tpu.dot_dimension_numbers<[1], [0], [0], [1], [0, 0, 1, 1], [], []>} : vector<8x128xf32>, vector<128x128xf32>, vector<8x128xf32> -> vector<8x128xf32>
    %80 = arith.addf %76, %79 : vector<8x128xf32>
    %81 = math.tanh %80 : vector<8x128xf32>
    %82 = vector.extract_strided_slice %55 {offsets = [0, 384], sizes = [8, 128], strides = [1, 1]} : vector<8x512xf32> to vector<8x128xf32>
    %c3_40 = arith.constant 3 : index
    %c0_41 = arith.constant 0 : index
    %c0_42 = arith.constant 0 : index
    %83 = vector.load %arg5[%c3_40, %c0_41, %c0_42] : memref<4x128x128xf32, #tpu.memory_space<vmem>>, vector<1x128x128xf32>
    %84 = vector.shape_cast %83 : vector<1x128x128xf32> to vector<128x128xf32>
    %cst_43 = arith.constant dense<0.000000e+00> : vector<8x128xf32>
    %85 = tpu.matmul %48, %84, %cst_43 {dimension_numbers = #tpu.dot_dimension_numbers<[1], [0], [0], [1], [0, 0, 1, 1], [], []>} : vector<8x128xf32>, vector<128x128xf32>, vector<8x128xf32> -> vector<8x128xf32>
    %86 = arith.addf %82, %85 : vector<8x128xf32>
    %87 = arith.negf %86 : vector<8x128xf32>
    %88 = math.exp %87 : vector<8x128xf32>
    %cst_44 = arith.constant 1.000000e+00 : f32
    %89 = vector.broadcast %cst_44 : f32 to vector<8x128xf32>
    %90 = arith.addf %89, %88 : vector<8x128xf32>
    %91 = arith.divf %89, %90 : vector<8x128xf32>
    %92 = arith.mulf %75, %46 : vector<8x128xf32>
    %93 = arith.mulf %65, %81 : vector<8x128xf32>
    %94 = arith.addf %92, %93 : vector<8x128xf32>
    %95 = math.tanh %94 : vector<8x128xf32>
    %96 = arith.mulf %91, %95 : vector<8x128xf32>
    %97 = arith.index_cast %c1_i32 : i32 to index
    %c0_45 = arith.constant 0 : index
    %c0_46 = arith.constant 0 : index
    %98 = vector.load %arg6[%97, %c0_45, %c0_46] : memref<8x8x128xf32, #tpu.memory_space<vmem>>, vector<1x8x128xf32>
    %99 = vector.shape_cast %98 : vector<1x8x128xf32> to vector<8x128xf32>
    %100 = vector.shape_cast %96 : vector<8x128xf32> to vector<1x8x128xf32>
    tpu.vector_store %arg6[%97, %c0_45, %c0_46], %100 {strides = array<i32>} : memref<8x8x128xf32, #tpu.memory_space<vmem>>, vector<1x8x128xf32>,
    %c2_i32 = arith.constant 2 : i32
    %101 = arith.index_cast %c2_i32 : i32 to index
    %c0_47 = arith.constant 0 : index
    %c0_48 = arith.constant 0 : index
    %102 = vector.load %arg2[%101, %c0_47, %c0_48] : memref<8x8x512xf32, #tpu.memory_space<vmem>>, vector<1x8x512xf32>
    %103 = vector.shape_cast %102 : vector<1x8x512xf32> to vector<8x512xf32>
    %104 = vector.extract_strided_slice %103 {offsets = [0, 0], sizes = [8, 128], strides = [1, 1]} : vector<8x512xf32> to vector<8x128xf32>
    %c0_49 = arith.constant 0 : index
    %c0_50 = arith.constant 0 : index
    %c0_51 = arith.constant 0 : index
    %105 = vector.load %arg5[%c0_49, %c0_50, %c0_51] : memref<4x128x128xf32, #tpu.memory_space<vmem>>, vector<1x128x128xf32>
    %106 = vector.shape_cast %105 : vector<1x128x128xf32> to vector<128x128xf32>
    %cst_52 = arith.constant dense<0.000000e+00> : vector<8x128xf32>
    %107 = tpu.matmul %96, %106, %cst_52 {dimension_numbers = #tpu.dot_dimension_numbers<[1], [0], [0], [1], [0, 0, 1, 1], [], []>} : vector<8x128xf32>, vector<128x128xf32>, vector<8x128xf32> -> vector<8x128xf32>
    %108 = arith.addf %104, %107 : vector<8x128xf32>
    %109 = arith.negf %108 : vector<8x128xf32>
    %110 = math.exp %109 : vector<8x128xf32>
    %cst_53 = arith.constant 1.000000e+00 : f32
    %111 = vector.broadcast %cst_53 : f32 to vector<8x128xf32>
    %112 = arith.addf %111, %110 : vector<8x128xf32>
    %113 = arith.divf %111, %112 : vector<8x128xf32>
    %114 = vector.extract_strided_slice %103 {offsets = [0, 128], sizes = [8, 128], strides = [1, 1]} : vector<8x512xf32> to vector<8x128xf32>
    %c1_54 = arith.constant 1 : index
    %c0_55 = arith.constant 0 : index
    %c0_56 = arith.constant 0 : index
    %115 = vector.load %arg5[%c1_54, %c0_55, %c0_56] : memref<4x128x128xf32, #tpu.memory_space<vmem>>, vector<1x128x128xf32>
    %116 = vector.shape_cast %115 : vector<1x128x128xf32> to vector<128x128xf32>
    %cst_57 = arith.constant dense<0.000000e+00> : vector<8x128xf32>
    %117 = tpu.matmul %96, %116, %cst_57 {dimension_numbers = #tpu.dot_dimension_numbers<[1], [0], [0], [1], [0, 0, 1, 1], [], []>} : vector<8x128xf32>, vector<128x128xf32>, vector<8x128xf32> -> vector<8x128xf32>
    %118 = arith.addf %114, %117 : vector<8x128xf32>
    %119 = arith.negf %118 : vector<8x128xf32>
    %120 = math.exp %119 : vector<8x128xf32>
    %cst_58 = arith.constant 1.000000e+00 : f32
    %121 = vector.broadcast %cst_58 : f32 to vector<8x128xf32>
    %122 = arith.addf %121, %120 : vector<8x128xf32>
    %123 = arith.divf %121, %122 : vector<8x128xf32>
    %124 = vector.extract_strided_slice %103 {offsets = [0, 256], sizes = [8, 128], strides = [1, 1]} : vector<8x512xf32> to vector<8x128xf32>
    %c2_59 = arith.constant 2 : index
    %c0_60 = arith.constant 0 : index
    %c0_61 = arith.constant 0 : index
    %125 = vector.load %arg5[%c2_59, %c0_60, %c0_61] : memref<4x128x128xf32, #tpu.memory_space<vmem>>, vector<1x128x128xf32>
    %126 = vector.shape_cast %125 : vector<1x128x128xf32> to vector<128x128xf32>
    %cst_62 = arith.constant dense<0.000000e+00> : vector<8x128xf32>
    %127 = tpu.matmul %96, %126, %cst_62 {dimension_numbers = #tpu.dot_dimension_numbers<[1], [0], [0], [1], [0, 0, 1, 1], [], []>} : vector<8x128xf32>, vector<128x128xf32>, vector<8x128xf32> -> vector<8x128xf32>
    %128 = arith.addf %124, %127 : vector<8x128xf32>
    %129 = math.tanh %128 : vector<8x128xf32>
    %130 = vector.extract_strided_slice %103 {offsets = [0, 384], sizes = [8, 128], strides = [1, 1]} : vector<8x512xf32> to vector<8x128xf32>
    %c3_63 = arith.constant 3 : index
    %c0_64 = arith.constant 0 : index
    %c0_65 = arith.constant 0 : index
    %131 = vector.load %arg5[%c3_63, %c0_64, %c0_65] : memref<4x128x128xf32, #tpu.memory_space<vmem>>, vector<1x128x128xf32>
    %132 = vector.shape_cast %131 : vector<1x128x128xf32> to vector<128x128xf32>
    %cst_66 = arith.constant dense<0.000000e+00> : vector<8x128xf32>
    %133 = tpu.matmul %96, %132, %cst_66 {dimension_numbers = #tpu.dot_dimension_numbers<[1], [0], [0], [1], [0, 0, 1, 1], [], []>} : vector<8x128xf32>, vector<128x128xf32>, vector<8x128xf32> -> vector<8x128xf32>
    %134 = arith.addf %130, %133 : vector<8x128xf32>
    %135 = arith.negf %134 : vector<8x128xf32>
    %136 = math.exp %135 : vector<8x128xf32>
    %cst_67 = arith.constant 1.000000e+00 : f32
    %137 = vector.broadcast %cst_67 : f32 to vector<8x128xf32>
    %138 = arith.addf %137, %136 : vector<8x128xf32>
    %139 = arith.divf %137, %138 : vector<8x128xf32>
    %140 = arith.mulf %123, %94 : vector<8x128xf32>
    %141 = arith.mulf %113, %129 : vector<8x128xf32>
    %142 = arith.addf %140, %141 : vector<8x128xf32>
    %143 = math.tanh %142 : vector<8x128xf32>
    %144 = arith.mulf %139, %143 : vector<8x128xf32>
    %145 = arith.index_cast %c2_i32 : i32 to index
    %c0_68 = arith.constant 0 : index
    %c0_69 = arith.constant 0 : index
    %146 = vector.load %arg6[%145, %c0_68, %c0_69] : memref<8x8x128xf32, #tpu.memory_space<vmem>>, vector<1x8x128xf32>
    %147 = vector.shape_cast %146 : vector<1x8x128xf32> to vector<8x128xf32>
    %148 = vector.shape_cast %144 : vector<8x128xf32> to vector<1x8x128xf32>
    tpu.vector_store %arg6[%145, %c0_68, %c0_69], %148 {strides = array<i32>} : memref<8x8x128xf32, #tpu.memory_space<vmem>>, vector<1x8x128xf32>,
    %c3_i32 = arith.constant 3 : i32
    %149 = arith.index_cast %c3_i32 : i32 to index
    %c0_70 = arith.constant 0 : index
    %c0_71 = arith.constant 0 : index
    %150 = vector.load %arg2[%149, %c0_70, %c0_71] : memref<8x8x512xf32, #tpu.memory_space<vmem>>, vector<1x8x512xf32>
    %151 = vector.shape_cast %150 : vector<1x8x512xf32> to vector<8x512xf32>
    %152 = vector.extract_strided_slice %151 {offsets = [0, 0], sizes = [8, 128], strides = [1, 1]} : vector<8x512xf32> to vector<8x128xf32>
    %c0_72 = arith.constant 0 : index
    %c0_73 = arith.constant 0 : index
    %c0_74 = arith.constant 0 : index
    %153 = vector.load %arg5[%c0_72, %c0_73, %c0_74] : memref<4x128x128xf32, #tpu.memory_space<vmem>>, vector<1x128x128xf32>
    %154 = vector.shape_cast %153 : vector<1x128x128xf32> to vector<128x128xf32>
    %cst_75 = arith.constant dense<0.000000e+00> : vector<8x128xf32>
    %155 = tpu.matmul %144, %154, %cst_75 {dimension_numbers = #tpu.dot_dimension_numbers<[1], [0], [0], [1], [0, 0, 1, 1], [], []>} : vector<8x128xf32>, vector<128x128xf32>, vector<8x128xf32> -> vector<8x128xf32>
    %156 = arith.addf %152, %155 : vector<8x128xf32>
    %157 = arith.negf %156 : vector<8x128xf32>
    %158 = math.exp %157 : vector<8x128xf32>
    %cst_76 = arith.constant 1.000000e+00 : f32
    %159 = vector.broadcast %cst_76 : f32 to vector<8x128xf32>
    %160 = arith.addf %159, %158 : vector<8x128xf32>
    %161 = arith.divf %159, %160 : vector<8x128xf32>
    %162 = vector.extract_strided_slice %151 {offsets = [0, 128], sizes = [8, 128], strides = [1, 1]} : vector<8x512xf32> to vector<8x128xf32>
    %c1_77 = arith.constant 1 : index
    %c0_78 = arith.constant 0 : index
    %c0_79 = arith.constant 0 : index
    %163 = vector.load %arg5[%c1_77, %c0_78, %c0_79] : memref<4x128x128xf32, #tpu.memory_space<vmem>>, vector<1x128x128xf32>
    %164 = vector.shape_cast %163 : vector<1x128x128xf32> to vector<128x128xf32>
    %cst_80 = arith.constant dense<0.000000e+00> : vector<8x128xf32>
    %165 = tpu.matmul %144, %164, %cst_80 {dimension_numbers = #tpu.dot_dimension_numbers<[1], [0], [0], [1], [0, 0, 1, 1], [], []>} : vector<8x128xf32>, vector<128x128xf32>, vector<8x128xf32> -> vector<8x128xf32>
    %166 = arith.addf %162, %165 : vector<8x128xf32>
    %167 = arith.negf %166 : vector<8x128xf32>
    %168 = math.exp %167 : vector<8x128xf32>
    %cst_81 = arith.constant 1.000000e+00 : f32
    %169 = vector.broadcast %cst_81 : f32 to vector<8x128xf32>
    %170 = arith.addf %169, %168 : vector<8x128xf32>
    %171 = arith.divf %169, %170 : vector<8x128xf32>
    %172 = vector.extract_strided_slice %151 {offsets = [0, 256], sizes = [8, 128], strides = [1, 1]} : vector<8x512xf32> to vector<8x128xf32>
    %c2_82 = arith.constant 2 : index
    %c0_83 = arith.constant 0 : index
    %c0_84 = arith.constant 0 : index
    %173 = vector.load %arg5[%c2_82, %c0_83, %c0_84] : memref<4x128x128xf32, #tpu.memory_space<vmem>>, vector<1x128x128xf32>
    %174 = vector.shape_cast %173 : vector<1x128x128xf32> to vector<128x128xf32>
    %cst_85 = arith.constant dense<0.000000e+00> : vector<8x128xf32>
    %175 = tpu.matmul %144, %174, %cst_85 {dimension_numbers = #tpu.dot_dimension_numbers<[1], [0], [0], [1], [0, 0, 1, 1], [], []>} : vector<8x128xf32>, vector<128x128xf32>, vector<8x128xf32> -> vector<8x128xf32>
    %176 = arith.addf %172, %175 : vector<8x128xf32>
    %177 = math.tanh %176 : vector<8x128xf32>
    %178 = vector.extract_strided_slice %151 {offsets = [0, 384], sizes = [8, 128], strides = [1, 1]} : vector<8x512xf32> to vector<8x128xf32>
    %c3_86 = arith.constant 3 : index
    %c0_87 = arith.constant 0 : index
    %c0_88 = arith.constant 0 : index
    %179 = vector.load %arg5[%c3_86, %c0_87, %c0_88] : memref<4x128x128xf32, #tpu.memory_space<vmem>>, vector<1x128x128xf32>
    %180 = vector.shape_cast %179 : vector<1x128x128xf32> to vector<128x128xf32>
    %cst_89 = arith.constant dense<0.000000e+00> : vector<8x128xf32>
    %181 = tpu.matmul %144, %180, %cst_89 {dimension_numbers = #tpu.dot_dimension_numbers<[1], [0], [0], [1], [0, 0, 1, 1], [], []>} : vector<8x128xf32>, vector<128x128xf32>, vector<8x128xf32> -> vector<8x128xf32>
    %182 = arith.addf %178, %181 : vector<8x128xf32>
    %183 = arith.negf %182 : vector<8x128xf32>
    %184 = math.exp %183 : vector<8x128xf32>
    %cst_90 = arith.constant 1.000000e+00 : f32
    %185 = vector.broadcast %cst_90 : f32 to vector<8x128xf32>
    %186 = arith.addf %185, %184 : vector<8x128xf32>
    %187 = arith.divf %185, %186 : vector<8x128xf32>
    %188 = arith.mulf %171, %142 : vector<8x128xf32>
    %189 = arith.mulf %161, %177 : vector<8x128xf32>
    %190 = arith.addf %188, %189 : vector<8x128xf32>
    %191 = math.tanh %190 : vector<8x128xf32>
    %192 = arith.mulf %187, %191 : vector<8x128xf32>
    %193 = arith.index_cast %c3_i32 : i32 to index
    %c0_91 = arith.constant 0 : index
    %c0_92 = arith.constant 0 : index
    %194 = vector.load %arg6[%193, %c0_91, %c0_92] : memref<8x8x128xf32, #tpu.memory_space<vmem>>, vector<1x8x128xf32>
    %195 = vector.shape_cast %194 : vector<1x8x128xf32> to vector<8x128xf32>
    %196 = vector.shape_cast %192 : vector<8x128xf32> to vector<1x8x128xf32>
    tpu.vector_store %arg6[%193, %c0_91, %c0_92], %196 {strides = array<i32>} : memref<8x8x128xf32, #tpu.memory_space<vmem>>, vector<1x8x128xf32>,
    %c4_i32 = arith.constant 4 : i32
    %197 = arith.index_cast %c4_i32 : i32 to index
    %c0_93 = arith.constant 0 : index
    %c0_94 = arith.constant 0 : index
    %198 = vector.load %arg2[%197, %c0_93, %c0_94] : memref<8x8x512xf32, #tpu.memory_space<vmem>>, vector<1x8x512xf32>
    %199 = vector.shape_cast %198 : vector<1x8x512xf32> to vector<8x512xf32>
    %200 = vector.extract_strided_slice %199 {offsets = [0, 0], sizes = [8, 128], strides = [1, 1]} : vector<8x512xf32> to vector<8x128xf32>
    %c0_95 = arith.constant 0 : index
    %c0_96 = arith.constant 0 : index
    %c0_97 = arith.constant 0 : index
    %201 = vector.load %arg5[%c0_95, %c0_96, %c0_97] : memref<4x128x128xf32, #tpu.memory_space<vmem>>, vector<1x128x128xf32>
    %202 = vector.shape_cast %201 : vector<1x128x128xf32> to vector<128x128xf32>
    %cst_98 = arith.constant dense<0.000000e+00> : vector<8x128xf32>
    %203 = tpu.matmul %192, %202, %cst_98 {dimension_numbers = #tpu.dot_dimension_numbers<[1], [0], [0], [1], [0, 0, 1, 1], [], []>} : vector<8x128xf32>, vector<128x128xf32>, vector<8x128xf32> -> vector<8x128xf32>
    %204 = arith.addf %200, %203 : vector<8x128xf32>
    %205 = arith.negf %204 : vector<8x128xf32>
    %206 = math.exp %205 : vector<8x128xf32>
    %cst_99 = arith.constant 1.000000e+00 : f32
    %207 = vector.broadcast %cst_99 : f32 to vector<8x128xf32>
    %208 = arith.addf %207, %206 : vector<8x128xf32>
    %209 = arith.divf %207, %208 : vector<8x128xf32>
    %210 = vector.extract_strided_slice %199 {offsets = [0, 128], sizes = [8, 128], strides = [1, 1]} : vector<8x512xf32> to vector<8x128xf32>
    %c1_100 = arith.constant 1 : index
    %c0_101 = arith.constant 0 : index
    %c0_102 = arith.constant 0 : index
    %211 = vector.load %arg5[%c1_100, %c0_101, %c0_102] : memref<4x128x128xf32, #tpu.memory_space<vmem>>, vector<1x128x128xf32>
    %212 = vector.shape_cast %211 : vector<1x128x128xf32> to vector<128x128xf32>
    %cst_103 = arith.constant dense<0.000000e+00> : vector<8x128xf32>
    %213 = tpu.matmul %192, %212, %cst_103 {dimension_numbers = #tpu.dot_dimension_numbers<[1], [0], [0], [1], [0, 0, 1, 1], [], []>} : vector<8x128xf32>, vector<128x128xf32>, vector<8x128xf32> -> vector<8x128xf32>
    %214 = arith.addf %210, %213 : vector<8x128xf32>
    %215 = arith.negf %214 : vector<8x128xf32>
    %216 = math.exp %215 : vector<8x128xf32>
    %cst_104 = arith.constant 1.000000e+00 : f32
    %217 = vector.broadcast %cst_104 : f32 to vector<8x128xf32>
    %218 = arith.addf %217, %216 : vector<8x128xf32>
    %219 = arith.divf %217, %218 : vector<8x128xf32>
    %220 = vector.extract_strided_slice %199 {offsets = [0, 256], sizes = [8, 128], strides = [1, 1]} : vector<8x512xf32> to vector<8x128xf32>
    %c2_105 = arith.constant 2 : index
    %c0_106 = arith.constant 0 : index
    %c0_107 = arith.constant 0 : index
    %221 = vector.load %arg5[%c2_105, %c0_106, %c0_107] : memref<4x128x128xf32, #tpu.memory_space<vmem>>, vector<1x128x128xf32>
    %222 = vector.shape_cast %221 : vector<1x128x128xf32> to vector<128x128xf32>
    %cst_108 = arith.constant dense<0.000000e+00> : vector<8x128xf32>
    %223 = tpu.matmul %192, %222, %cst_108 {dimension_numbers = #tpu.dot_dimension_numbers<[1], [0], [0], [1], [0, 0, 1, 1], [], []>} : vector<8x128xf32>, vector<128x128xf32>, vector<8x128xf32> -> vector<8x128xf32>
    %224 = arith.addf %220, %223 : vector<8x128xf32>
    %225 = math.tanh %224 : vector<8x128xf32>
    %226 = vector.extract_strided_slice %199 {offsets = [0, 384], sizes = [8, 128], strides = [1, 1]} : vector<8x512xf32> to vector<8x128xf32>
    %c3_109 = arith.constant 3 : index
    %c0_110 = arith.constant 0 : index
    %c0_111 = arith.constant 0 : index
    %227 = vector.load %arg5[%c3_109, %c0_110, %c0_111] : memref<4x128x128xf32, #tpu.memory_space<vmem>>, vector<1x128x128xf32>
    %228 = vector.shape_cast %227 : vector<1x128x128xf32> to vector<128x128xf32>
    %cst_112 = arith.constant dense<0.000000e+00> : vector<8x128xf32>
    %229 = tpu.matmul %192, %228, %cst_112 {dimension_numbers = #tpu.dot_dimension_numbers<[1], [0], [0], [1], [0, 0, 1, 1], [], []>} : vector<8x128xf32>, vector<128x128xf32>, vector<8x128xf32> -> vector<8x128xf32>
    %230 = arith.addf %226, %229 : vector<8x128xf32>
    %231 = arith.negf %230 : vector<8x128xf32>
    %232 = math.exp %231 : vector<8x128xf32>
    %cst_113 = arith.constant 1.000000e+00 : f32
    %233 = vector.broadcast %cst_113 : f32 to vector<8x128xf32>
    %234 = arith.addf %233, %232 : vector<8x128xf32>
    %235 = arith.divf %233, %234 : vector<8x128xf32>
    %236 = arith.mulf %219, %190 : vector<8x128xf32>
    %237 = arith.mulf %209, %225 : vector<8x128xf32>
    %238 = arith.addf %236, %237 : vector<8x128xf32>
    %239 = math.tanh %238 : vector<8x128xf32>
    %240 = arith.mulf %235, %239 : vector<8x128xf32>
    %241 = arith.index_cast %c4_i32 : i32 to index
    %c0_114 = arith.constant 0 : index
    %c0_115 = arith.constant 0 : index
    %242 = vector.load %arg6[%241, %c0_114, %c0_115] : memref<8x8x128xf32, #tpu.memory_space<vmem>>, vector<1x8x128xf32>
    %243 = vector.shape_cast %242 : vector<1x8x128xf32> to vector<8x128xf32>
    %244 = vector.shape_cast %240 : vector<8x128xf32> to vector<1x8x128xf32>
    tpu.vector_store %arg6[%241, %c0_114, %c0_115], %244 {strides = array<i32>} : memref<8x8x128xf32, #tpu.memory_space<vmem>>, vector<1x8x128xf32>,
    %c5_i32 = arith.constant 5 : i32
    %245 = arith.index_cast %c5_i32 : i32 to index
    %c0_116 = arith.constant 0 : index
    %c0_117 = arith.constant 0 : index
    %246 = vector.load %arg2[%245, %c0_116, %c0_117] : memref<8x8x512xf32, #tpu.memory_space<vmem>>, vector<1x8x512xf32>
    %247 = vector.shape_cast %246 : vector<1x8x512xf32> to vector<8x512xf32>
    %248 = vector.extract_strided_slice %247 {offsets = [0, 0], sizes = [8, 128], strides = [1, 1]} : vector<8x512xf32> to vector<8x128xf32>
    %c0_118 = arith.constant 0 : index
    %c0_119 = arith.constant 0 : index
    %c0_120 = arith.constant 0 : index
    %249 = vector.load %arg5[%c0_118, %c0_119, %c0_120] : memref<4x128x128xf32, #tpu.memory_space<vmem>>, vector<1x128x128xf32>
    %250 = vector.shape_cast %249 : vector<1x128x128xf32> to vector<128x128xf32>
    %cst_121 = arith.constant dense<0.000000e+00> : vector<8x128xf32>
    %251 = tpu.matmul %240, %250, %cst_121 {dimension_numbers = #tpu.dot_dimension_numbers<[1], [0], [0], [1], [0, 0, 1, 1], [], []>} : vector<8x128xf32>, vector<128x128xf32>, vector<8x128xf32> -> vector<8x128xf32>
    %252 = arith.addf %248, %251 : vector<8x128xf32>
    %253 = arith.negf %252 : vector<8x128xf32>
    %254 = math.exp %253 : vector<8x128xf32>
    %cst_122 = arith.constant 1.000000e+00 : f32
    %255 = vector.broadcast %cst_122 : f32 to vector<8x128xf32>
    %256 = arith.addf %255, %254 : vector<8x128xf32>
    %257 = arith.divf %255, %256 : vector<8x128xf32>
    %258 = vector.extract_strided_slice %247 {offsets = [0, 128], sizes = [8, 128], strides = [1, 1]} : vector<8x512xf32> to vector<8x128xf32>
    %c1_123 = arith.constant 1 : index
    %c0_124 = arith.constant 0 : index
    %c0_125 = arith.constant 0 : index
    %259 = vector.load %arg5[%c1_123, %c0_124, %c0_125] : memref<4x128x128xf32, #tpu.memory_space<vmem>>, vector<1x128x128xf32>
    %260 = vector.shape_cast %259 : vector<1x128x128xf32> to vector<128x128xf32>
    %cst_126 = arith.constant dense<0.000000e+00> : vector<8x128xf32>
    %261 = tpu.matmul %240, %260, %cst_126 {dimension_numbers = #tpu.dot_dimension_numbers<[1], [0], [0], [1], [0, 0, 1, 1], [], []>} : vector<8x128xf32>, vector<128x128xf32>, vector<8x128xf32> -> vector<8x128xf32>
    %262 = arith.addf %258, %261 : vector<8x128xf32>
    %263 = arith.negf %262 : vector<8x128xf32>
    %264 = math.exp %263 : vector<8x128xf32>
    %cst_127 = arith.constant 1.000000e+00 : f32
    %265 = vector.broadcast %cst_127 : f32 to vector<8x128xf32>
    %266 = arith.addf %265, %264 : vector<8x128xf32>
    %267 = arith.divf %265, %266 : vector<8x128xf32>
    %268 = vector.extract_strided_slice %247 {offsets = [0, 256], sizes = [8, 128], strides = [1, 1]} : vector<8x512xf32> to vector<8x128xf32>
    %c2_128 = arith.constant 2 : index
    %c0_129 = arith.constant 0 : index
    %c0_130 = arith.constant 0 : index
    %269 = vector.load %arg5[%c2_128, %c0_129, %c0_130] : memref<4x128x128xf32, #tpu.memory_space<vmem>>, vector<1x128x128xf32>
    %270 = vector.shape_cast %269 : vector<1x128x128xf32> to vector<128x128xf32>
    %cst_131 = arith.constant dense<0.000000e+00> : vector<8x128xf32>
    %271 = tpu.matmul %240, %270, %cst_131 {dimension_numbers = #tpu.dot_dimension_numbers<[1], [0], [0], [1], [0, 0, 1, 1], [], []>} : vector<8x128xf32>, vector<128x128xf32>, vector<8x128xf32> -> vector<8x128xf32>
    %272 = arith.addf %268, %271 : vector<8x128xf32>
    %273 = math.tanh %272 : vector<8x128xf32>
    %274 = vector.extract_strided_slice %247 {offsets = [0, 384], sizes = [8, 128], strides = [1, 1]} : vector<8x512xf32> to vector<8x128xf32>
    %c3_132 = arith.constant 3 : index
    %c0_133 = arith.constant 0 : index
    %c0_134 = arith.constant 0 : index
    %275 = vector.load %arg5[%c3_132, %c0_133, %c0_134] : memref<4x128x128xf32, #tpu.memory_space<vmem>>, vector<1x128x128xf32>
    %276 = vector.shape_cast %275 : vector<1x128x128xf32> to vector<128x128xf32>
    %cst_135 = arith.constant dense<0.000000e+00> : vector<8x128xf32>
    %277 = tpu.matmul %240, %276, %cst_135 {dimension_numbers = #tpu.dot_dimension_numbers<[1], [0], [0], [1], [0, 0, 1, 1], [], []>} : vector<8x128xf32>, vector<128x128xf32>, vector<8x128xf32> -> vector<8x128xf32>
    %278 = arith.addf %274, %277 : vector<8x128xf32>
    %279 = arith.negf %278 : vector<8x128xf32>
    %280 = math.exp %279 : vector<8x128xf32>
    %cst_136 = arith.constant 1.000000e+00 : f32
    %281 = vector.broadcast %cst_136 : f32 to vector<8x128xf32>
    %282 = arith.addf %281, %280 : vector<8x128xf32>
    %283 = arith.divf %281, %282 : vector<8x128xf32>
    %284 = arith.mulf %267, %238 : vector<8x128xf32>
    %285 = arith.mulf %257, %273 : vector<8x128xf32>
    %286 = arith.addf %284, %285 : vector<8x128xf32>
    %287 = math.tanh %286 : vector<8x128xf32>
    %288 = arith.mulf %283, %287 : vector<8x128xf32>
    %289 = arith.index_cast %c5_i32 : i32 to index
    %c0_137 = arith.constant 0 : index
    %c0_138 = arith.constant 0 : index
    %290 = vector.load %arg6[%289, %c0_137, %c0_138] : memref<8x8x128xf32, #tpu.memory_space<vmem>>, vector<1x8x128xf32>
    %291 = vector.shape_cast %290 : vector<1x8x128xf32> to vector<8x128xf32>
    %292 = vector.shape_cast %288 : vector<8x128xf32> to vector<1x8x128xf32>
    tpu.vector_store %arg6[%289, %c0_137, %c0_138], %292 {strides = array<i32>} : memref<8x8x128xf32, #tpu.memory_space<vmem>>, vector<1x8x128xf32>,
    %c6_i32 = arith.constant 6 : i32
    %293 = arith.index_cast %c6_i32 : i32 to index
    %c0_139 = arith.constant 0 : index
    %c0_140 = arith.constant 0 : index
    %294 = vector.load %arg2[%293, %c0_139, %c0_140] : memref<8x8x512xf32, #tpu.memory_space<vmem>>, vector<1x8x512xf32>
    %295 = vector.shape_cast %294 : vector<1x8x512xf32> to vector<8x512xf32>
    %296 = vector.extract_strided_slice %295 {offsets = [0, 0], sizes = [8, 128], strides = [1, 1]} : vector<8x512xf32> to vector<8x128xf32>
    %c0_141 = arith.constant 0 : index
    %c0_142 = arith.constant 0 : index
    %c0_143 = arith.constant 0 : index
    %297 = vector.load %arg5[%c0_141, %c0_142, %c0_143] : memref<4x128x128xf32, #tpu.memory_space<vmem>>, vector<1x128x128xf32>
    %298 = vector.shape_cast %297 : vector<1x128x128xf32> to vector<128x128xf32>
    %cst_144 = arith.constant dense<0.000000e+00> : vector<8x128xf32>
    %299 = tpu.matmul %288, %298, %cst_144 {dimension_numbers = #tpu.dot_dimension_numbers<[1], [0], [0], [1], [0, 0, 1, 1], [], []>} : vector<8x128xf32>, vector<128x128xf32>, vector<8x128xf32> -> vector<8x128xf32>
    %300 = arith.addf %296, %299 : vector<8x128xf32>
    %301 = arith.negf %300 : vector<8x128xf32>
    %302 = math.exp %301 : vector<8x128xf32>
    %cst_145 = arith.constant 1.000000e+00 : f32
    %303 = vector.broadcast %cst_145 : f32 to vector<8x128xf32>
    %304 = arith.addf %303, %302 : vector<8x128xf32>
    %305 = arith.divf %303, %304 : vector<8x128xf32>
    %306 = vector.extract_strided_slice %295 {offsets = [0, 128], sizes = [8, 128], strides = [1, 1]} : vector<8x512xf32> to vector<8x128xf32>
    %c1_146 = arith.constant 1 : index
    %c0_147 = arith.constant 0 : index
    %c0_148 = arith.constant 0 : index
    %307 = vector.load %arg5[%c1_146, %c0_147, %c0_148] : memref<4x128x128xf32, #tpu.memory_space<vmem>>, vector<1x128x128xf32>
    %308 = vector.shape_cast %307 : vector<1x128x128xf32> to vector<128x128xf32>
    %cst_149 = arith.constant dense<0.000000e+00> : vector<8x128xf32>
    %309 = tpu.matmul %288, %308, %cst_149 {dimension_numbers = #tpu.dot_dimension_numbers<[1], [0], [0], [1], [0, 0, 1, 1], [], []>} : vector<8x128xf32>, vector<128x128xf32>, vector<8x128xf32> -> vector<8x128xf32>
    %310 = arith.addf %306, %309 : vector<8x128xf32>
    %311 = arith.negf %310 : vector<8x128xf32>
    %312 = math.exp %311 : vector<8x128xf32>
    %cst_150 = arith.constant 1.000000e+00 : f32
    %313 = vector.broadcast %cst_150 : f32 to vector<8x128xf32>
    %314 = arith.addf %313, %312 : vector<8x128xf32>
    %315 = arith.divf %313, %314 : vector<8x128xf32>
    %316 = vector.extract_strided_slice %295 {offsets = [0, 256], sizes = [8, 128], strides = [1, 1]} : vector<8x512xf32> to vector<8x128xf32>
    %c2_151 = arith.constant 2 : index
    %c0_152 = arith.constant 0 : index
    %c0_153 = arith.constant 0 : index
    %317 = vector.load %arg5[%c2_151, %c0_152, %c0_153] : memref<4x128x128xf32, #tpu.memory_space<vmem>>, vector<1x128x128xf32>
    %318 = vector.shape_cast %317 : vector<1x128x128xf32> to vector<128x128xf32>
    %cst_154 = arith.constant dense<0.000000e+00> : vector<8x128xf32>
    %319 = tpu.matmul %288, %318, %cst_154 {dimension_numbers = #tpu.dot_dimension_numbers<[1], [0], [0], [1], [0, 0, 1, 1], [], []>} : vector<8x128xf32>, vector<128x128xf32>, vector<8x128xf32> -> vector<8x128xf32>
    %320 = arith.addf %316, %319 : vector<8x128xf32>
    %321 = math.tanh %320 : vector<8x128xf32>
    %322 = vector.extract_strided_slice %295 {offsets = [0, 384], sizes = [8, 128], strides = [1, 1]} : vector<8x512xf32> to vector<8x128xf32>
    %c3_155 = arith.constant 3 : index
    %c0_156 = arith.constant 0 : index
    %c0_157 = arith.constant 0 : index
    %323 = vector.load %arg5[%c3_155, %c0_156, %c0_157] : memref<4x128x128xf32, #tpu.memory_space<vmem>>, vector<1x128x128xf32>
    %324 = vector.shape_cast %323 : vector<1x128x128xf32> to vector<128x128xf32>
    %cst_158 = arith.constant dense<0.000000e+00> : vector<8x128xf32>
    %325 = tpu.matmul %288, %324, %cst_158 {dimension_numbers = #tpu.dot_dimension_numbers<[1], [0], [0], [1], [0, 0, 1, 1], [], []>} : vector<8x128xf32>, vector<128x128xf32>, vector<8x128xf32> -> vector<8x128xf32>
    %326 = arith.addf %322, %325 : vector<8x128xf32>
    %327 = arith.negf %326 : vector<8x128xf32>
    %328 = math.exp %327 : vector<8x128xf32>
    %cst_159 = arith.constant 1.000000e+00 : f32
    %329 = vector.broadcast %cst_159 : f32 to vector<8x128xf32>
    %330 = arith.addf %329, %328 : vector<8x128xf32>
    %331 = arith.divf %329, %330 : vector<8x128xf32>
    %332 = arith.mulf %315, %286 : vector<8x128xf32>
    %333 = arith.mulf %305, %321 : vector<8x128xf32>
    %334 = arith.addf %332, %333 : vector<8x128xf32>
    %335 = math.tanh %334 : vector<8x128xf32>
    %336 = arith.mulf %331, %335 : vector<8x128xf32>
    %337 = arith.index_cast %c6_i32 : i32 to index
    %c0_160 = arith.constant 0 : index
    %c0_161 = arith.constant 0 : index
    %338 = vector.load %arg6[%337, %c0_160, %c0_161] : memref<8x8x128xf32, #tpu.memory_space<vmem>>, vector<1x8x128xf32>
    %339 = vector.shape_cast %338 : vector<1x8x128xf32> to vector<8x128xf32>
    %340 = vector.shape_cast %336 : vector<8x128xf32> to vector<1x8x128xf32>
    tpu.vector_store %arg6[%337, %c0_160, %c0_161], %340 {strides = array<i32>} : memref<8x8x128xf32, #tpu.memory_space<vmem>>, vector<1x8x128xf32>,
    %c7_i32 = arith.constant 7 : i32
    %341 = arith.index_cast %c7_i32 : i32 to index
    %c0_162 = arith.constant 0 : index
    %c0_163 = arith.constant 0 : index
    %342 = vector.load %arg2[%341, %c0_162, %c0_163] : memref<8x8x512xf32, #tpu.memory_space<vmem>>, vector<1x8x512xf32>
    %343 = vector.shape_cast %342 : vector<1x8x512xf32> to vector<8x512xf32>
    %344 = vector.extract_strided_slice %343 {offsets = [0, 0], sizes = [8, 128], strides = [1, 1]} : vector<8x512xf32> to vector<8x128xf32>
    %c0_164 = arith.constant 0 : index
    %c0_165 = arith.constant 0 : index
    %c0_166 = arith.constant 0 : index
    %345 = vector.load %arg5[%c0_164, %c0_165, %c0_166] : memref<4x128x128xf32, #tpu.memory_space<vmem>>, vector<1x128x128xf32>
    %346 = vector.shape_cast %345 : vector<1x128x128xf32> to vector<128x128xf32>
    %cst_167 = arith.constant dense<0.000000e+00> : vector<8x128xf32>
    %347 = tpu.matmul %336, %346, %cst_167 {dimension_numbers = #tpu.dot_dimension_numbers<[1], [0], [0], [1], [0, 0, 1, 1], [], []>} : vector<8x128xf32>, vector<128x128xf32>, vector<8x128xf32> -> vector<8x128xf32>
    %348 = arith.addf %344, %347 : vector<8x128xf32>
    %349 = arith.negf %348 : vector<8x128xf32>
    %350 = math.exp %349 : vector<8x128xf32>
    %cst_168 = arith.constant 1.000000e+00 : f32
    %351 = vector.broadcast %cst_168 : f32 to vector<8x128xf32>
    %352 = arith.addf %351, %350 : vector<8x128xf32>
    %353 = arith.divf %351, %352 : vector<8x128xf32>
    %354 = vector.extract_strided_slice %343 {offsets = [0, 128], sizes = [8, 128], strides = [1, 1]} : vector<8x512xf32> to vector<8x128xf32>
    %c1_169 = arith.constant 1 : index
    %c0_170 = arith.constant 0 : index
    %c0_171 = arith.constant 0 : index
    %355 = vector.load %arg5[%c1_169, %c0_170, %c0_171] : memref<4x128x128xf32, #tpu.memory_space<vmem>>, vector<1x128x128xf32>
    %356 = vector.shape_cast %355 : vector<1x128x128xf32> to vector<128x128xf32>
    %cst_172 = arith.constant dense<0.000000e+00> : vector<8x128xf32>
    %357 = tpu.matmul %336, %356, %cst_172 {dimension_numbers = #tpu.dot_dimension_numbers<[1], [0], [0], [1], [0, 0, 1, 1], [], []>} : vector<8x128xf32>, vector<128x128xf32>, vector<8x128xf32> -> vector<8x128xf32>
    %358 = arith.addf %354, %357 : vector<8x128xf32>
    %359 = arith.negf %358 : vector<8x128xf32>
    %360 = math.exp %359 : vector<8x128xf32>
    %cst_173 = arith.constant 1.000000e+00 : f32
    %361 = vector.broadcast %cst_173 : f32 to vector<8x128xf32>
    %362 = arith.addf %361, %360 : vector<8x128xf32>
    %363 = arith.divf %361, %362 : vector<8x128xf32>
    %364 = vector.extract_strided_slice %343 {offsets = [0, 256], sizes = [8, 128], strides = [1, 1]} : vector<8x512xf32> to vector<8x128xf32>
    %c2_174 = arith.constant 2 : index
    %c0_175 = arith.constant 0 : index
    %c0_176 = arith.constant 0 : index
    %365 = vector.load %arg5[%c2_174, %c0_175, %c0_176] : memref<4x128x128xf32, #tpu.memory_space<vmem>>, vector<1x128x128xf32>
    %366 = vector.shape_cast %365 : vector<1x128x128xf32> to vector<128x128xf32>
    %cst_177 = arith.constant dense<0.000000e+00> : vector<8x128xf32>
    %367 = tpu.matmul %336, %366, %cst_177 {dimension_numbers = #tpu.dot_dimension_numbers<[1], [0], [0], [1], [0, 0, 1, 1], [], []>} : vector<8x128xf32>, vector<128x128xf32>, vector<8x128xf32> -> vector<8x128xf32>
    %368 = arith.addf %364, %367 : vector<8x128xf32>
    %369 = math.tanh %368 : vector<8x128xf32>
    %370 = vector.extract_strided_slice %343 {offsets = [0, 384], sizes = [8, 128], strides = [1, 1]} : vector<8x512xf32> to vector<8x128xf32>
    %c3_178 = arith.constant 3 : index
    %c0_179 = arith.constant 0 : index
    %c0_180 = arith.constant 0 : index
    %371 = vector.load %arg5[%c3_178, %c0_179, %c0_180] : memref<4x128x128xf32, #tpu.memory_space<vmem>>, vector<1x128x128xf32>
    %372 = vector.shape_cast %371 : vector<1x128x128xf32> to vector<128x128xf32>
    %cst_181 = arith.constant dense<0.000000e+00> : vector<8x128xf32>
    %373 = tpu.matmul %336, %372, %cst_181 {dimension_numbers = #tpu.dot_dimension_numbers<[1], [0], [0], [1], [0, 0, 1, 1], [], []>} : vector<8x128xf32>, vector<128x128xf32>, vector<8x128xf32> -> vector<8x128xf32>
    %374 = arith.addf %370, %373 : vector<8x128xf32>
    %375 = arith.negf %374 : vector<8x128xf32>
    %376 = math.exp %375 : vector<8x128xf32>
    %cst_182 = arith.constant 1.000000e+00 : f32
    %377 = vector.broadcast %cst_182 : f32 to vector<8x128xf32>
    %378 = arith.addf %377, %376 : vector<8x128xf32>
    %379 = arith.divf %377, %378 : vector<8x128xf32>
    %380 = arith.mulf %363, %334 : vector<8x128xf32>
    %381 = arith.mulf %353, %369 : vector<8x128xf32>
    %382 = arith.addf %380, %381 : vector<8x128xf32>
    %383 = math.tanh %382 : vector<8x128xf32>
    %384 = arith.mulf %379, %383 : vector<8x128xf32>
    %385 = arith.index_cast %c7_i32 : i32 to index
    %c0_183 = arith.constant 0 : index
    %c0_184 = arith.constant 0 : index
    %386 = vector.load %arg6[%385, %c0_183, %c0_184] : memref<8x8x128xf32, #tpu.memory_space<vmem>>, vector<1x8x128xf32>
    %387 = vector.shape_cast %386 : vector<1x8x128xf32> to vector<8x128xf32>
    %388 = vector.shape_cast %384 : vector<8x128xf32> to vector<1x8x128xf32>
    tpu.vector_store %arg6[%385, %c0_183, %c0_184], %388 {strides = array<i32>} : memref<8x8x128xf32, #tpu.memory_space<vmem>>, vector<1x8x128xf32>,
    %c8_i32 = arith.constant 8 : i32
    %c0_185 = arith.constant 0 : index
    %c0_186 = arith.constant 0 : index
    %389 = vector.load %arg8[%c0_185, %c0_186] : memref<8x128xf32, #tpu.memory_space<vmem>>, vector<8x128xf32>
    tpu.vector_store %arg8[%c0_185, %c0_186], %384 {strides = array<i32>} : memref<8x128xf32, #tpu.memory_space<vmem>>, vector<8x128xf32>,
    %c0_187 = arith.constant 0 : index
    %c0_188 = arith.constant 0 : index
    %390 = vector.load %arg9[%c0_187, %c0_188] : memref<8x128xf32, #tpu.memory_space<vmem>>, vector<8x128xf32>
    tpu.vector_store %arg9[%c0_187, %c0_188], %382 {strides = array<i32>} : memref<8x128xf32, #tpu.memory_space<vmem>>, vector<8x128xf32>,
    %c0_i32_189 = arith.constant 0 : i32
    %391 = arith.cmpi eq, %arg1, %c0_i32_189 : i32
    %392 = arith.extui %391 : i1 to i32
    %c0_i32_190 = arith.constant 0 : i32
    %393 = arith.cmpi ne, %392, %c0_i32_190 : i32
    scf.if %393 {
      %c0_191 = arith.constant 0 : index
      %c0_192 = arith.constant 0 : index
      %394 = vector.load %arg7[%c0_191, %c0_192] : memref<8x128xf32, #tpu.memory_space<vmem>>, vector<8x128xf32>
      tpu.vector_store %arg7[%c0_191, %c0_192], %382 {strides = array<i32>} : memref<8x128xf32, #tpu.memory_space<vmem>>, vector<8x128xf32>,
    } else {
    }
    return
  }
  func.func @transform_0(%arg0: i32, %arg1: i32) -> (i32, i32, i32) {
    %c0_i32 = arith.constant 0 : i32
    %c0_i32_0 = arith.constant 0 : i32
    return %arg1, %arg0, %c0_i32 : i32, i32, i32
  }
  func.func @transform_1(%arg0: i32, %arg1: i32) -> (i32, i32) {
    %c0_i32 = arith.constant 0 : i32
    %c0_i32_0 = arith.constant 0 : i32
    return %arg0, %c0_i32 : i32, i32
  }
  func.func @transform_2(%arg0: i32, %arg1: i32) -> (i32, i32) {
    %c0_i32 = arith.constant 0 : i32
    %c0_i32_0 = arith.constant 0 : i32
    return %arg0, %c0_i32 : i32, i32
  }
  func.func @transform_3(%arg0: i32, %arg1: i32) -> (i32, i32, i32) {
    %c0_i32 = arith.constant 0 : i32
    %c0_i32_0 = arith.constant 0 : i32
    %c0_i32_1 = arith.constant 0 : i32
    %c0_i32_2 = arith.constant 0 : i32
    return %c0_i32, %c0_i32_0, %c0_i32_1 : i32, i32, i32
  }
  func.func @transform_4(%arg0: i32, %arg1: i32) -> (i32, i32, i32) {
    %c0_i32 = arith.constant 0 : i32
    %c0_i32_0 = arith.constant 0 : i32
    return %arg1, %arg0, %c0_i32 : i32, i32, i32
  }
  func.func @transform_5(%arg0: i32, %arg1: i32) -> (i32, i32) {
    %c0_i32 = arith.constant 0 : i32
    %c0_i32_0 = arith.constant 0 : i32
    return %arg0, %c0_i32 : i32, i32
  }
}

module attributes {stable_mosaic.version = 11 : i64} {
  func.func @kernel(%arg0: i32, %arg1: i32, %arg2: memref<8x8x512xf32, #tpu.memory_space<vmem>>, %arg3: memref<8x128xf32, #tpu.memory_space<vmem>>, %arg4: memref<8x128xf32, #tpu.memory_space<vmem>>, %arg5: memref<4x128x128xf32, #tpu.memory_space<vmem>>, %arg6: memref<8x8x128xf32, #tpu.memory_space<vmem>>, %arg7: memref<8x128xf32, #tpu.memory_space<vmem>>, %arg8: memref<8x128xf32, #tpu.memory_space<vmem>>, %arg9: memref<8x128xf32, #tpu.memory_space<vmem>>) attributes {dimension_semantics = [#tpu.dimension_semantics<parallel>, #tpu.dimension_semantics<arbitrary>], iteration_bounds = array<i64: 1, 1>, scalar_prefetch = 0 : i64, scratch_operands = 2 : i64, tpu.core_type = #tpu.core_type<tc>, window_params = [{transform_indices = @transform_0, window_bounds = array<i64: 8, 8, 512>}, {transform_indices = @transform_1, window_bounds = array<i64: 8, 128>}, {transform_indices = @transform_2, window_bounds = array<i64: 8, 128>}, {pipeline_mode = #tpu.pipeline_mode<synchronous>, transform_indices = @transform_3, window_bounds = array<i64: 4, 128, 128>}, {transform_indices = @transform_4, window_bounds = array<i64: 8, 8, 128>}, {transform_indices = @transform_5, window_bounds = array<i64: 8, 128>}]} {
    %c0_i32 = arith.constant 0 : i32
    %0 = arith.cmpi eq, %arg1, %c0_i32 : i32
    %1 = arith.extui %0 : i1 to i32
    %c0_i32_0 = arith.constant 0 : i32
    %2 = arith.cmpi ne, %1, %c0_i32_0 : i32
    scf.if %2 {
      %c0_191 = arith.constant 0 : index
      %c0_192 = arith.constant 0 : index
      %394 = vector.load %arg3[%c0_191, %c0_192] : memref<8x128xf32, #tpu.memory_space<vmem>>, vector<8x128xf32>
      %c0_193 = arith.constant 0 : index
      %c0_194 = arith.constant 0 : index
      %395 = vector.load %arg8[%c0_193, %c0_194] : memref<8x128xf32, #tpu.memory_space<vmem>>, vector<8x128xf32>
      tpu.vector_store %arg8[%c0_193, %c0_194], %394 {strides = array<i32>} : memref<8x128xf32, #tpu.memory_space<vmem>>, vector<8x128xf32>,
      %c0_195 = arith.constant 0 : index
      %c0_196 = arith.constant 0 : index
      %396 = vector.load %arg4[%c0_195, %c0_196] : memref<8x128xf32, #tpu.memory_space<vmem>>, vector<8x128xf32>
      %c0_197 = arith.constant 0 : index
      %c0_198 = arith.constant 0 : index
      %397 = vector.load %arg9[%c0_197, %c0_198] : memref<8x128xf32, #tpu.memory_space<vmem>>, vector<8x128xf32>
      tpu.vector_store %arg9[%c0_197, %c0_198], %396 {strides = array<i32>} : memref<8x128xf32, #tpu.memory_space<vmem>>, vector<8x128xf32>,
    } else {
    }
    %c0 = arith.constant 0 : index
    %c0_1 = arith.constant 0 : index
    %3 = vector.load %arg8[%c0, %c0_1] : memref<8x128xf32, #tpu.memory_space<vmem>>, vector<8x128xf32>
    %c0_2 = arith.constant 0 : index
    %c0_3 = arith.constant 0 : index
    %4 = vector.load %arg9[%c0_2, %c0_3] : memref<8x128xf32, #tpu.memory_space<vmem>>, vector<8x128xf32>
    %c0_i32_4 = arith.constant 0 : i32
    %5 = arith.index_cast %c0_i32_4 : i32 to index
    %c0_5 = arith.constant 0 : index
    %c0_6 = arith.constant 0 : index
    %6 = vector.load %arg2[%5, %c0_5, %c0_6] : memref<8x8x512xf32, #tpu.memory_space<vmem>>, vector<1x8x512xf32>
    %7 = vector.shape_cast %6 : vector<1x8x512xf32> to vector<8x512xf32>
    %8 = vector.extract_strided_slice %7 {offsets = [0, 0], sizes = [8, 128], strides = [1, 1]} : vector<8x512xf32> to vector<8x128xf32>
    %c0_7 = arith.constant 0 : index
    %c0_8 = arith.constant 0 : index
    %c0_9 = arith.constant 0 : index
    %9 = vector.load %arg5[%c0_7, %c0_8, %c0_9] : memref<4x128x128xf32, #tpu.memory_space<vmem>>, vector<1x128x128xf32>
    %10 = vector.shape_cast %9 : vector<1x128x128xf32> to vector<128x128xf32>
    %cst = arith.constant dense<0.000000e+00> : vector<8x128xf32>
    %11 = tpu.matmul %3, %10, %cst {dimension_numbers = #tpu.dot_dimension_numbers<[1], [0], [0], [1], [0, 0, 1, 1], [], []>} : vector<8x128xf32>, vector<128x128xf32>, vector<8x128xf32> -> vector<8x128xf32>
    %12 = arith.addf %8, %11 : vector<8x128xf32>
    %13 = arith.negf %12 : vector<8x128xf32>
    %14 = math.exp %13 : vector<8x128xf32>
    %cst_10 = arith.constant 1.000000e+00 : f32
    %15 = vector.broadcast %cst_10 : f32 to vector<8x128xf32>
    %16 = arith.addf %15, %14 : vector<8x128xf32>
    %17 = arith.divf %15, %16 : vector<8x128xf32>
    %18 = vector.extract_strided_slice %7 {offsets = [0, 128], sizes = [8, 128], strides = [1, 1]} : vector<8x512xf32> to vector<8x128xf32>
    %c1 = arith.constant 1 : index
    %c0_11 = arith.constant 0 : index
    %c0_12 = arith.constant 0 : index
    %19 = vector.load %arg5[%c1, %c0_11, %c0_12] : memref<4x128x128xf32, #tpu.memory_space<vmem>>, vector<1x128x128xf32>
    %20 = vector.shape_cast %19 : vector<1x128x128xf32> to vector<128x128xf32>
    %cst_13 = arith.constant dense<0.000000e+00> : vector<8x128xf32>
    %21 = tpu.matmul %3, %20, %cst_13 {dimension_numbers = #tpu.dot_dimension_numbers<[1], [0], [0], [1], [0, 0, 1, 1], [], []>} : vector<8x128xf32>, vector<128x128xf32>, vector<8x128xf32> -> vector<8x128xf32>
    %22 = arith.addf %18, %21 : vector<8x128xf32>
    %23 = arith.negf %22 : vector<8x128xf32>
    %24 = math.exp %23 : vector<8x128xf32>
    %cst_14 = arith.constant 1.000000e+00 : f32
    %25 = vector.broadcast %cst_14 : f32 to vector<8x128xf32>
    %26 = arith.addf %25, %24 : vector<8x128xf32>
    %27 = arith.divf %25, %26 : vector<8x128xf32>
    %28 = vector.extract_strided_slice %7 {offsets = [0, 256], sizes = [8, 128], strides = [1, 1]} : vector<8x512xf32> to vector<8x128xf32>
    %c2 = arith.constant 2 : index
    %c0_15 = arith.constant 0 : index
    %c0_16 = arith.constant 0 : index
    %29 = vector.load %arg5[%c2, %c0_15, %c0_16] : memref<4x128x128xf32, #tpu.memory_space<vmem>>, vector<1x128x128xf32>
    %30 = vector.shape_cast %29 : vector<1x128x128xf32> to vector<128x128xf32>
    %cst_17 = arith.constant dense<0.000000e+00> : vector<8x128xf32>
    %31 = tpu.matmul %3, %30, %cst_17 {dimension_numbers = #tpu.dot_dimension_numbers<[1], [0], [0], [1], [0, 0, 1, 1], [], []>} : vector<8x128xf32>, vector<128x128xf32>, vector<8x128xf32> -> vector<8x128xf32>
    %32 = arith.addf %28, %31 : vector<8x128xf32>
    %33 = math.tanh %32 : vector<8x128xf32>
    %34 = vector.extract_strided_slice %7 {offsets = [0, 384], sizes = [8, 128], strides = [1, 1]} : vector<8x512xf32> to vector<8x128xf32>
    %c3 = arith.constant 3 : index
    %c0_18 = arith.constant 0 : index
    %c0_19 = arith.constant 0 : index
    %35 = vector.load %arg5[%c3, %c0_18, %c0_19] : memref<4x128x128xf32, #tpu.memory_space<vmem>>, vector<1x128x128xf32>
    %36 = vector.shape_cast %35 : vector<1x128x128xf32> to vector<128x128xf32>
    %cst_20 = arith.constant dense<0.000000e+00> : vector<8x128xf32>
    %37 = tpu.matmul %3, %36, %cst_20 {dimension_numbers = #tpu.dot_dimension_numbers<[1], [0], [0], [1], [0, 0, 1, 1], [], []>} : vector<8x128xf32>, vector<128x128xf32>, vector<8x128xf32> -> vector<8x128xf32>
    %38 = arith.addf %34, %37 : vector<8x128xf32>
    %39 = arith.negf %38 : vector<8x128xf32>
    %40 = math.exp %39 : vector<8x128xf32>
    %cst_21 = arith.constant 1.000000e+00 : f32
    %41 = vector.broadcast %cst_21 : f32 to vector<8x128xf32>
    %42 = arith.addf %41, %40 : vector<8x128xf32>
    %43 = arith.divf %41, %42 : vector<8x128xf32>
    %44 = arith.mulf %27, %4 : vector<8x128xf32>
    %45 = arith.mulf %17, %33 : vector<8x128xf32>
    %46 = arith.addf %44, %45 : vector<8x128xf32>
    %47 = math.tanh %46 : vector<8x128xf32>
    %48 = arith.mulf %43, %47 : vector<8x128xf32>
    %49 = arith.index_cast %c0_i32_4 : i32 to index
    %c0_22 = arith.constant 0 : index
    %c0_23 = arith.constant 0 : index
    %50 = vector.load %arg6[%49, %c0_22, %c0_23] : memref<8x8x128xf32, #tpu.memory_space<vmem>>, vector<1x8x128xf32>
    %51 = vector.shape_cast %50 : vector<1x8x128xf32> to vector<8x128xf32>
    %52 = vector.shape_cast %48 : vector<8x128xf32> to vector<1x8x128xf32>
    tpu.vector_store %arg6[%49, %c0_22, %c0_23], %52 {strides = array<i32>} : memref<8x8x128xf32, #tpu.memory_space<vmem>>, vector<1x8x128xf32>,
    %c1_i32 = arith.constant 1 : i32
    %53 = arith.index_cast %c1_i32 : i32 to index
    %c0_24 = arith.constant 0 : index
    %c0_25 = arith.constant 0 : index
    %54 = vector.load %arg2[%53, %c0_24, %c0_25] : memref<8x8x512xf32, #tpu.memory_space<vmem>>, vector<1x8x512xf32>
    %55 = vector.shape_cast %54 : vector<1x8x512xf32> to vector<8x512xf32>
    %56 = vector.extract_strided_slice %55 {offsets = [0, 0], sizes = [8, 128], strides = [1, 1]} : vector<8x512xf32> to vector<8x128xf32>
    %c0_26 = arith.constant 0 : index
    %c0_27 = arith.constant 0 : index
    %c0_28 = arith.constant 0 : index
    %57 = vector.load %arg5[%c0_26, %c0_27, %c0_28] : memref<4x128x128xf32, #tpu.memory_space<vmem>>, vector<1x128x128xf32>
    %58 = vector.shape_cast %57 : vector<1x128x128xf32> to vector<128x128xf32>
    %cst_29 = arith.constant dense<0.000000e+00> : vector<8x128xf32>
    %59 = tpu.matmul %48, %58, %cst_29 {dimension_numbers = #tpu.dot_dimension_numbers<[1], [0], [0], [1], [0, 0, 1, 1], [], []>} : vector<8x128xf32>, vector<128x128xf32>, vector<8x128xf32> -> vector<8x128xf32>
    %60 = arith.addf %56, %59 : vector<8x128xf32>
    %61 = arith.negf %60 : vector<8x128xf32>
    %62 = math.exp %61 : vector<8x128xf32>
    %cst_30 = arith.constant 1.000000e+00 : f32
    %63 = vector.broadcast %cst_30 : f32 to vector<8x128xf32>
    %64 = arith.addf %63, %62 : vector<8x128xf32>
    %65 = arith.divf %63, %64 : vector<8x128xf32>
    %66 = vector.extract_strided_slice %55 {offsets = [0, 128], sizes = [8, 128], strides = [1, 1]} : vector<8x512xf32> to vector<8x128xf32>
    %c1_31 = arith.constant 1 : index
    %c0_32 = arith.constant 0 : index
    %c0_33 = arith.constant 0 : index
    %67 = vector.load %arg5[%c1_31, %c0_32, %c0_33] : memref<4x128x128xf32, #tpu.memory_space<vmem>>, vector<1x128x128xf32>
    %68 = vector.shape_cast %67 : vector<1x128x128xf32> to vector<128x128xf32>
    %cst_34 = arith.constant dense<0.000000e+00> : vector<8x128xf32>
    %69 = tpu.matmul %48, %68, %cst_34 {dimension_numbers = #tpu.dot_dimension_numbers<[1], [0], [0], [1], [0, 0, 1, 1], [], []>} : vector<8x128xf32>, vector<128x128xf32>, vector<8x128xf32> -> vector<8x128xf32>
    %70 = arith.addf %66, %69 : vector<8x128xf32>
    %71 = arith.negf %70 : vector<8x128xf32>
    %72 = math.exp %71 : vector<8x128xf32>
    %cst_35 = arith.constant 1.000000e+00 : f32
    %73 = vector.broadcast %cst_35 : f32 to vector<8x128xf32>
    %74 = arith.addf %73, %72 : vector<8x128xf32>
    %75 = arith.divf %73, %74 : vector<8x128xf32>
    %76 = vector.extract_strided_slice %55 {offsets = [0, 256], sizes = [8, 128], strides = [1, 1]} : vector<8x512xf32> to vector<8x128xf32>
    %c2_36 = arith.constant 2 : index
    %c0_37 = arith.constant 0 : index
    %c0_38 = arith.constant 0 : index
    %77 = vector.load %arg5[%c2_36, %c0_37, %c0_38] : memref<4x128x128xf32, #tpu.memory_space<vmem>>, vector<1x128x128xf32>
    %78 = vector.shape_cast %77 : vector<1x128x128xf32> to vector<128x128xf32>
    %cst_39 = arith.constant dense<0.000000e+00> : vector<8x128xf32>
    %79 = tpu.matmul %48, %78, %cst_39 {dimension_numbers = #tpu.dot_dimension_numbers<[1], [0], [0], [1], [0, 0, 1, 1], [], []>} : vector<8x128xf32>, vector<128x128xf32>, vector<8x128xf32> -> vector<8x128xf32>
    %80 = arith.addf %76, %79 : vector<8x128xf32>
    %81 = math.tanh %80 : vector<8x128xf32>
    %82 = vector.extract_strided_slice %55 {offsets = [0, 384], sizes = [8, 128], strides = [1, 1]} : vector<8x512xf32> to vector<8x128xf32>
    %c3_40 = arith.constant 3 : index
    %c0_41 = arith.constant 0 : index
    %c0_42 = arith.constant 0 : index
    %83 = vector.load %arg5[%c3_40, %c0_41, %c0_42] : memref<4x128x128xf32, #tpu.memory_space<vmem>>, vector<1x128x128xf32>
    %84 = vector.shape_cast %83 : vector<1x128x128xf32> to vector<128x128xf32>
    %cst_43 = arith.constant dense<0.000000e+00> : vector<8x128xf32>
    %85 = tpu.matmul %48, %84, %cst_43 {dimension_numbers = #tpu.dot_dimension_numbers<[1], [0], [0], [1], [0, 0, 1, 1], [], []>} : vector<8x128xf32>, vector<128x128xf32>, vector<8x128xf32> -> vector<8x128xf32>
    %86 = arith.addf %82, %85 : vector<8x128xf32>
    %87 = arith.negf %86 : vector<8x128xf32>
    %88 = math.exp %87 : vector<8x128xf32>
    %cst_44 = arith.constant 1.000000e+00 : f32
    %89 = vector.broadcast %cst_44 : f32 to vector<8x128xf32>
    %90 = arith.addf %89, %88 : vector<8x128xf32>
    %91 = arith.divf %89, %90 : vector<8x128xf32>
    %92 = arith.mulf %75, %46 : vector<8x128xf32>
    %93 = arith.mulf %65, %81 : vector<8x128xf32>
    %94 = arith.addf %92, %93 : vector<8x128xf32>
    %95 = math.tanh %94 : vector<8x128xf32>
    %96 = arith.mulf %91, %95 : vector<8x128xf32>
    %97 = arith.index_cast %c1_i32 : i32 to index
    %c0_45 = arith.constant 0 : index
    %c0_46 = arith.constant 0 : index
    %98 = vector.load %arg6[%97, %c0_45, %c0_46] : memref<8x8x128xf32, #tpu.memory_space<vmem>>, vector<1x8x128xf32>
    %99 = vector.shape_cast %98 : vector<1x8x128xf32> to vector<8x128xf32>
    %100 = vector.shape_cast %96 : vector<8x128xf32> to vector<1x8x128xf32>
    tpu.vector_store %arg6[%97, %c0_45, %c0_46], %100 {strides = array<i32>} : memref<8x8x128xf32, #tpu.memory_space<vmem>>, vector<1x8x128xf32>,
    %c2_i32 = arith.constant 2 : i32
    %101 = arith.index_cast %c2_i32 : i32 to index
    %c0_47 = arith.constant 0 : index
    %c0_48 = arith.constant 0 : index
    %102 = vector.load %arg2[%101, %c0_47, %c0_48] : memref<8x8x512xf32, #tpu.memory_space<vmem>>, vector<1x8x512xf32>
    %103 = vector.shape_cast %102 : vector<1x8x512xf32> to vector<8x512xf32>
    %104 = vector.extract_strided_slice %103 {offsets = [0, 0], sizes = [8, 128], strides = [1, 1]} : vector<8x512xf32> to vector<8x128xf32>
    %c0_49 = arith.constant 0 : index
    %c0_50 = arith.constant 0 : index
    %c0_51 = arith.constant 0 : index
    %105 = vector.load %arg5[%c0_49, %c0_50, %c0_51] : memref<4x128x128xf32, #tpu.memory_space<vmem>>, vector<1x128x128xf32>
    %106 = vector.shape_cast %105 : vector<1x128x128xf32> to vector<128x128xf32>
    %cst_52 = arith.constant dense<0.000000e+00> : vector<8x128xf32>
    %107 = tpu.matmul %96, %106, %cst_52 {dimension_numbers = #tpu.dot_dimension_numbers<[1], [0], [0], [1], [0, 0, 1, 1], [], []>} : vector<8x128xf32>, vector<128x128xf32>, vector<8x128xf32> -> vector<8x128xf32>
    %108 = arith.addf %104, %107 : vector<8x128xf32>
    %109 = arith.negf %108 : vector<8x128xf32>
    %110 = math.exp %109 : vector<8x128xf32>
    %cst_53 = arith.constant 1.000000e+00 : f32
    %111 = vector.broadcast %cst_53 : f32 to vector<8x128xf32>
    %112 = arith.addf %111, %110 : vector<8x128xf32>
    %113 = arith.divf %111, %112 : vector<8x128xf32>
    %114 = vector.extract_strided_slice %103 {offsets = [0, 128], sizes = [8, 128], strides = [1, 1]} : vector<8x512xf32> to vector<8x128xf32>
    %c1_54 = arith.constant 1 : index
    %c0_55 = arith.constant 0 : index
    %c0_56 = arith.constant 0 : index
    %115 = vector.load %arg5[%c1_54, %c0_55, %c0_56] : memref<4x128x128xf32, #tpu.memory_space<vmem>>, vector<1x128x128xf32>
    %116 = vector.shape_cast %115 : vector<1x128x128xf32> to vector<128x128xf32>
    %cst_57 = arith.constant dense<0.000000e+00> : vector<8x128xf32>
    %117 = tpu.matmul %96, %116, %cst_57 {dimension_numbers = #tpu.dot_dimension_numbers<[1], [0], [0], [1], [0, 0, 1, 1], [], []>} : vector<8x128xf32>, vector<128x128xf32>, vector<8x128xf32> -> vector<8x128xf32>
    %118 = arith.addf %114, %117 : vector<8x128xf32>
    %119 = arith.negf %118 : vector<8x128xf32>
    %120 = math.exp %119 : vector<8x128xf32>
    %cst_58 = arith.constant 1.000000e+00 : f32
    %121 = vector.broadcast %cst_58 : f32 to vector<8x128xf32>
    %122 = arith.addf %121, %120 : vector<8x128xf32>
    %123 = arith.divf %121, %122 : vector<8x128xf32>
    %124 = vector.extract_strided_slice %103 {offsets = [0, 256], sizes = [8, 128], strides = [1, 1]} : vector<8x512xf32> to vector<8x128xf32>
    %c2_59 = arith.constant 2 : index
    %c0_60 = arith.constant 0 : index
    %c0_61 = arith.constant 0 : index
    %125 = vector.load %arg5[%c2_59, %c0_60, %c0_61] : memref<4x128x128xf32, #tpu.memory_space<vmem>>, vector<1x128x128xf32>
    %126 = vector.shape_cast %125 : vector<1x128x128xf32> to vector<128x128xf32>
    %cst_62 = arith.constant dense<0.000000e+00> : vector<8x128xf32>
    %127 = tpu.matmul %96, %126, %cst_62 {dimension_numbers = #tpu.dot_dimension_numbers<[1], [0], [0], [1], [0, 0, 1, 1], [], []>} : vector<8x128xf32>, vector<128x128xf32>, vector<8x128xf32> -> vector<8x128xf32>
    %128 = arith.addf %124, %127 : vector<8x128xf32>
    %129 = math.tanh %128 : vector<8x128xf32>
    %130 = vector.extract_strided_slice %103 {offsets = [0, 384], sizes = [8, 128], strides = [1, 1]} : vector<8x512xf32> to vector<8x128xf32>
    %c3_63 = arith.constant 3 : index
    %c0_64 = arith.constant 0 : index
    %c0_65 = arith.constant 0 : index
    %131 = vector.load %arg5[%c3_63, %c0_64, %c0_65] : memref<4x128x128xf32, #tpu.memory_space<vmem>>, vector<1x128x128xf32>
    %132 = vector.shape_cast %131 : vector<1x128x128xf32> to vector<128x128xf32>
    %cst_66 = arith.constant dense<0.000000e+00> : vector<8x128xf32>
    %133 = tpu.matmul %96, %132, %cst_66 {dimension_numbers = #tpu.dot_dimension_numbers<[1], [0], [0], [1], [0, 0, 1, 1], [], []>} : vector<8x128xf32>, vector<128x128xf32>, vector<8x128xf32> -> vector<8x128xf32>
    %134 = arith.addf %130, %133 : vector<8x128xf32>
    %135 = arith.negf %134 : vector<8x128xf32>
    %136 = math.exp %135 : vector<8x128xf32>
    %cst_67 = arith.constant 1.000000e+00 : f32
    %137 = vector.broadcast %cst_67 : f32 to vector<8x128xf32>
    %138 = arith.addf %137, %136 : vector<8x128xf32>
    %139 = arith.divf %137, %138 : vector<8x128xf32>
    %140 = arith.mulf %123, %94 : vector<8x128xf32>
    %141 = arith.mulf %113, %129 : vector<8x128xf32>
    %142 = arith.addf %140, %141 : vector<8x128xf32>
    %143 = math.tanh %142 : vector<8x128xf32>
    %144 = arith.mulf %139, %143 : vector<8x128xf32>
    %145 = arith.index_cast %c2_i32 : i32 to index
    %c0_68 = arith.constant 0 : index
    %c0_69 = arith.constant 0 : index
    %146 = vector.load %arg6[%145, %c0_68, %c0_69] : memref<8x8x128xf32, #tpu.memory_space<vmem>>, vector<1x8x128xf32>
    %147 = vector.shape_cast %146 : vector<1x8x128xf32> to vector<8x128xf32>
    %148 = vector.shape_cast %144 : vector<8x128xf32> to vector<1x8x128xf32>
    tpu.vector_store %arg6[%145, %c0_68, %c0_69], %148 {strides = array<i32>} : memref<8x8x128xf32, #tpu.memory_space<vmem>>, vector<1x8x128xf32>,
    %c3_i32 = arith.constant 3 : i32
    %149 = arith.index_cast %c3_i32 : i32 to index
    %c0_70 = arith.constant 0 : index
    %c0_71 = arith.constant 0 : index
    %150 = vector.load %arg2[%149, %c0_70, %c0_71] : memref<8x8x512xf32, #tpu.memory_space<vmem>>, vector<1x8x512xf32>
    %151 = vector.shape_cast %150 : vector<1x8x512xf32> to vector<8x512xf32>
    %152 = vector.extract_strided_slice %151 {offsets = [0, 0], sizes = [8, 128], strides = [1, 1]} : vector<8x512xf32> to vector<8x128xf32>
    %c0_72 = arith.constant 0 : index
    %c0_73 = arith.constant 0 : index
    %c0_74 = arith.constant 0 : index
    %153 = vector.load %arg5[%c0_72, %c0_73, %c0_74] : memref<4x128x128xf32, #tpu.memory_space<vmem>>, vector<1x128x128xf32>
    %154 = vector.shape_cast %153 : vector<1x128x128xf32> to vector<128x128xf32>
    %cst_75 = arith.constant dense<0.000000e+00> : vector<8x128xf32>
    %155 = tpu.matmul %144, %154, %cst_75 {dimension_numbers = #tpu.dot_dimension_numbers<[1], [0], [0], [1], [0, 0, 1, 1], [], []>} : vector<8x128xf32>, vector<128x128xf32>, vector<8x128xf32> -> vector<8x128xf32>
    %156 = arith.addf %152, %155 : vector<8x128xf32>
    %157 = arith.negf %156 : vector<8x128xf32>
    %158 = math.exp %157 : vector<8x128xf32>
    %cst_76 = arith.constant 1.000000e+00 : f32
    %159 = vector.broadcast %cst_76 : f32 to vector<8x128xf32>
    %160 = arith.addf %159, %158 : vector<8x128xf32>
    %161 = arith.divf %159, %160 : vector<8x128xf32>
    %162 = vector.extract_strided_slice %151 {offsets = [0, 128], sizes = [8, 128], strides = [1, 1]} : vector<8x512xf32> to vector<8x128xf32>
    %c1_77 = arith.constant 1 : index
    %c0_78 = arith.constant 0 : index
    %c0_79 = arith.constant 0 : index
    %163 = vector.load %arg5[%c1_77, %c0_78, %c0_79] : memref<4x128x128xf32, #tpu.memory_space<vmem>>, vector<1x128x128xf32>
    %164 = vector.shape_cast %163 : vector<1x128x128xf32> to vector<128x128xf32>
    %cst_80 = arith.constant dense<0.000000e+00> : vector<8x128xf32>
    %165 = tpu.matmul %144, %164, %cst_80 {dimension_numbers = #tpu.dot_dimension_numbers<[1], [0], [0], [1], [0, 0, 1, 1], [], []>} : vector<8x128xf32>, vector<128x128xf32>, vector<8x128xf32> -> vector<8x128xf32>
    %166 = arith.addf %162, %165 : vector<8x128xf32>
    %167 = arith.negf %166 : vector<8x128xf32>
    %168 = math.exp %167 : vector<8x128xf32>
    %cst_81 = arith.constant 1.000000e+00 : f32
    %169 = vector.broadcast %cst_81 : f32 to vector<8x128xf32>
    %170 = arith.addf %169, %168 : vector<8x128xf32>
    %171 = arith.divf %169, %170 : vector<8x128xf32>
    %172 = vector.extract_strided_slice %151 {offsets = [0, 256], sizes = [8, 128], strides = [1, 1]} : vector<8x512xf32> to vector<8x128xf32>
    %c2_82 = arith.constant 2 : index
    %c0_83 = arith.constant 0 : index
    %c0_84 = arith.constant 0 : index
    %173 = vector.load %arg5[%c2_82, %c0_83, %c0_84] : memref<4x128x128xf32, #tpu.memory_space<vmem>>, vector<1x128x128xf32>
    %174 = vector.shape_cast %173 : vector<1x128x128xf32> to vector<128x128xf32>
    %cst_85 = arith.constant dense<0.000000e+00> : vector<8x128xf32>
    %175 = tpu.matmul %144, %174, %cst_85 {dimension_numbers = #tpu.dot_dimension_numbers<[1], [0], [0], [1], [0, 0, 1, 1], [], []>} : vector<8x128xf32>, vector<128x128xf32>, vector<8x128xf32> -> vector<8x128xf32>
    %176 = arith.addf %172, %175 : vector<8x128xf32>
    %177 = math.tanh %176 : vector<8x128xf32>
    %178 = vector.extract_strided_slice %151 {offsets = [0, 384], sizes = [8, 128], strides = [1, 1]} : vector<8x512xf32> to vector<8x128xf32>
    %c3_86 = arith.constant 3 : index
    %c0_87 = arith.constant 0 : index
    %c0_88 = arith.constant 0 : index
    %179 = vector.load %arg5[%c3_86, %c0_87, %c0_88] : memref<4x128x128xf32, #tpu.memory_space<vmem>>, vector<1x128x128xf32>
    %180 = vector.shape_cast %179 : vector<1x128x128xf32> to vector<128x128xf32>
    %cst_89 = arith.constant dense<0.000000e+00> : vector<8x128xf32>
    %181 = tpu.matmul %144, %180, %cst_89 {dimension_numbers = #tpu.dot_dimension_numbers<[1], [0], [0], [1], [0, 0, 1, 1], [], []>} : vector<8x128xf32>, vector<128x128xf32>, vector<8x128xf32> -> vector<8x128xf32>
    %182 = arith.addf %178, %181 : vector<8x128xf32>
    %183 = arith.negf %182 : vector<8x128xf32>
    %184 = math.exp %183 : vector<8x128xf32>
    %cst_90 = arith.constant 1.000000e+00 : f32
    %185 = vector.broadcast %cst_90 : f32 to vector<8x128xf32>
    %186 = arith.addf %185, %184 : vector<8x128xf32>
    %187 = arith.divf %185, %186 : vector<8x128xf32>
    %188 = arith.mulf %171, %142 : vector<8x128xf32>
    %189 = arith.mulf %161, %177 : vector<8x128xf32>
    %190 = arith.addf %188, %189 : vector<8x128xf32>
    %191 = math.tanh %190 : vector<8x128xf32>
    %192 = arith.mulf %187, %191 : vector<8x128xf32>
    %193 = arith.index_cast %c3_i32 : i32 to index
    %c0_91 = arith.constant 0 : index
    %c0_92 = arith.constant 0 : index
    %194 = vector.load %arg6[%193, %c0_91, %c0_92] : memref<8x8x128xf32, #tpu.memory_space<vmem>>, vector<1x8x128xf32>
    %195 = vector.shape_cast %194 : vector<1x8x128xf32> to vector<8x128xf32>
    %196 = vector.shape_cast %192 : vector<8x128xf32> to vector<1x8x128xf32>
    tpu.vector_store %arg6[%193, %c0_91, %c0_92], %196 {strides = array<i32>} : memref<8x8x128xf32, #tpu.memory_space<vmem>>, vector<1x8x128xf32>,
    %c4_i32 = arith.constant 4 : i32
    %197 = arith.index_cast %c4_i32 : i32 to index
    %c0_93 = arith.constant 0 : index
    %c0_94 = arith.constant 0 : index
    %198 = vector.load %arg2[%197, %c0_93, %c0_94] : memref<8x8x512xf32, #tpu.memory_space<vmem>>, vector<1x8x512xf32>
    %199 = vector.shape_cast %198 : vector<1x8x512xf32> to vector<8x512xf32>
    %200 = vector.extract_strided_slice %199 {offsets = [0, 0], sizes = [8, 128], strides = [1, 1]} : vector<8x512xf32> to vector<8x128xf32>
    %c0_95 = arith.constant 0 : index
    %c0_96 = arith.constant 0 : index
    %c0_97 = arith.constant 0 : index
    %201 = vector.load %arg5[%c0_95, %c0_96, %c0_97] : memref<4x128x128xf32, #tpu.memory_space<vmem>>, vector<1x128x128xf32>
    %202 = vector.shape_cast %201 : vector<1x128x128xf32> to vector<128x128xf32>
    %cst_98 = arith.constant dense<0.000000e+00> : vector<8x128xf32>
    %203 = tpu.matmul %192, %202, %cst_98 {dimension_numbers = #tpu.dot_dimension_numbers<[1], [0], [0], [1], [0, 0, 1, 1], [], []>} : vector<8x128xf32>, vector<128x128xf32>, vector<8x128xf32> -> vector<8x128xf32>
    %204 = arith.addf %200, %203 : vector<8x128xf32>
    %205 = arith.negf %204 : vector<8x128xf32>
    %206 = math.exp %205 : vector<8x128xf32>
    %cst_99 = arith.constant 1.000000e+00 : f32
    %207 = vector.broadcast %cst_99 : f32 to vector<8x128xf32>
    %208 = arith.addf %207, %206 : vector<8x128xf32>
    %209 = arith.divf %207, %208 : vector<8x128xf32>
    %210 = vector.extract_strided_slice %199 {offsets = [0, 128], sizes = [8, 128], strides = [1, 1]} : vector<8x512xf32> to vector<8x128xf32>
    %c1_100 = arith.constant 1 : index
    %c0_101 = arith.constant 0 : index
    %c0_102 = arith.constant 0 : index
    %211 = vector.load %arg5[%c1_100, %c0_101, %c0_102] : memref<4x128x128xf32, #tpu.memory_space<vmem>>, vector<1x128x128xf32>
    %212 = vector.shape_cast %211 : vector<1x128x128xf32> to vector<128x128xf32>
    %cst_103 = arith.constant dense<0.000000e+00> : vector<8x128xf32>
    %213 = tpu.matmul %192, %212, %cst_103 {dimension_numbers = #tpu.dot_dimension_numbers<[1], [0], [0], [1], [0, 0, 1, 1], [], []>} : vector<8x128xf32>, vector<128x128xf32>, vector<8x128xf32> -> vector<8x128xf32>
    %214 = arith.addf %210, %213 : vector<8x128xf32>
    %215 = arith.negf %214 : vector<8x128xf32>
    %216 = math.exp %215 : vector<8x128xf32>
    %cst_104 = arith.constant 1.000000e+00 : f32
    %217 = vector.broadcast %cst_104 : f32 to vector<8x128xf32>
    %218 = arith.addf %217, %216 : vector<8x128xf32>
    %219 = arith.divf %217, %218 : vector<8x128xf32>
    %220 = vector.extract_strided_slice %199 {offsets = [0, 256], sizes = [8, 128], strides = [1, 1]} : vector<8x512xf32> to vector<8x128xf32>
    %c2_105 = arith.constant 2 : index
    %c0_106 = arith.constant 0 : index
    %c0_107 = arith.constant 0 : index
    %221 = vector.load %arg5[%c2_105, %c0_106, %c0_107] : memref<4x128x128xf32, #tpu.memory_space<vmem>>, vector<1x128x128xf32>
    %222 = vector.shape_cast %221 : vector<1x128x128xf32> to vector<128x128xf32>
    %cst_108 = arith.constant dense<0.000000e+00> : vector<8x128xf32>
    %223 = tpu.matmul %192, %222, %cst_108 {dimension_numbers = #tpu.dot_dimension_numbers<[1], [0], [0], [1], [0, 0, 1, 1], [], []>} : vector<8x128xf32>, vector<128x128xf32>, vector<8x128xf32> -> vector<8x128xf32>
    %224 = arith.addf %220, %223 : vector<8x128xf32>
    %225 = math.tanh %224 : vector<8x128xf32>
    %226 = vector.extract_strided_slice %199 {offsets = [0, 384], sizes = [8, 128], strides = [1, 1]} : vector<8x512xf32> to vector<8x128xf32>
    %c3_109 = arith.constant 3 : index
    %c0_110 = arith.constant 0 : index
    %c0_111 = arith.constant 0 : index
    %227 = vector.load %arg5[%c3_109, %c0_110, %c0_111] : memref<4x128x128xf32, #tpu.memory_space<vmem>>, vector<1x128x128xf32>
    %228 = vector.shape_cast %227 : vector<1x128x128xf32> to vector<128x128xf32>
    %cst_112 = arith.constant dense<0.000000e+00> : vector<8x128xf32>
    %229 = tpu.matmul %192, %228, %cst_112 {dimension_numbers = #tpu.dot_dimension_numbers<[1], [0], [0], [1], [0, 0, 1, 1], [], []>} : vector<8x128xf32>, vector<128x128xf32>, vector<8x128xf32> -> vector<8x128xf32>
    %230 = arith.addf %226, %229 : vector<8x128xf32>
    %231 = arith.negf %230 : vector<8x128xf32>
    %232 = math.exp %231 : vector<8x128xf32>
    %cst_113 = arith.constant 1.000000e+00 : f32
    %233 = vector.broadcast %cst_113 : f32 to vector<8x128xf32>
    %234 = arith.addf %233, %232 : vector<8x128xf32>
    %235 = arith.divf %233, %234 : vector<8x128xf32>
    %236 = arith.mulf %219, %190 : vector<8x128xf32>
    %237 = arith.mulf %209, %225 : vector<8x128xf32>
    %238 = arith.addf %236, %237 : vector<8x128xf32>
    %239 = math.tanh %238 : vector<8x128xf32>
    %240 = arith.mulf %235, %239 : vector<8x128xf32>
    %241 = arith.index_cast %c4_i32 : i32 to index
    %c0_114 = arith.constant 0 : index
    %c0_115 = arith.constant 0 : index
    %242 = vector.load %arg6[%241, %c0_114, %c0_115] : memref<8x8x128xf32, #tpu.memory_space<vmem>>, vector<1x8x128xf32>
    %243 = vector.shape_cast %242 : vector<1x8x128xf32> to vector<8x128xf32>
    %244 = vector.shape_cast %240 : vector<8x128xf32> to vector<1x8x128xf32>
    tpu.vector_store %arg6[%241, %c0_114, %c0_115], %244 {strides = array<i32>} : memref<8x8x128xf32, #tpu.memory_space<vmem>>, vector<1x8x128xf32>,
    %c5_i32 = arith.constant 5 : i32
    %245 = arith.index_cast %c5_i32 : i32 to index
    %c0_116 = arith.constant 0 : index
    %c0_117 = arith.constant 0 : index
    %246 = vector.load %arg2[%245, %c0_116, %c0_117] : memref<8x8x512xf32, #tpu.memory_space<vmem>>, vector<1x8x512xf32>
    %247 = vector.shape_cast %246 : vector<1x8x512xf32> to vector<8x512xf32>
    %248 = vector.extract_strided_slice %247 {offsets = [0, 0], sizes = [8, 128], strides = [1, 1]} : vector<8x512xf32> to vector<8x128xf32>
    %c0_118 = arith.constant 0 : index
    %c0_119 = arith.constant 0 : index
    %c0_120 = arith.constant 0 : index
    %249 = vector.load %arg5[%c0_118, %c0_119, %c0_120] : memref<4x128x128xf32, #tpu.memory_space<vmem>>, vector<1x128x128xf32>
    %250 = vector.shape_cast %249 : vector<1x128x128xf32> to vector<128x128xf32>
    %cst_121 = arith.constant dense<0.000000e+00> : vector<8x128xf32>
    %251 = tpu.matmul %240, %250, %cst_121 {dimension_numbers = #tpu.dot_dimension_numbers<[1], [0], [0], [1], [0, 0, 1, 1], [], []>} : vector<8x128xf32>, vector<128x128xf32>, vector<8x128xf32> -> vector<8x128xf32>
    %252 = arith.addf %248, %251 : vector<8x128xf32>
    %253 = arith.negf %252 : vector<8x128xf32>
    %254 = math.exp %253 : vector<8x128xf32>
    %cst_122 = arith.constant 1.000000e+00 : f32
    %255 = vector.broadcast %cst_122 : f32 to vector<8x128xf32>
    %256 = arith.addf %255, %254 : vector<8x128xf32>
    %257 = arith.divf %255, %256 : vector<8x128xf32>
    %258 = vector.extract_strided_slice %247 {offsets = [0, 128], sizes = [8, 128], strides = [1, 1]} : vector<8x512xf32> to vector<8x128xf32>
    %c1_123 = arith.constant 1 : index
    %c0_124 = arith.constant 0 : index
    %c0_125 = arith.constant 0 : index
    %259 = vector.load %arg5[%c1_123, %c0_124, %c0_125] : memref<4x128x128xf32, #tpu.memory_space<vmem>>, vector<1x128x128xf32>
    %260 = vector.shape_cast %259 : vector<1x128x128xf32> to vector<128x128xf32>
    %cst_126 = arith.constant dense<0.000000e+00> : vector<8x128xf32>
    %261 = tpu.matmul %240, %260, %cst_126 {dimension_numbers = #tpu.dot_dimension_numbers<[1], [0], [0], [1], [0, 0, 1, 1], [], []>} : vector<8x128xf32>, vector<128x128xf32>, vector<8x128xf32> -> vector<8x128xf32>
    %262 = arith.addf %258, %261 : vector<8x128xf32>
    %263 = arith.negf %262 : vector<8x128xf32>
    %264 = math.exp %263 : vector<8x128xf32>
    %cst_127 = arith.constant 1.000000e+00 : f32
    %265 = vector.broadcast %cst_127 : f32 to vector<8x128xf32>
    %266 = arith.addf %265, %264 : vector<8x128xf32>
    %267 = arith.divf %265, %266 : vector<8x128xf32>
    %268 = vector.extract_strided_slice %247 {offsets = [0, 256], sizes = [8, 128], strides = [1, 1]} : vector<8x512xf32> to vector<8x128xf32>
    %c2_128 = arith.constant 2 : index
    %c0_129 = arith.constant 0 : index
    %c0_130 = arith.constant 0 : index
    %269 = vector.load %arg5[%c2_128, %c0_129, %c0_130] : memref<4x128x128xf32, #tpu.memory_space<vmem>>, vector<1x128x128xf32>
    %270 = vector.shape_cast %269 : vector<1x128x128xf32> to vector<128x128xf32>
    %cst_131 = arith.constant dense<0.000000e+00> : vector<8x128xf32>
    %271 = tpu.matmul %240, %270, %cst_131 {dimension_numbers = #tpu.dot_dimension_numbers<[1], [0], [0], [1], [0, 0, 1, 1], [], []>} : vector<8x128xf32>, vector<128x128xf32>, vector<8x128xf32> -> vector<8x128xf32>
    %272 = arith.addf %268, %271 : vector<8x128xf32>
    %273 = math.tanh %272 : vector<8x128xf32>
    %274 = vector.extract_strided_slice %247 {offsets = [0, 384], sizes = [8, 128], strides = [1, 1]} : vector<8x512xf32> to vector<8x128xf32>
    %c3_132 = arith.constant 3 : index
    %c0_133 = arith.constant 0 : index
    %c0_134 = arith.constant 0 : index
    %275 = vector.load %arg5[%c3_132, %c0_133, %c0_134] : memref<4x128x128xf32, #tpu.memory_space<vmem>>, vector<1x128x128xf32>
    %276 = vector.shape_cast %275 : vector<1x128x128xf32> to vector<128x128xf32>
    %cst_135 = arith.constant dense<0.000000e+00> : vector<8x128xf32>
    %277 = tpu.matmul %240, %276, %cst_135 {dimension_numbers = #tpu.dot_dimension_numbers<[1], [0], [0], [1], [0, 0, 1, 1], [], []>} : vector<8x128xf32>, vector<128x128xf32>, vector<8x128xf32> -> vector<8x128xf32>
    %278 = arith.addf %274, %277 : vector<8x128xf32>
    %279 = arith.negf %278 : vector<8x128xf32>
    %280 = math.exp %279 : vector<8x128xf32>
    %cst_136 = arith.constant 1.000000e+00 : f32
    %281 = vector.broadcast %cst_136 : f32 to vector<8x128xf32>
    %282 = arith.addf %281, %280 : vector<8x128xf32>
    %283 = arith.divf %281, %282 : vector<8x128xf32>
    %284 = arith.mulf %267, %238 : vector<8x128xf32>
    %285 = arith.mulf %257, %273 : vector<8x128xf32>
    %286 = arith.addf %284, %285 : vector<8x128xf32>
    %287 = math.tanh %286 : vector<8x128xf32>
    %288 = arith.mulf %283, %287 : vector<8x128xf32>
    %289 = arith.index_cast %c5_i32 : i32 to index
    %c0_137 = arith.constant 0 : index
    %c0_138 = arith.constant 0 : index
    %290 = vector.load %arg6[%289, %c0_137, %c0_138] : memref<8x8x128xf32, #tpu.memory_space<vmem>>, vector<1x8x128xf32>
    %291 = vector.shape_cast %290 : vector<1x8x128xf32> to vector<8x128xf32>
    %292 = vector.shape_cast %288 : vector<8x128xf32> to vector<1x8x128xf32>
    tpu.vector_store %arg6[%289, %c0_137, %c0_138], %292 {strides = array<i32>} : memref<8x8x128xf32, #tpu.memory_space<vmem>>, vector<1x8x128xf32>,
    %c6_i32 = arith.constant 6 : i32
    %293 = arith.index_cast %c6_i32 : i32 to index
    %c0_139 = arith.constant 0 : index
    %c0_140 = arith.constant 0 : index
    %294 = vector.load %arg2[%293, %c0_139, %c0_140] : memref<8x8x512xf32, #tpu.memory_space<vmem>>, vector<1x8x512xf32>
    %295 = vector.shape_cast %294 : vector<1x8x512xf32> to vector<8x512xf32>
    %296 = vector.extract_strided_slice %295 {offsets = [0, 0], sizes = [8, 128], strides = [1, 1]} : vector<8x512xf32> to vector<8x128xf32>
    %c0_141 = arith.constant 0 : index
    %c0_142 = arith.constant 0 : index
    %c0_143 = arith.constant 0 : index
    %297 = vector.load %arg5[%c0_141, %c0_142, %c0_143] : memref<4x128x128xf32, #tpu.memory_space<vmem>>, vector<1x128x128xf32>
    %298 = vector.shape_cast %297 : vector<1x128x128xf32> to vector<128x128xf32>
    %cst_144 = arith.constant dense<0.000000e+00> : vector<8x128xf32>
    %299 = tpu.matmul %288, %298, %cst_144 {dimension_numbers = #tpu.dot_dimension_numbers<[1], [0], [0], [1], [0, 0, 1, 1], [], []>} : vector<8x128xf32>, vector<128x128xf32>, vector<8x128xf32> -> vector<8x128xf32>
    %300 = arith.addf %296, %299 : vector<8x128xf32>
    %301 = arith.negf %300 : vector<8x128xf32>
    %302 = math.exp %301 : vector<8x128xf32>
    %cst_145 = arith.constant 1.000000e+00 : f32
    %303 = vector.broadcast %cst_145 : f32 to vector<8x128xf32>
    %304 = arith.addf %303, %302 : vector<8x128xf32>
    %305 = arith.divf %303, %304 : vector<8x128xf32>
    %306 = vector.extract_strided_slice %295 {offsets = [0, 128], sizes = [8, 128], strides = [1, 1]} : vector<8x512xf32> to vector<8x128xf32>
    %c1_146 = arith.constant 1 : index
    %c0_147 = arith.constant 0 : index
    %c0_148 = arith.constant 0 : index
    %307 = vector.load %arg5[%c1_146, %c0_147, %c0_148] : memref<4x128x128xf32, #tpu.memory_space<vmem>>, vector<1x128x128xf32>
    %308 = vector.shape_cast %307 : vector<1x128x128xf32> to vector<128x128xf32>
    %cst_149 = arith.constant dense<0.000000e+00> : vector<8x128xf32>
    %309 = tpu.matmul %288, %308, %cst_149 {dimension_numbers = #tpu.dot_dimension_numbers<[1], [0], [0], [1], [0, 0, 1, 1], [], []>} : vector<8x128xf32>, vector<128x128xf32>, vector<8x128xf32> -> vector<8x128xf32>
    %310 = arith.addf %306, %309 : vector<8x128xf32>
    %311 = arith.negf %310 : vector<8x128xf32>
    %312 = math.exp %311 : vector<8x128xf32>
    %cst_150 = arith.constant 1.000000e+00 : f32
    %313 = vector.broadcast %cst_150 : f32 to vector<8x128xf32>
    %314 = arith.addf %313, %312 : vector<8x128xf32>
    %315 = arith.divf %313, %314 : vector<8x128xf32>
    %316 = vector.extract_strided_slice %295 {offsets = [0, 256], sizes = [8, 128], strides = [1, 1]} : vector<8x512xf32> to vector<8x128xf32>
    %c2_151 = arith.constant 2 : index
    %c0_152 = arith.constant 0 : index
    %c0_153 = arith.constant 0 : index
    %317 = vector.load %arg5[%c2_151, %c0_152, %c0_153] : memref<4x128x128xf32, #tpu.memory_space<vmem>>, vector<1x128x128xf32>
    %318 = vector.shape_cast %317 : vector<1x128x128xf32> to vector<128x128xf32>
    %cst_154 = arith.constant dense<0.000000e+00> : vector<8x128xf32>
    %319 = tpu.matmul %288, %318, %cst_154 {dimension_numbers = #tpu.dot_dimension_numbers<[1], [0], [0], [1], [0, 0, 1, 1], [], []>} : vector<8x128xf32>, vector<128x128xf32>, vector<8x128xf32> -> vector<8x128xf32>
    %320 = arith.addf %316, %319 : vector<8x128xf32>
    %321 = math.tanh %320 : vector<8x128xf32>
    %322 = vector.extract_strided_slice %295 {offsets = [0, 384], sizes = [8, 128], strides = [1, 1]} : vector<8x512xf32> to vector<8x128xf32>
    %c3_155 = arith.constant 3 : index
    %c0_156 = arith.constant 0 : index
    %c0_157 = arith.constant 0 : index
    %323 = vector.load %arg5[%c3_155, %c0_156, %c0_157] : memref<4x128x128xf32, #tpu.memory_space<vmem>>, vector<1x128x128xf32>
    %324 = vector.shape_cast %323 : vector<1x128x128xf32> to vector<128x128xf32>
    %cst_158 = arith.constant dense<0.000000e+00> : vector<8x128xf32>
    %325 = tpu.matmul %288, %324, %cst_158 {dimension_numbers = #tpu.dot_dimension_numbers<[1], [0], [0], [1], [0, 0, 1, 1], [], []>} : vector<8x128xf32>, vector<128x128xf32>, vector<8x128xf32> -> vector<8x128xf32>
    %326 = arith.addf %322, %325 : vector<8x128xf32>
    %327 = arith.negf %326 : vector<8x128xf32>
    %328 = math.exp %327 : vector<8x128xf32>
    %cst_159 = arith.constant 1.000000e+00 : f32
    %329 = vector.broadcast %cst_159 : f32 to vector<8x128xf32>
    %330 = arith.addf %329, %328 : vector<8x128xf32>
    %331 = arith.divf %329, %330 : vector<8x128xf32>
    %332 = arith.mulf %315, %286 : vector<8x128xf32>
    %333 = arith.mulf %305, %321 : vector<8x128xf32>
    %334 = arith.addf %332, %333 : vector<8x128xf32>
    %335 = math.tanh %334 : vector<8x128xf32>
    %336 = arith.mulf %331, %335 : vector<8x128xf32>
    %337 = arith.index_cast %c6_i32 : i32 to index
    %c0_160 = arith.constant 0 : index
    %c0_161 = arith.constant 0 : index
    %338 = vector.load %arg6[%337, %c0_160, %c0_161] : memref<8x8x128xf32, #tpu.memory_space<vmem>>, vector<1x8x128xf32>
    %339 = vector.shape_cast %338 : vector<1x8x128xf32> to vector<8x128xf32>
    %340 = vector.shape_cast %336 : vector<8x128xf32> to vector<1x8x128xf32>
    tpu.vector_store %arg6[%337, %c0_160, %c0_161], %340 {strides = array<i32>} : memref<8x8x128xf32, #tpu.memory_space<vmem>>, vector<1x8x128xf32>,
    %c7_i32 = arith.constant 7 : i32
    %341 = arith.index_cast %c7_i32 : i32 to index
    %c0_162 = arith.constant 0 : index
    %c0_163 = arith.constant 0 : index
    %342 = vector.load %arg2[%341, %c0_162, %c0_163] : memref<8x8x512xf32, #tpu.memory_space<vmem>>, vector<1x8x512xf32>
    %343 = vector.shape_cast %342 : vector<1x8x512xf32> to vector<8x512xf32>
    %344 = vector.extract_strided_slice %343 {offsets = [0, 0], sizes = [8, 128], strides = [1, 1]} : vector<8x512xf32> to vector<8x128xf32>
    %c0_164 = arith.constant 0 : index
    %c0_165 = arith.constant 0 : index
    %c0_166 = arith.constant 0 : index
    %345 = vector.load %arg5[%c0_164, %c0_165, %c0_166] : memref<4x128x128xf32, #tpu.memory_space<vmem>>, vector<1x128x128xf32>
    %346 = vector.shape_cast %345 : vector<1x128x128xf32> to vector<128x128xf32>
    %cst_167 = arith.constant dense<0.000000e+00> : vector<8x128xf32>
    %347 = tpu.matmul %336, %346, %cst_167 {dimension_numbers = #tpu.dot_dimension_numbers<[1], [0], [0], [1], [0, 0, 1, 1], [], []>} : vector<8x128xf32>, vector<128x128xf32>, vector<8x128xf32> -> vector<8x128xf32>
    %348 = arith.addf %344, %347 : vector<8x128xf32>
    %349 = arith.negf %348 : vector<8x128xf32>
    %350 = math.exp %349 : vector<8x128xf32>
    %cst_168 = arith.constant 1.000000e+00 : f32
    %351 = vector.broadcast %cst_168 : f32 to vector<8x128xf32>
    %352 = arith.addf %351, %350 : vector<8x128xf32>
    %353 = arith.divf %351, %352 : vector<8x128xf32>
    %354 = vector.extract_strided_slice %343 {offsets = [0, 128], sizes = [8, 128], strides = [1, 1]} : vector<8x512xf32> to vector<8x128xf32>
    %c1_169 = arith.constant 1 : index
    %c0_170 = arith.constant 0 : index
    %c0_171 = arith.constant 0 : index
    %355 = vector.load %arg5[%c1_169, %c0_170, %c0_171] : memref<4x128x128xf32, #tpu.memory_space<vmem>>, vector<1x128x128xf32>
    %356 = vector.shape_cast %355 : vector<1x128x128xf32> to vector<128x128xf32>
    %cst_172 = arith.constant dense<0.000000e+00> : vector<8x128xf32>
    %357 = tpu.matmul %336, %356, %cst_172 {dimension_numbers = #tpu.dot_dimension_numbers<[1], [0], [0], [1], [0, 0, 1, 1], [], []>} : vector<8x128xf32>, vector<128x128xf32>, vector<8x128xf32> -> vector<8x128xf32>
    %358 = arith.addf %354, %357 : vector<8x128xf32>
    %359 = arith.negf %358 : vector<8x128xf32>
    %360 = math.exp %359 : vector<8x128xf32>
    %cst_173 = arith.constant 1.000000e+00 : f32
    %361 = vector.broadcast %cst_173 : f32 to vector<8x128xf32>
    %362 = arith.addf %361, %360 : vector<8x128xf32>
    %363 = arith.divf %361, %362 : vector<8x128xf32>
    %364 = vector.extract_strided_slice %343 {offsets = [0, 256], sizes = [8, 128], strides = [1, 1]} : vector<8x512xf32> to vector<8x128xf32>
    %c2_174 = arith.constant 2 : index
    %c0_175 = arith.constant 0 : index
    %c0_176 = arith.constant 0 : index
    %365 = vector.load %arg5[%c2_174, %c0_175, %c0_176] : memref<4x128x128xf32, #tpu.memory_space<vmem>>, vector<1x128x128xf32>
    %366 = vector.shape_cast %365 : vector<1x128x128xf32> to vector<128x128xf32>
    %cst_177 = arith.constant dense<0.000000e+00> : vector<8x128xf32>
    %367 = tpu.matmul %336, %366, %cst_177 {dimension_numbers = #tpu.dot_dimension_numbers<[1], [0], [0], [1], [0, 0, 1, 1], [], []>} : vector<8x128xf32>, vector<128x128xf32>, vector<8x128xf32> -> vector<8x128xf32>
    %368 = arith.addf %364, %367 : vector<8x128xf32>
    %369 = math.tanh %368 : vector<8x128xf32>
    %370 = vector.extract_strided_slice %343 {offsets = [0, 384], sizes = [8, 128], strides = [1, 1]} : vector<8x512xf32> to vector<8x128xf32>
    %c3_178 = arith.constant 3 : index
    %c0_179 = arith.constant 0 : index
    %c0_180 = arith.constant 0 : index
    %371 = vector.load %arg5[%c3_178, %c0_179, %c0_180] : memref<4x128x128xf32, #tpu.memory_space<vmem>>, vector<1x128x128xf32>
    %372 = vector.shape_cast %371 : vector<1x128x128xf32> to vector<128x128xf32>
    %cst_181 = arith.constant dense<0.000000e+00> : vector<8x128xf32>
    %373 = tpu.matmul %336, %372, %cst_181 {dimension_numbers = #tpu.dot_dimension_numbers<[1], [0], [0], [1], [0, 0, 1, 1], [], []>} : vector<8x128xf32>, vector<128x128xf32>, vector<8x128xf32> -> vector<8x128xf32>
    %374 = arith.addf %370, %373 : vector<8x128xf32>
    %375 = arith.negf %374 : vector<8x128xf32>
    %376 = math.exp %375 : vector<8x128xf32>
    %cst_182 = arith.constant 1.000000e+00 : f32
    %377 = vector.broadcast %cst_182 : f32 to vector<8x128xf32>
    %378 = arith.addf %377, %376 : vector<8x128xf32>
    %379 = arith.divf %377, %378 : vector<8x128xf32>
    %380 = arith.mulf %363, %334 : vector<8x128xf32>
    %381 = arith.mulf %353, %369 : vector<8x128xf32>
    %382 = arith.addf %380, %381 : vector<8x128xf32>
    %383 = math.tanh %382 : vector<8x128xf32>
    %384 = arith.mulf %379, %383 : vector<8x128xf32>
    %385 = arith.index_cast %c7_i32 : i32 to index
    %c0_183 = arith.constant 0 : index
    %c0_184 = arith.constant 0 : index
    %386 = vector.load %arg6[%385, %c0_183, %c0_184] : memref<8x8x128xf32, #tpu.memory_space<vmem>>, vector<1x8x128xf32>
    %387 = vector.shape_cast %386 : vector<1x8x128xf32> to vector<8x128xf32>
    %388 = vector.shape_cast %384 : vector<8x128xf32> to vector<1x8x128xf32>
    tpu.vector_store %arg6[%385, %c0_183, %c0_184], %388 {strides = array<i32>} : memref<8x8x128xf32, #tpu.memory_space<vmem>>, vector<1x8x128xf32>,
    %c8_i32 = arith.constant 8 : i32
    %c0_185 = arith.constant 0 : index
    %c0_186 = arith.constant 0 : index
    %389 = vector.load %arg8[%c0_185, %c0_186] : memref<8x128xf32, #tpu.memory_space<vmem>>, vector<8x128xf32>
    tpu.vector_store %arg8[%c0_185, %c0_186], %384 {strides = array<i32>} : memref<8x128xf32, #tpu.memory_space<vmem>>, vector<8x128xf32>,
    %c0_187 = arith.constant 0 : index
    %c0_188 = arith.constant 0 : index
    %390 = vector.load %arg9[%c0_187, %c0_188] : memref<8x128xf32, #tpu.memory_space<vmem>>, vector<8x128xf32>
    tpu.vector_store %arg9[%c0_187, %c0_188], %382 {strides = array<i32>} : memref<8x128xf32, #tpu.memory_space<vmem>>, vector<8x128xf32>,
    %c0_i32_189 = arith.constant 0 : i32
    %391 = arith.cmpi eq, %arg1, %c0_i32_189 : i32
    %392 = arith.extui %391 : i1 to i32
    %c0_i32_190 = arith.constant 0 : i32
    %393 = arith.cmpi ne, %392, %c0_i32_190 : i32
    scf.if %393 {
      %c0_191 = arith.constant 0 : index
      %c0_192 = arith.constant 0 : index
      %394 = vector.load %arg7[%c0_191, %c0_192] : memref<8x128xf32, #tpu.memory_space<vmem>>, vector<8x128xf32>
      tpu.vector_store %arg7[%c0_191, %c0_192], %382 {strides = array<i32>} : memref<8x128xf32, #tpu.memory_space<vmem>>, vector<8x128xf32>,
    } else {
    }
    return
  }
  func.func @transform_0(%arg0: i32, %arg1: i32) -> (i32, i32, i32) {
    %c0_i32 = arith.constant 0 : i32
    %c0_i32_0 = arith.constant 0 : i32
    return %arg1, %arg0, %c0_i32 : i32, i32, i32
  }
  func.func @transform_1(%arg0: i32, %arg1: i32) -> (i32, i32) {
    %c0_i32 = arith.constant 0 : i32
    %c0_i32_0 = arith.constant 0 : i32
    return %arg0, %c0_i32 : i32, i32
  }
  func.func @transform_2(%arg0: i32, %arg1: i32) -> (i32, i32) {
    %c0_i32 = arith.constant 0 : i32
    %c0_i32_0 = arith.constant 0 : i32
    return %arg0, %c0_i32 : i32, i32
  }
  func.func @transform_3(%arg0: i32, %arg1: i32) -> (i32, i32, i32) {
    %c0_i32 = arith.constant 0 : i32
    %c0_i32_0 = arith.constant 0 : i32
    %c0_i32_1 = arith.constant 0 : i32
    %c0_i32_2 = arith.constant 0 : i32
    return %c0_i32, %c0_i32_0, %c0_i32_1 : i32, i32, i32
  }
  func.func @transform_4(%arg0: i32, %arg1: i32) -> (i32, i32, i32) {
    %c0_i32 = arith.constant 0 : i32
    %c0_i32_0 = arith.constant 0 : i32
    return %arg1, %arg0, %c0_i32 : i32, i32, i32
  }
  func.func @transform_5(%arg0: i32, %arg1: i32) -> (i32, i32) {
    %c0_i32 = arith.constant 0 : i32
    %c0_i32_0 = arith.constant 0 : i32
    return %arg0, %c0_i32 : i32, i32
  }
}

</mosaic_0001>

<bundles_post_ra>
// kernel: tpu_custom_call.1
= control target key start
LH: loop header
LB: loop body
LE: loop exit
PB: predicated region body
PF: predicated region fallthrough
CT: control target
= control target key end

     0   :  { %11 = vsyncpa [#allocation5], 0  ;;  %s6844_s0 = inlined_call_operand.hbm [shape: f32[8,8,512], index: 0, kind: input, shape index: {}]   ;;  %s6845_s1 = inlined_call_operand.hbm [shape: f32[8,128], index: 1, kind: input, shape index: {}]   ;;  %s6846_s2 = inlined_call_operand.hbm [shape: f32[8,128], index: 2, kind: input, shape index: {}]   ;;  %s6847_s3 = inlined_call_operand.hbm [shape: f32[4,128,128], index: 3, kind: input, shape index: {}]   ;;  %s6848_s4 = inlined_call_operand.hbm [shape: f32[8,8,128], index: 4, kind: output, shape index: {0}]   ;;  %s6849_s5 = inlined_call_operand.hbm [shape: f32[8,128], index: 5, kind: output, shape index: {1}]  }
   0x1   :  { %12 = vsyncpa [#allocation8], 0 }
   0x2   :  { %13 = vsyncpa [#allocation11], 0 }
   0x3   :  { %14 = vsyncpa [#allocation6], 0 }
   0x4   :  { %15 = vsyncpa [#allocation14], 0  ;;  %s5893_s18 = smov [#allocation7]   ;;  %s5894_s20 = smov [#allocation4]  }
   0x5   :  { %s34_s19 = sshll.u32 %s5893_s18, 4  ;;  %s21_s21 = sshll.u32 %s5894_s20, 4  ;;  %s35_s19 = int_to_ptr.vmem [resolvable:$true] %s34_s19  ;;  %s5936_s21 = int_to_ptr.vmem [resolvable:$true] %s21_s21 }
   0x6   :  { %s5751_s24 = scalar_lea.hbm %s6845_s1, 128 }
   0x7   :  { %p5752_p0 = scmp.ne.s32.totalorder %s6845_s1, %s5751_s24  ;;  %p5755_p1 = scmp.lt.u32.totalorder %s5751_s24, %s6845_s1 }
   0x9   :  { %p5757_p2 = pnand %p5755_p1, %p5752_p0 }
   0xb   :  { %5760 = shalt.err (!%p5757_p2)
}
   0xc   :  { %s5761_s29 = scalar_lea.vmem %s35_s19, 128  ;;  %p5766_p4 = scmp.lt.s32.totalorder %s35_s19, %s35_s19 }
   0xd   :  { %p5762_p3 = scmp.ne.s32.totalorder %s35_s19, %s5761_s29  ;;  %p5767_p5 = scmp.lt.s32.totalorder %s5761_s29, %s5761_s29 }
   0xf   :  { %p5768_p6 = por %p5767_p5, %p5766_p4 }
  0x11   :  { %p5769_p7 = pnand %p5768_p6, %p5762_p3 }
  0x13   :  { %5772 = shalt.err (!%p5769_p7)
}
  0x14   :  { %37 = dma.hbm_to_vmem [thread:$0]  %s6845_s1, 128, %s35_s19, [#allocation8]  }
  0x15   :  { %s5773_s9 = scalar_lea.hbm %s6844_s0, 4096 }
  0x16   :  { %p5774_p8 = scmp.ne.s32.totalorder %s6844_s0, %s5773_s9  ;;  %p5777_p9 = scmp.lt.u32.totalorder %s5773_s9, %s6844_s0 }
  0x18   :  { %p5779_p10 = pnand %p5777_p9, %p5774_p8 }
  0x1a   :  { %5782 = shalt.err (!%p5779_p10)
}
  0x1b   :  { %s5783_s14 = scalar_lea.vmem %s5936_s21, 4096  ;;  %p5788_p12 = scmp.lt.s32.totalorder %s5936_s21, %s5936_s21 }
  0x1c   :  { %p5784_p11 = scmp.ne.s32.totalorder %s5936_s21, %s5783_s14  ;;  %p5789_p13 = scmp.lt.s32.totalorder %s5783_s14, %s5783_s14 }
  0x1e   :  { %p5790_p0 = por %p5789_p13, %p5788_p12 }
  0x20   :  { %p5791_p1 = pnand %p5790_p0, %p5784_p11 }
  0x22   :  { %5794 = shalt.err (!%p5791_p1)
}
  0x23   :  { %s5895_s1 = smov 512   ;;  %s5896_s15 = smov 32  }
  0x24   :  { %27 = dma.hbm_to_vmem [thread:$0]  %s6844_s0, 4096, %s5936_s21, [#allocation5], %s5895_s1, %s5895_s1, %s5896_s15  }
  0x25   :  { %s5897_s18 = smov [#allocation9]   ;;  %s5898_s20 = smov [#allocation10]  }
  0x26   :  { %s44_s19 = sshll.u32 %s5897_s18, 4  ;;  %s53_s22 = sshll.u32 %s5898_s20, 4  ;;  %s45_s19 = int_to_ptr.vmem [resolvable:$true] %s44_s19  ;;  %s5967_s22 = int_to_ptr.vmem [resolvable:$true] %s53_s22 }
  0x27   :  { %s5795_s25 = scalar_lea.hbm %s6846_s2, 128 }
  0x28   :  { %p5796_p2 = scmp.ne.s32.totalorder %s6846_s2, %s5795_s25  ;;  %p5799_p3 = scmp.lt.u32.totalorder %s5795_s25, %s6846_s2 }
  0x2a   :  { %p5801_p4 = pnand %p5799_p3, %p5796_p2 }
  0x2c   :  { %5804 = shalt.err (!%p5801_p4)
}
  0x2d   :  { %s5805_s0 = scalar_lea.vmem %s45_s19, 128  ;;  %p5810_p6 = scmp.lt.s32.totalorder %s45_s19, %s45_s19 }
  0x2e   :  { %p5806_p5 = scmp.ne.s32.totalorder %s45_s19, %s5805_s0  ;;  %p5811_p7 = scmp.lt.s32.totalorder %s5805_s0, %s5805_s0 }
  0x30   :  { %p5812_p8 = por %p5811_p7, %p5810_p6 }
  0x32   :  { %p5813_p9 = pnand %p5812_p8, %p5806_p5 }
  0x34   :  { %5816 = shalt.err (!%p5813_p9)
}
  0x35   :  { %47 = dma.hbm_to_vmem [thread:$0]  %s6846_s2, 128, %s45_s19, [#allocation8]  }
  0x36   :  { %s5817_s8 = scalar_lea.hbm %s6847_s3, 8192 }
  0x37   :  { %p5818_p10 = scmp.ne.s32.totalorder %s6847_s3, %s5817_s8  ;;  %p5821_p11 = scmp.lt.u32.totalorder %s5817_s8, %s6847_s3 }
  0x39   :  { %p5823_p12 = pnand %p5821_p11, %p5818_p10 }
  0x3b   :  { %5826 = shalt.err (!%p5823_p12)
}
  0x3c   :  { %s5827_s13 = scalar_lea.vmem %s5967_s22, 8192  ;;  %p5832_p0 = scmp.lt.s32.totalorder %s5967_s22, %s5967_s22 }
  0x3d   :  { %p5828_p13 = scmp.ne.s32.totalorder %s5967_s22, %s5827_s13  ;;  %p5833_p1 = scmp.lt.s32.totalorder %s5827_s13, %s5827_s13 }
  0x3f   :  { %p5834_p2 = por %p5833_p1, %p5832_p0 }
  0x41   :  { %p5835_p3 = pnand %p5834_p2, %p5828_p13 }
  0x43   :  { %5838 = shalt.err (!%p5835_p3)
}
  0x44   :  { %s5899_s2 = smov 128   ;;  %s5900_s14 = smov 8  }
  0x45   :  { %59 = dma.hbm_to_vmem [thread:$0]  %s6847_s3, 8192, %s5967_s22, [#allocation11], %s5899_s2, %s5899_s2, %s5900_s14  }
  0x46   :  { %5883 = dma.done.wait [#allocation5], 4096  }
  0x47   :  { %5884 = vsyncadd [#allocation5], 4294963200 }
  0x48   :  { %5885 = dma.done.wait [#allocation8], 256  }
  0x49   :  { %5886 = vsyncadd [#allocation8], 4294967040 }
  0x4a   :  { %5887 = dma.done.wait [#allocation11], 8192  }
  0x4b   :  { %5888 = vsyncadd [#allocation11], 4294959104  ;;  %v5901_v0 = vmov 0.0|0.0   ;;  %vm5902_vm0 = vmmov 0   ;;  %v5903_v1 = vmov 0.0   ;;  %v86_v2 = vld [vmem:[#allocation10] sm:$0xff] }
  0x4c   :  { %4842 = vmatprep.subr.bf16.mxu0 %v5901_v0  ;;  %4866 = vmatprep.subr.bf16.mxu1 %v5901_v0  ;;  %v87_v3 = vld [vmem:[#allocation10 + $0x8] sm:$0xff]  ;;  %v180_v4 = vld [vmem:[#allocation10 + $0x80] sm:$0xff]  ;;  %v88_v7 = vld [vmem:[#allocation10 + $0x10] sm:$0xff]  ;;  %s5904_s3 = smov [#allocation13]  }
  0x4d   :  { %3754 = vmatprep.mubr.msk.f32.mxu0 %vm5902_vm0, %v5903_v1  ;;  %3789 = vmatprep.mubr.msk.f32.mxu1 %vm5902_vm0, %v5903_v1  ;;  %v6007_v5 = vpack.c.bf16 %v87_v3, %v86_v2  ;;  %v181_v6 = vld [vmem:[#allocation10 + $0x88] sm:$0xff]  ;;  %v89_v8 = vld [vmem:[#allocation10 + $0x18] sm:$0xff]  ;;  %v182_v10 = vld [vmem:[#allocation10 + $0x90] sm:$0xff]  ;;  %s3139_s16 = sshll.u32 %s5904_s3, 4  ;;  %s3140_s16 = int_to_ptr.vmem [resolvable:$true] %s3139_s16 }
  0x4e   :  { %v6009_v9 = vpack.c.bf16 %v181_v6, %v180_v4  ;;  %v183_v11 = vld [vmem:[#allocation10 + $0x98] sm:$0xff]  ;;  %v6012_v12 = vpack.c.bf16 %v89_v8, %v88_v7  ;;  %v90_v14 = vld [vmem:[#allocation10 + $0x20] sm:$0xff]  ;;  %v91_v15 = vld [vmem:[#allocation10 + $0x28] sm:$0xff]  ;;  %s5839_s17 = scalar_lea.vmem %s3140_s16, 128  ;;  %p5844_p5 = scmp.lt.s32.totalorder %s3140_s16, %s3140_s16 }
  0x4f   :  { %4844 = vmatpush3.bf16.msra.mxu0 %v6007_v5  ;;  %v6016_v13 = vpack.c.bf16 %v183_v11, %v182_v10  ;;  %v184_v16 = vld [vmem:[#allocation10 + $0xa0] sm:$0xff]  ;;  %v185_v17 = vld [vmem:[#allocation10 + $0xa8] sm:$0xff]  ;;  %v6020_v18 = vpack.c.bf16 %v91_v15, %v90_v14  ;;  %v92_v20 = vld [vmem:[#allocation10 + $0x30] sm:$0xff]  ;;  %p5840_p4 = scmp.ne.s32.totalorder %s3140_s16, %s5839_s17  ;;  %p5845_p6 = scmp.lt.s32.totalorder %s5839_s17, %s5839_s17 }
  0x50   :  { %4868 = vmatpush3.bf16.msra.mxu1 %v6009_v9  ;;  %4845 = vmatprep.subr.bf16.mxu0 %v5901_v0  ;;  %v6024_v19 = vpack.c.bf16 %v185_v17, %v184_v16  ;;  %v93_v21 = vld [vmem:[#allocation10 + $0x38] sm:$0xff]  ;;  %v186_v22 = vld [vmem:[#allocation10 + $0xb0] sm:$0xff]  ;;  %v94_v26 = vld [vmem:[#allocation10 + $0x40] sm:$0xff] }
  0x51   :  { %4869 = vmatprep.subr.bf16.mxu1 %v5901_v0  ;;  %v187_v23 = vld [vmem:[#allocation10 + $0xb8] sm:$0xff]  ;;  %v6028_v24 = vpack.c.bf16 %v93_v21, %v92_v20  ;;  %v95_v27 = vld [vmem:[#allocation10 + $0x48] sm:$0xff]  ;;  %v188_v28 = vld [vmem:[#allocation10 + $0xc0] sm:$0xff]  ;;  %p5846_p7 = por %p5845_p6, %p5844_p5 }
  0x52   :  { %v6032_v25 = vpack.c.bf16 %v187_v23, %v186_v22  ;;  %v189_v29 = vld [vmem:[#allocation10 + $0xc8] sm:$0xff]  ;;  %v6036_v30 = vpack.c.bf16 %v95_v27, %v94_v26  ;;  %v96_v32 = vld [vmem:[#allocation10 + $0x50] sm:$0xff]  ;;  %v97_v33 = vld [vmem:[#allocation10 + $0x58] sm:$0xff] }
  0x53   :  { %4847 = vmatpush3.bf16.msra.mxu0 %v6012_v12  ;;  %v6040_v31 = vpack.c.bf16 %v189_v29, %v188_v28  ;;  %v190_v34 = vld [vmem:[#allocation10 + $0xd0] sm:$0xff]  ;;  %v191_v35 = vld [vmem:[#allocation10 + $0xd8] sm:$0xff]  ;;  %v6044_v36 = vpack.c.bf16 %v97_v33, %v96_v32  ;;  %v98_v38 = vld [vmem:[#allocation10 + $0x60] sm:$0xff]  ;;  %p5847_p8 = pnand %p5846_p7, %p5840_p4 }
  0x54   :  { %4871 = vmatpush3.bf16.msra.mxu1 %v6016_v13  ;;  %4848 = vmatprep.subr.bf16.mxu0 %v5901_v0  ;;  %v6048_v37 = vpack.c.bf16 %v191_v35, %v190_v34  ;;  %v99_v39 = vld [vmem:[#allocation10 + $0x68] sm:$0xff]  ;;  %v192_v40 = vld [vmem:[#allocation10 + $0xe0] sm:$0xff]  ;;  %v100_v44 = vld [vmem:[#allocation10 + $0x70] sm:$0xff] }
  0x55   :  { %4872 = vmatprep.subr.bf16.mxu1 %v5901_v0  ;;  %v193_v41 = vld [vmem:[#allocation10 + $0xe8] sm:$0xff]  ;;  %v6052_v42 = vpack.c.bf16 %v99_v39, %v98_v38  ;;  %v101_v45 = vld [vmem:[#allocation10 + $0x78] sm:$0xff]  ;;  %v194_v46 = vld [vmem:[#allocation10 + $0xf0] sm:$0xff] }
  0x56   :  { %v6056_v43 = vpack.c.bf16 %v193_v41, %v192_v40  ;;  %v195_v47 = vld [vmem:[#allocation10 + $0xf8] sm:$0xff]  ;;  %v6060_v48 = vpack.c.bf16 %v101_v45, %v100_v44  ;;  %v274_v50 = vld [vmem:[#allocation10 + $0x100] sm:$0xff]  ;;  %v275_v51 = vld [vmem:[#allocation10 + $0x108] sm:$0xff] }
  0x57   :  { %4850 = vmatpush3.bf16.msra.mxu0 %v6020_v18  ;;  %v6064_v49 = vpack.c.bf16 %v195_v47, %v194_v46  ;;  %v363_v52 = vld [vmem:[#allocation10 + $0x180] sm:$0xff]  ;;  %v364_v53 = vld [vmem:[#allocation10 + $0x188] sm:$0xff]  ;;  %v6068_v54 = vld [vmem:[#allocation7] sm:$0xff]  ;;  %v6070_v55 = vpack.c.bf16 %v275_v51, %v274_v50 }
  0x58   :  { %4874 = vmatpush3.bf16.msra.mxu1 %v6024_v19  ;;  %4851 = vmatprep.subr.bf16.mxu0 %v5901_v0  ;;  %v6074_v56 = vpack.c.bf16 %v364_v53, %v363_v52  ;;  %v276_v57 = vld [vmem:[#allocation10 + $0x110] sm:$0xff]  ;;  %v277_v58 = vld [vmem:[#allocation10 + $0x118] sm:$0xff]  ;;  %v278_v63 = vld [vmem:[#allocation10 + $0x120] sm:$0xff] }
  0x59   :  { %4875 = vmatprep.subr.bf16.mxu1 %v5901_v0  ;;  %v365_v59 = vld [vmem:[#allocation10 + $0x190] sm:$0xff]  ;;  %v366_v60 = vld [vmem:[#allocation10 + $0x198] sm:$0xff]  ;;  %v6080_v61 = vpack.c.bf16 %v277_v58, %v276_v57  ;;  %v279_v2 = vld [vmem:[#allocation10 + $0x128] sm:$0xff] }
  0x5a   :  { %v6084_v62 = vpack.c.bf16 %v366_v60, %v365_v59  ;;  %v367_v3 = vld [vmem:[#allocation10 + $0x1a0] sm:$0xff]  ;;  %v368_v4 = vld [vmem:[#allocation10 + $0x1a8] sm:$0xff]  ;;  %v6092_v6 = vpack.c.bf16 %v279_v2, %v278_v63  ;;  %v280_v8 = vld [vmem:[#allocation10 + $0x130] sm:$0xff] }
  0x5b   :  { %4853 = vmatpush3.bf16.msra.mxu0 %v6028_v24  ;;  %v6096_v7 = vpack.c.bf16 %v368_v4, %v367_v3  ;;  %v281_v10 = vld [vmem:[#allocation10 + $0x138] sm:$0xff]  ;;  %v369_v11 = vld [vmem:[#allocation10 + $0x1b0] sm:$0xff]  ;;  %v282_v17 = vld [vmem:[#allocation10 + $0x140] sm:$0xff] }
  0x5c   :  { %4877 = vmatpush3.bf16.msra.mxu1 %v6032_v25  ;;  %4854 = vmatprep.subr.bf16.mxu0 %v5901_v0  ;;  %v370_v14 = vld [vmem:[#allocation10 + $0x1b8] sm:$0xff]  ;;  %v6100_v15 = vpack.c.bf16 %v281_v10, %v280_v8  ;;  %v283_v20 = vld [vmem:[#allocation10 + $0x148] sm:$0xff]  ;;  %v371_v21 = vld [vmem:[#allocation10 + $0x1c0] sm:$0xff] }
  0x5d   :  { %4878 = vmatprep.subr.bf16.mxu1 %v5901_v0  ;;  %v6104_v16 = vpack.c.bf16 %v370_v14, %v369_v11  ;;  %v372_v22 = vld [vmem:[#allocation10 + $0x1c8] sm:$0xff]  ;;  %v6108_v23 = vpack.c.bf16 %v283_v20, %v282_v17  ;;  %v284_v27 = vld [vmem:[#allocation10 + $0x150] sm:$0xff]  ;;  %v285_v28 = vld [vmem:[#allocation10 + $0x158] sm:$0xff] }
  0x5e   :  { %v6112_v26 = vpack.c.bf16 %v372_v22, %v371_v21  ;;  %v373_v29 = vld [vmem:[#allocation10 + $0x1d0] sm:$0xff]  ;;  %v374_v32 = vld [vmem:[#allocation10 + $0x1d8] sm:$0xff]  ;;  %v6116_v33 = vpack.c.bf16 %v285_v28, %v284_v27  ;;  %v286_v35 = vld [vmem:[#allocation10 + $0x160] sm:$0xff] }
  0x5f   :  { %4856 = vmatpush3.bf16.msra.mxu0 %v6036_v30  ;;  %v6120_v34 = vpack.c.bf16 %v374_v32, %v373_v29  ;;  %v287_v38 = vld [vmem:[#allocation10 + $0x168] sm:$0xff]  ;;  %v375_v39 = vld [vmem:[#allocation10 + $0x1e0] sm:$0xff]  ;;  %v288_v45 = vld [vmem:[#allocation10 + $0x170] sm:$0xff] }
  0x60   :  { %4880 = vmatpush3.bf16.msra.mxu1 %v6040_v31  ;;  %4857 = vmatprep.subr.bf16.mxu0 %v5901_v0  ;;  %v376_v40 = vld [vmem:[#allocation10 + $0x1e8] sm:$0xff]  ;;  %v6124_v41 = vpack.c.bf16 %v287_v38, %v286_v35  ;;  %v289_v46 = vld [vmem:[#allocation10 + $0x178] sm:$0xff]  ;;  %v377_v47 = vld [vmem:[#allocation10 + $0x1f0] sm:$0xff] }
  0x61   :  { %4881 = vmatprep.subr.bf16.mxu1 %v5901_v0  ;;  %v6128_v44 = vpack.c.bf16 %v376_v40, %v375_v39  ;;  %v378_v50 = vld [vmem:[#allocation10 + $0x1f8] sm:$0xff]  ;;  %v6132_v51 = vpack.c.bf16 %v289_v46, %v288_v45  ;;  %v82_v60 = vld [vmem:[#allocation4] sm:$0xff]  ;;  %v84_v17 = vld [vmem:[#allocation4 + $0x10] sm:$0xff] }
  0x62   :  { %v6136_v52 = vpack.c.bf16 %v378_v50, %v377_v47  ;;  %v83_v59 = vld [vmem:[#allocation4 + $0x8] sm:$0xff]  ;;  %v85_v20 = vld [vmem:[#allocation4 + $0x18] sm:$0xff] }
  0x63   :  { %4859 = vmatpush3.bf16.msra.mxu0 %v6044_v36  ;;  %v78_v39 = vld [vmem:[#allocation9] sm:$0xff] }
  0x64   :  { %4883 = vmatpush3.bf16.msra.mxu1 %v6048_v37  ;;  %4860 = vmatprep.subr.bf16.mxu0 %v5901_v0 }
  0x65   :  { %4884 = vmatprep.subr.bf16.mxu1 %v5901_v0 }
  0x67   :  { %4862 = vmatpush3.bf16.msra.mxu0 %v6052_v42 }
  0x68   :  { %4886 = vmatpush3.bf16.msra.mxu1 %v6056_v43  ;;  %4863 = vmatprep.subr.bf16.mxu0 %v5901_v0 }
  0x69   :  { %4887 = vmatprep.subr.bf16.mxu1 %v5901_v0 }
  0x6b   :  { %4865 = vmatpush3.bf16.msra.mxu0 %v6060_v48 }
  0x6c   :  { %4889 = vmatpush3.bf16.msra.mxu1 %v6064_v49  ;;  %4890 = vmatprep.subr.bf16.mxu0 %v5901_v0 }
  0x6d   :  { %4914 = vmatprep.subr.bf16.mxu1 %v5901_v0 }
  0x6e   :  { %3755 = vmatmul.mubr.f32.vlgmr.msra.gmra.mrb[0].mxu0 %v6068_v54 }
  0x6f   :  { %3790 = vmatmul.mubr.f32.vlgmr.msra.gmra.mrb[0].mxu1 %v6068_v54  ;;  %4892 = vmatpush3.bf16.msra.mxu0 %v6070_v55 }
  0x70   :  { %4916 = vmatpush3.bf16.msra.mxu1 %v6074_v56  ;;  %4893 = vmatprep.subr.bf16.mxu0 %v5901_v0 }
  0x71   :  { %4917 = vmatprep.subr.bf16.mxu1 %v5901_v0  ;;  %3824 = vmatprep.mubr.msk.f32.mxu0 %vm5902_vm0, %v5903_v1 }
  0x72   :  { %3859 = vmatprep.mubr.msk.f32.mxu1 %vm5902_vm0, %v5903_v1 }
  0x73   :  { %4895 = vmatpush3.bf16.msra.mxu0 %v6080_v61 }
  0x74   :  { %4919 = vmatpush3.bf16.msra.mxu1 %v6084_v62  ;;  %4896 = vmatprep.subr.bf16.mxu0 %v5901_v0 }
  0x75   :  { %4920 = vmatprep.subr.bf16.mxu1 %v5901_v0 }
  0x77   :  { %4898 = vmatpush3.bf16.msra.mxu0 %v6092_v6 }
  0x78   :  { %4922 = vmatpush3.bf16.msra.mxu1 %v6096_v7  ;;  %4899 = vmatprep.subr.bf16.mxu0 %v5901_v0 }
  0x79   :  { %4923 = vmatprep.subr.bf16.mxu1 %v5901_v0 }
  0x7b   :  { %4901 = vmatpush3.bf16.msra.mxu0 %v6100_v15 }
  0x7c   :  { %4925 = vmatpush3.bf16.msra.mxu1 %v6104_v16  ;;  %4902 = vmatprep.subr.bf16.mxu0 %v5901_v0 }
  0x7d   :  { %4926 = vmatprep.subr.bf16.mxu1 %v5901_v0 }
  0x7f   :  { %4904 = vmatpush3.bf16.msra.mxu0 %v6108_v23 }
  0x80   :  { %4928 = vmatpush3.bf16.msra.mxu1 %v6112_v26  ;;  %4905 = vmatprep.subr.bf16.mxu0 %v5901_v0 }
  0x81   :  { %4929 = vmatprep.subr.bf16.mxu1 %v5901_v0 }
  0x83   :  { %4907 = vmatpush3.bf16.msra.mxu0 %v6116_v33 }
  0x84   :  { %4931 = vmatpush3.bf16.msra.mxu1 %v6120_v34  ;;  %4908 = vmatprep.subr.bf16.mxu0 %v5901_v0 }
  0x85   :  { %4932 = vmatprep.subr.bf16.mxu1 %v5901_v0 }
  0x87   :  { %4910 = vmatpush3.bf16.msra.mxu0 %v6124_v41 }
  0x88   :  { %4934 = vmatpush3.bf16.msra.mxu1 %v6128_v44  ;;  %4911 = vmatprep.subr.bf16.mxu0 %v5901_v0 }
  0x89   :  { %4935 = vmatprep.subr.bf16.mxu1 %v5901_v0 }
  0x8b   :  { %4913 = vmatpush3.bf16.msra.mxu0 %v6132_v51 }
  0x8c   :  { %4937 = vmatpush3.bf16.msra.mxu1 %v6136_v52  ;;  %4938 = vmatprep.subr.bf16.mxu0 %v5901_v0 }
  0x8d   :  { %4962 = vmatprep.subr.bf16.mxu1 %v5901_v0 }
  0x8e   :  { %3825 = vmatmul.mubr.f32.vlgmr.msra.gmra.mrb[2].mxu0 %v6068_v54 }
  0x8f   :  { %3860 = vmatmul.mubr.f32.vlgmr.msra.gmra.mrb[2].mxu1 %v6068_v54  ;;  %4940 = vmatpush3.bf16.msra.mxu0 %v6007_v5 }
  0x90   :  { %4964 = vmatpush3.bf16.msra.mxu1 %v6009_v9  ;;  %4941 = vmatprep.subr.bf16.mxu0 %v5901_v0 }
  0x91   :  { %4965 = vmatprep.subr.bf16.mxu1 %v5901_v0  ;;  %3894 = vmatprep.mubr.msk.f32.mxu0 %vm5902_vm0, %v5903_v1 }
  0x92   :  { %3929 = vmatprep.mubr.msk.f32.mxu1 %vm5902_vm0, %v5903_v1 }
  0x93   :  { %4943 = vmatpush3.bf16.msra.mxu0 %v6012_v12 }
  0x94   :  { %4967 = vmatpush3.bf16.msra.mxu1 %v6016_v13  ;;  %4944 = vmatprep.subr.bf16.mxu0 %v5901_v0 }
  0x95   :  { %4968 = vmatprep.subr.bf16.mxu1 %v5901_v0 }
  0x97   :  { %4946 = vmatpush3.bf16.msra.mxu0 %v6020_v18 }
  0x98   :  { %4970 = vmatpush3.bf16.msra.mxu1 %v6024_v19  ;;  %4947 = vmatprep.subr.bf16.mxu0 %v5901_v0 }
  0x99   :  { %4971 = vmatprep.subr.bf16.mxu1 %v5901_v0 }
  0x9b   :  { %4949 = vmatpush3.bf16.msra.mxu0 %v6028_v24 }
  0x9c   :  { %4973 = vmatpush3.bf16.msra.mxu1 %v6032_v25  ;;  %4950 = vmatprep.subr.bf16.mxu0 %v5901_v0 }
  0x9d   :  { %4974 = vmatprep.subr.bf16.mxu1 %v5901_v0 }
  0x9f   :  { %4952 = vmatpush3.bf16.msra.mxu0 %v6036_v30 }
  0xa0   :  { %4976 = vmatpush3.bf16.msra.mxu1 %v6040_v31  ;;  %4953 = vmatprep.subr.bf16.mxu0 %v5901_v0 }
  0xa1   :  { %4977 = vmatprep.subr.bf16.mxu1 %v5901_v0 }
  0xa3   :  { %4955 = vmatpush3.bf16.msra.mxu0 %v6044_v36 }
  0xa4   :  { %4979 = vmatpush3.bf16.msra.mxu1 %v6048_v37  ;;  %4956 = vmatprep.subr.bf16.mxu0 %v5901_v0 }
  0xa5   :  { %4980 = vmatprep.subr.bf16.mxu1 %v5901_v0 }
  0xa7   :  { %4958 = vmatpush3.bf16.msra.mxu0 %v6052_v42 }
  0xa8   :  { %4982 = vmatpush3.bf16.msra.mxu1 %v6056_v43  ;;  %4959 = vmatprep.subr.bf16.mxu0 %v5901_v0 }
  0xa9   :  { %4983 = vmatprep.subr.bf16.mxu1 %v5901_v0 }
  0xab   :  { %4961 = vmatpush3.bf16.msra.mxu0 %v6060_v48 }
  0xac   :  { %4985 = vmatpush3.bf16.msra.mxu1 %v6064_v49  ;;  %4986 = vmatprep.subr.bf16.mxu0 %v5901_v0 }
  0xad   :  { %5010 = vmatprep.subr.bf16.mxu1 %v5901_v0 }
 0x141   :  { %v168_v53 = vpop.f32.mrb[0].mxu0 }
 0x142   :  { %v262_v54 = vpop.f32.mrb[0].mxu1  ;;  %v3756_v57 = vpop.f32.mrb[1].mxu0  ;;  %v172_v2 = vadd.f32 %v168_v53, %v82_v60 }
 0x143   :  { %v3791_v58 = vpop.f32.mrb[1].mxu1  ;;  %v266_v63 = vadd.f32 %v262_v54, %v83_v59 }
 0x144   :  { %v3154_v4 = vmul.f32 -1.442695, %v172_v2 }
 0x145   :  { %v3155_v3 = vmul.f32 -1.442695, %v266_v63 }
 0x147   :  { %5623 = vpow2.f32 %v3155_v3 }
 0x148   :  { %5625 = vpow2.f32 %v3154_v4 }
 0x151   :  { %v5624_v8 = vpop.eup %5623 }
 0x152   :  { %v5626_v10 = vpop.eup %5625  ;;  %v270_v11 = vadd.f32 1.0, %v5624_v8 }
 0x153   :  { %v176_v14 = vadd.f32 1.0, %v5626_v10 }
 0x154   :  { %5627 = vrcp.f32 %v270_v11 }
 0x155   :  { %5629 = vrcp.f32 %v176_v14 }
 0x15e   :  { %v5628_v38 = vpop.eup %5627 }
 0x15f   :  { %v5630_v40 = vpop.eup %5629  ;;  %v456_v46 = vmul.f32 %v5628_v38, %v78_v39  ;;  %v1323_v38 = vld [vmem:[#allocation10 + $0xa8] sm:$0xff] }
 0x161   :  { %v356_v21 = vpop.f32.mrb[2].mxu0 }
 0x162   :  { %v360_v22 = vadd.f32 %v356_v21, %v84_v17  ;;  %v445_v27 = vpop.f32.mrb[2].mxu1  ;;  %v3826_v28 = vpop.f32.mrb[3].mxu0 }
 0x163   :  { %v449_v29 = vadd.f32 %v445_v27, %v85_v20  ;;  %v3861_v32 = vpop.f32.mrb[3].mxu1 }
 0x164   :  { %5631 = vtanh.f32 %v360_v22 }
 0x165   :  { %v3156_v35 = vmul.f32 -1.442695, %v449_v29 }
 0x167   :  { %5633 = vpow2.f32 %v3156_v35 }
 0x16e   :  { %v5632_v45 = vpop.eup %5631 }
 0x16f   :  { %v457_v47 = vmul.f32 %v5632_v45, %v5630_v40  ;;  %v1231_v40 = vld [vmem:[#allocation10 + $0x30] sm:$0xff]  ;;  %v1232_v45 = vld [vmem:[#allocation10 + $0x38] sm:$0xff] }
 0x171   :  { %v5634_v50 = vpop.eup %5633  ;;  %v6181_v53 = vadd.f32 %v457_v47, %v456_v46  ;;  %v1324_v46 = vld [vmem:[#allocation10 + $0xb0] sm:$0xff]  ;;  %v6324_v47 = vpack.c.bf16 %v1232_v45, %v1231_v40 }
 0x172   :  { %v453_v54 = vadd.f32 1.0, %v5634_v50  ;;  %v1325_v50 = vld [vmem:[#allocation10 + $0xb8] sm:$0xff] }
 0x173   :  { %5635 = vtanh.f32 %v6181_v53 }
 0x174   :  { %5637 = vrcp.f32 %v453_v54  ;;  %v1233_v54 = vld [vmem:[#allocation10 + $0x40] sm:$0xff] }
 0x17d   :  { %v5636_v57 = vpop.eup %5635 }
 0x17e   :  { %v5638_v58 = vpop.eup %5637 }
 0x17f   :  { %v460_v59 = vmul.f32 %v5638_v58, %v5636_v57  ;;  %v1234_v57 = vld [vmem:[#allocation10 + $0x48] sm:$0xff]  ;;  %v1326_v58 = vld [vmem:[#allocation10 + $0xc0] sm:$0xff] }
 0x181   :  { %3895 = vmatmul.mubr.f32.vlgmr.msra.gmra.mrb[4].mxu0 %v460_v59  ;;  %461 = vst [vmem:[#allocation12] sm:$0xff] %v460_v59  ;;  %3930 = vmatmul.mubr.f32.vlgmr.msra.gmra.mrb[4].mxu1 %v460_v59 }
 0x182   :  { %4988 = vmatpush3.bf16.msra.mxu0 %v6070_v55  ;;  %5012 = vmatpush3.bf16.msra.mxu1 %v6074_v56 }
 0x183   :  { %4989 = vmatprep.subr.bf16.mxu0 %v5901_v0  ;;  %5013 = vmatprep.subr.bf16.mxu1 %v5901_v0 }
 0x184   :  { %3964 = vmatprep.mubr.msk.f32.mxu0 %vm5902_vm0, %v5903_v1  ;;  %3999 = vmatprep.mubr.msk.f32.mxu1 %vm5902_vm0, %v5903_v1 }
 0x186   :  { %4991 = vmatpush3.bf16.msra.mxu0 %v6080_v61  ;;  %5015 = vmatpush3.bf16.msra.mxu1 %v6084_v62 }
 0x187   :  { %4992 = vmatprep.subr.bf16.mxu0 %v5901_v0  ;;  %5016 = vmatprep.subr.bf16.mxu1 %v5901_v0 }
 0x18a   :  { %4994 = vmatpush3.bf16.msra.mxu0 %v6092_v6  ;;  %5018 = vmatpush3.bf16.msra.mxu1 %v6096_v7 }
 0x18b   :  { %4995 = vmatprep.subr.bf16.mxu0 %v5901_v0  ;;  %5019 = vmatprep.subr.bf16.mxu1 %v5901_v0 }
 0x18e   :  { %4997 = vmatpush3.bf16.msra.mxu0 %v6100_v15  ;;  %5021 = vmatpush3.bf16.msra.mxu1 %v6104_v16 }
 0x18f   :  { %4998 = vmatprep.subr.bf16.mxu0 %v5901_v0  ;;  %5022 = vmatprep.subr.bf16.mxu1 %v5901_v0 }
 0x192   :  { %5000 = vmatpush3.bf16.msra.mxu0 %v6108_v23  ;;  %5024 = vmatpush3.bf16.msra.mxu1 %v6112_v26 }
 0x193   :  { %5001 = vmatprep.subr.bf16.mxu0 %v5901_v0  ;;  %5025 = vmatprep.subr.bf16.mxu1 %v5901_v0 }
 0x196   :  { %5003 = vmatpush3.bf16.msra.mxu0 %v6116_v33  ;;  %5027 = vmatpush3.bf16.msra.mxu1 %v6120_v34 }
 0x197   :  { %5004 = vmatprep.subr.bf16.mxu0 %v5901_v0  ;;  %5028 = vmatprep.subr.bf16.mxu1 %v5901_v0 }
 0x19a   :  { %5006 = vmatpush3.bf16.msra.mxu0 %v6124_v41  ;;  %5030 = vmatpush3.bf16.msra.mxu1 %v6128_v44 }
 0x19b   :  { %5007 = vmatprep.subr.bf16.mxu0 %v5901_v0  ;;  %5031 = vmatprep.subr.bf16.mxu1 %v5901_v0 }
 0x19e   :  { %5009 = vmatpush3.bf16.msra.mxu0 %v6132_v51  ;;  %5033 = vmatpush3.bf16.msra.mxu1 %v6136_v52 }
 0x19f   :  { %5034 = vmatprep.subr.bf16.mxu0 %v5901_v0  ;;  %5058 = vmatprep.subr.bf16.mxu1 %v5901_v0 }
 0x1a1   :  { %3965 = vmatmul.mubr.f32.vlgmr.msra.gmra.mrb[6].mxu0 %v460_v59  ;;  %4000 = vmatmul.mubr.f32.vlgmr.msra.gmra.mrb[6].mxu1 %v460_v59  ;;  %v6332_v59 = vpack.c.bf16 %v1234_v57, %v1233_v54 }
 0x1a2   :  { %5036 = vmatpush3.bf16.msra.mxu0 %v6007_v5  ;;  %5060 = vmatpush3.bf16.msra.mxu1 %v6009_v9 }
 0x1a3   :  { %5037 = vmatprep.subr.bf16.mxu0 %v5901_v0  ;;  %5061 = vmatprep.subr.bf16.mxu1 %v5901_v0 }
 0x1a4   :  { %4034 = vmatprep.mubr.msk.f32.mxu0 %vm5902_vm0, %v5903_v1  ;;  %4069 = vmatprep.mubr.msk.f32.mxu1 %vm5902_vm0, %v5903_v1 }
 0x1a6   :  { %5039 = vmatpush3.bf16.msra.mxu0 %v6012_v12  ;;  %5063 = vmatpush3.bf16.msra.mxu1 %v6016_v13 }
 0x1a7   :  { %5040 = vmatprep.subr.bf16.mxu0 %v5901_v0  ;;  %5064 = vmatprep.subr.bf16.mxu1 %v5901_v0 }
 0x1aa   :  { %5042 = vmatpush3.bf16.msra.mxu0 %v6020_v18  ;;  %5066 = vmatpush3.bf16.msra.mxu1 %v6024_v19  ;;  %v464_v18 = vld [vmem:[#allocation4 + $0x28] sm:$0xff]  ;;  %v463_v19 = vld [vmem:[#allocation4 + $0x20] sm:$0xff] }
 0x1ab   :  { %5043 = vmatprep.subr.bf16.mxu0 %v5901_v0  ;;  %5067 = vmatprep.subr.bf16.mxu1 %v5901_v0 }
 0x1ae   :  { %5045 = vmatpush3.bf16.msra.mxu0 %v6028_v24  ;;  %5069 = vmatpush3.bf16.msra.mxu1 %v6032_v25 }
 0x1af   :  { %5046 = vmatprep.subr.bf16.mxu0 %v5901_v0  ;;  %5070 = vmatprep.subr.bf16.mxu1 %v5901_v0 }
 0x1b2   :  { %5048 = vmatpush3.bf16.msra.mxu0 %v6036_v30  ;;  %5072 = vmatpush3.bf16.msra.mxu1 %v6040_v31 }
 0x1b3   :  { %5049 = vmatprep.subr.bf16.mxu0 %v5901_v0  ;;  %5073 = vmatprep.subr.bf16.mxu1 %v5901_v0 }
 0x1b6   :  { %5051 = vmatpush3.bf16.msra.mxu0 %v6044_v36  ;;  %5075 = vmatpush3.bf16.msra.mxu1 %v6048_v37 }
 0x1b7   :  { %5052 = vmatprep.subr.bf16.mxu0 %v5901_v0  ;;  %5076 = vmatprep.subr.bf16.mxu1 %v5901_v0 }
 0x1ba   :  { %5054 = vmatpush3.bf16.msra.mxu0 %v6052_v42  ;;  %5078 = vmatpush3.bf16.msra.mxu1 %v6056_v43 }
 0x1bb   :  { %5055 = vmatprep.subr.bf16.mxu0 %v5901_v0  ;;  %5079 = vmatprep.subr.bf16.mxu1 %v5901_v0 }
 0x1be   :  { %5057 = vmatpush3.bf16.msra.mxu0 %v6060_v48  ;;  %5081 = vmatpush3.bf16.msra.mxu1 %v6064_v49  ;;  %v465_v48 = vld [vmem:[#allocation4 + $0x30] sm:$0xff]  ;;  %v466_v49 = vld [vmem:[#allocation4 + $0x38] sm:$0xff] }
 0x1bf   :  { %5082 = vmatprep.subr.bf16.mxu0 %v5901_v0  ;;  %5106 = vmatprep.subr.bf16.mxu1 %v5901_v0 }
 0x254   :  { %v549_v5 = vpop.f32.mrb[4].mxu0  ;;  %v642_v9 = vpop.f32.mrb[4].mxu1 }
 0x255   :  { %v3896_v12 = vpop.f32.mrb[5].mxu0  ;;  %v3931_v13 = vpop.f32.mrb[5].mxu1  ;;  %v646_v24 = vadd.f32 %v642_v9, %v464_v18  ;;  %v553_v25 = vadd.f32 %v549_v5, %v463_v19  ;;  %v1327_v5 = vld [vmem:[#allocation10 + $0xc8] sm:$0xff]  ;;  %v1328_v18 = vld [vmem:[#allocation10 + $0xd0] sm:$0xff] }
 0x256   :  { %v6334_v9 = vpack.c.bf16 %v1327_v5, %v1326_v58  ;;  %v1235_v12 = vld [vmem:[#allocation10 + $0x50] sm:$0xff]  ;;  %v1236_v13 = vld [vmem:[#allocation10 + $0x58] sm:$0xff]  ;;  %v1411_v58 = vld [vmem:[#allocation10 + $0x100] sm:$0xff] }
 0x257   :  { %v3158_v30 = vmul.f32 -1.442695, %v646_v24  ;;  %v3157_v31 = vmul.f32 -1.442695, %v553_v25  ;;  %v6340_v19 = vpack.c.bf16 %v1236_v13, %v1235_v12  ;;  %v1329_v24 = vld [vmem:[#allocation10 + $0xd8] sm:$0xff]  ;;  %v1412_v5 = vld [vmem:[#allocation10 + $0x108] sm:$0xff] }
 0x258   :  { %v6342_v25 = vpack.c.bf16 %v1329_v24, %v1328_v18  ;;  %v1499_v12 = vld [vmem:[#allocation10 + $0x180] sm:$0xff]  ;;  %v1500_v13 = vld [vmem:[#allocation10 + $0x188] sm:$0xff] }
 0x259   :  { %5639 = vpow2.f32 %v3158_v30  ;;  %v1237_v30 = vld [vmem:[#allocation10 + $0x60] sm:$0xff] }
 0x25a   :  { %5641 = vpow2.f32 %v3157_v31  ;;  %v1238_v31 = vld [vmem:[#allocation10 + $0x68] sm:$0xff] }
 0x263   :  { %v5640_v36 = vpop.eup %5639 }
 0x264   :  { %v5642_v37 = vpop.eup %5641  ;;  %v650_v42 = vadd.f32 1.0, %v5640_v36  ;;  %v1330_v36 = vld [vmem:[#allocation10 + $0xe0] sm:$0xff] }
 0x265   :  { %v557_v43 = vadd.f32 1.0, %v5642_v37  ;;  %v6345_v37 = vpack.c.bf16 %v1238_v31, %v1237_v30  ;;  %v6368_v30 = vpack.c.bf16 %v1412_v5, %v1411_v58  ;;  %v6370_v31 = vpack.c.bf16 %v1500_v13, %v1499_v12  ;;  %v1425_v58 = vld [vmem:[#allocation10 + $0x170] sm:$0xff]  ;;  %v1426_v5 = vld [vmem:[#allocation10 + $0x178] sm:$0xff] }
 0x266   :  { %5643 = vrcp.f32 %v650_v42  ;;  %v1331_v42 = vld [vmem:[#allocation10 + $0xe8] sm:$0xff]  ;;  %v1513_v12 = vld [vmem:[#allocation10 + $0x1f0] sm:$0xff]  ;;  %v1514_v13 = vld [vmem:[#allocation10 + $0x1f8] sm:$0xff] }
 0x267   :  { %5645 = vrcp.f32 %v557_v43  ;;  %v6349_v43 = vpack.c.bf16 %v1331_v42, %v1330_v36  ;;  %v1413_v36 = vld [vmem:[#allocation10 + $0x110] sm:$0xff]  ;;  %v1414_v42 = vld [vmem:[#allocation10 + $0x118] sm:$0xff] }
 0x270   :  { %v5644_v11 = vpop.eup %5643 }
 0x271   :  { %v5646_v14 = vpop.eup %5645  ;;  %v834_v20 = vmul.f32 %v5644_v11, %v6181_v53  ;;  %v6326_v53 = vpack.c.bf16 %v1325_v50, %v1324_v46 }
 0x274   :  { %v735_v60 = vpop.f32.mrb[6].mxu0  ;;  %v823_v63 = vpop.f32.mrb[6].mxu1 }
 0x275   :  { %v739_v2 = vadd.f32 %v735_v60, %v465_v48  ;;  %v827_v3 = vadd.f32 %v823_v63, %v466_v49  ;;  %v3966_v4 = vpop.f32.mrb[7].mxu0  ;;  %v4001_v8 = vpop.f32.mrb[7].mxu1  ;;  %v1239_v48 = vld [vmem:[#allocation10 + $0x70] sm:$0xff]  ;;  %v1240_v49 = vld [vmem:[#allocation10 + $0x78] sm:$0xff] }
 0x276   :  { %v1332_v60 = vld [vmem:[#allocation10 + $0xf0] sm:$0xff]  ;;  %v1333_v63 = vld [vmem:[#allocation10 + $0xf8] sm:$0xff] }
 0x277   :  { %5647 = vtanh.f32 %v739_v2  ;;  %v3159_v10 = vmul.f32 -1.442695, %v827_v3  ;;  %v6353_v2 = vpack.c.bf16 %v1240_v49, %v1239_v48  ;;  %v6357_v3 = vpack.c.bf16 %v1333_v63, %v1332_v60  ;;  %v1501_v48 = vld [vmem:[#allocation10 + $0x190] sm:$0xff]  ;;  %v1502_v49 = vld [vmem:[#allocation10 + $0x198] sm:$0xff] }
 0x278   :  { %v6379_v60 = vpack.c.bf16 %v1414_v42, %v1413_v36  ;;  %v6381_v63 = vpack.c.bf16 %v1502_v49, %v1501_v48  ;;  %v1222_v49 = vld [vmem:[#allocation4 + $0x68] sm:$0xff] }
 0x279   :  { %5649 = vpow2.f32 %v3159_v10 }
 0x281   :  { %v5648_v17 = vpop.eup %5647 }
 0x282   :  { %v835_v21 = vmul.f32 %v5648_v17, %v5646_v14  ;;  %v843_v14 = vld [vmem:[#allocation4 + $0x48] sm:$0xff]  ;;  %v842_v17 = vld [vmem:[#allocation4 + $0x40] sm:$0xff] }
 0x283   :  { %v5650_v22 = vpop.eup %5649 }
 0x284   :  { %v6257_v27 = vadd.f32 %v835_v21, %v834_v20  ;;  %v831_v28 = vadd.f32 1.0, %v5650_v22 }
 0x286   :  { %5651 = vtanh.f32 %v6257_v27 }
 0x287   :  { %5653 = vrcp.f32 %v831_v28 }
 0x290   :  { %v5652_v29 = vpop.eup %5651 }
 0x291   :  { %v5654_v32 = vpop.eup %5653 }
 0x292   :  { %v838_v35 = vmul.f32 %v5654_v32, %v5652_v29 }
 0x294   :  { %4035 = vmatmul.mubr.f32.vlgmr.msra.gmra.mrb[8].mxu0 %v838_v35  ;;  %840 = vst [vmem:[#allocation12 + $0x8] sm:$0xff] %v838_v35  ;;  %4070 = vmatmul.mubr.f32.vlgmr.msra.gmra.mrb[8].mxu1 %v838_v35 }
 0x295   :  { %5084 = vmatpush3.bf16.msra.mxu0 %v6070_v55  ;;  %5108 = vmatpush3.bf16.msra.mxu1 %v6074_v56  ;;  %v1225_v55 = vld [vmem:[#allocation10] sm:$0xff]  ;;  %v1226_v56 = vld [vmem:[#allocation10 + $0x8] sm:$0xff] }
 0x296   :  { %5085 = vmatprep.subr.bf16.mxu0 %v5901_v0  ;;  %5109 = vmatprep.subr.bf16.mxu1 %v5901_v0 }
 0x297   :  { %4104 = vmatprep.mubr.msk.f32.mxu0 %vm5902_vm0, %v5903_v1  ;;  %4139 = vmatprep.mubr.msk.f32.mxu1 %vm5902_vm0, %v5903_v1 }
 0x299   :  { %5087 = vmatpush3.bf16.msra.mxu0 %v6080_v61  ;;  %5111 = vmatpush3.bf16.msra.mxu1 %v6084_v62  ;;  %v1318_v61 = vld [vmem:[#allocation10 + $0x80] sm:$0xff]  ;;  %v6300_v62 = vpack.c.bf16 %v1226_v56, %v1225_v55 }
 0x29a   :  { %5088 = vmatprep.subr.bf16.mxu0 %v5901_v0  ;;  %5112 = vmatprep.subr.bf16.mxu1 %v5901_v0  ;;  %v844_v56 = vld [vmem:[#allocation4 + $0x50] sm:$0xff] }
 0x29d   :  { %5090 = vmatpush3.bf16.msra.mxu0 %v6092_v6  ;;  %5114 = vmatpush3.bf16.msra.mxu1 %v6096_v7  ;;  %v1319_v6 = vld [vmem:[#allocation10 + $0x88] sm:$0xff] }
 0x29e   :  { %5091 = vmatprep.subr.bf16.mxu0 %v5901_v0  ;;  %5115 = vmatprep.subr.bf16.mxu1 %v5901_v0  ;;  %v6302_v7 = vpack.c.bf16 %v1319_v6, %v1318_v61  ;;  %v845_v61 = vld [vmem:[#allocation4 + $0x58] sm:$0xff] }
 0x2a1   :  { %5093 = vmatpush3.bf16.msra.mxu0 %v6100_v15  ;;  %5117 = vmatpush3.bf16.msra.mxu1 %v6104_v16  ;;  %v1227_v15 = vld [vmem:[#allocation10 + $0x10] sm:$0xff]  ;;  %v1228_v16 = vld [vmem:[#allocation10 + $0x18] sm:$0xff] }
 0x2a2   :  { %5094 = vmatprep.subr.bf16.mxu0 %v5901_v0  ;;  %5118 = vmatprep.subr.bf16.mxu1 %v5901_v0 }
 0x2a5   :  { %5096 = vmatpush3.bf16.msra.mxu0 %v6108_v23  ;;  %5120 = vmatpush3.bf16.msra.mxu1 %v6112_v26  ;;  %v1320_v23 = vld [vmem:[#allocation10 + $0x90] sm:$0xff]  ;;  %v6308_v26 = vpack.c.bf16 %v1228_v16, %v1227_v15 }
 0x2a6   :  { %5097 = vmatprep.subr.bf16.mxu0 %v5901_v0  ;;  %5121 = vmatprep.subr.bf16.mxu1 %v5901_v0 }
 0x2a9   :  { %5099 = vmatpush3.bf16.msra.mxu0 %v6116_v33  ;;  %5123 = vmatpush3.bf16.msra.mxu1 %v6120_v34  ;;  %v1321_v33 = vld [vmem:[#allocation10 + $0x98] sm:$0xff] }
 0x2aa   :  { %5100 = vmatprep.subr.bf16.mxu0 %v5901_v0  ;;  %5124 = vmatprep.subr.bf16.mxu1 %v5901_v0  ;;  %v6310_v34 = vpack.c.bf16 %v1321_v33, %v1320_v23 }
 0x2ad   :  { %5102 = vmatpush3.bf16.msra.mxu0 %v6124_v41  ;;  %5126 = vmatpush3.bf16.msra.mxu1 %v6128_v44  ;;  %v1229_v41 = vld [vmem:[#allocation10 + $0x20] sm:$0xff]  ;;  %v1230_v44 = vld [vmem:[#allocation10 + $0x28] sm:$0xff] }
 0x2ae   :  { %5103 = vmatprep.subr.bf16.mxu0 %v5901_v0  ;;  %5127 = vmatprep.subr.bf16.mxu1 %v5901_v0 }
 0x2b1   :  { %5105 = vmatpush3.bf16.msra.mxu0 %v6132_v51  ;;  %5129 = vmatpush3.bf16.msra.mxu1 %v6136_v52  ;;  %v1322_v51 = vld [vmem:[#allocation10 + $0xa0] sm:$0xff]  ;;  %v6316_v52 = vpack.c.bf16 %v1230_v44, %v1229_v41 }
 0x2b2   :  { %5130 = vmatprep.subr.bf16.mxu0 %v5901_v0  ;;  %5154 = vmatprep.subr.bf16.mxu1 %v5901_v0  ;;  %v6318_v39 = vpack.c.bf16 %v1323_v38, %v1322_v51 }
 0x2b4   :  { %4105 = vmatmul.mubr.f32.vlgmr.msra.gmra.mrb[10].mxu0 %v838_v35  ;;  %4140 = vmatmul.mubr.f32.vlgmr.msra.gmra.mrb[10].mxu1 %v838_v35 }
 0x2b5   :  { %4174 = vmatprep.mubr.msk.f32.mxu0 %vm5902_vm0, %v5903_v1  ;;  %4209 = vmatprep.mubr.msk.f32.mxu1 %vm5902_vm0, %v5903_v1 }
 0x2b6   :  { %5132 = vmatpush3.bf16.msra.mxu0 %v6300_v62  ;;  %5156 = vmatpush3.bf16.msra.mxu1 %v6302_v7 }
 0x2b7   :  { %5133 = vmatprep.subr.bf16.mxu0 %v5901_v0  ;;  %5157 = vmatprep.subr.bf16.mxu1 %v5901_v0 }
 0x2ba   :  { %5135 = vmatpush3.bf16.msra.mxu0 %v6308_v26  ;;  %5159 = vmatpush3.bf16.msra.mxu1 %v6310_v34 }
 0x2bb   :  { %5136 = vmatprep.subr.bf16.mxu0 %v5901_v0  ;;  %5160 = vmatprep.subr.bf16.mxu1 %v5901_v0 }
 0x2be   :  { %5138 = vmatpush3.bf16.msra.mxu0 %v6316_v52  ;;  %5162 = vmatpush3.bf16.msra.mxu1 %v6318_v39 }
 0x2bf   :  { %5139 = vmatprep.subr.bf16.mxu0 %v5901_v0  ;;  %5163 = vmatprep.subr.bf16.mxu1 %v5901_v0 }
 0x2c2   :  { %5141 = vmatpush3.bf16.msra.mxu0 %v6324_v47  ;;  %5165 = vmatpush3.bf16.msra.mxu1 %v6326_v53 }
 0x2c3   :  { %5142 = vmatprep.subr.bf16.mxu0 %v5901_v0  ;;  %5166 = vmatprep.subr.bf16.mxu1 %v5901_v0 }
 0x2c6   :  { %5144 = vmatpush3.bf16.msra.mxu0 %v6332_v59  ;;  %5168 = vmatpush3.bf16.msra.mxu1 %v6334_v9 }
 0x2c7   :  { %5145 = vmatprep.subr.bf16.mxu0 %v5901_v0  ;;  %5169 = vmatprep.subr.bf16.mxu1 %v5901_v0 }
 0x2ca   :  { %5147 = vmatpush3.bf16.msra.mxu0 %v6340_v19  ;;  %5171 = vmatpush3.bf16.msra.mxu1 %v6342_v25 }
 0x2cb   :  { %5148 = vmatprep.subr.bf16.mxu0 %v5901_v0  ;;  %5172 = vmatprep.subr.bf16.mxu1 %v5901_v0 }
 0x2ce   :  { %5150 = vmatpush3.bf16.msra.mxu0 %v6345_v37  ;;  %5174 = vmatpush3.bf16.msra.mxu1 %v6349_v43 }
 0x2cf   :  { %5151 = vmatprep.subr.bf16.mxu0 %v5901_v0  ;;  %5175 = vmatprep.subr.bf16.mxu1 %v5901_v0 }
 0x2d2   :  { %5153 = vmatpush3.bf16.msra.mxu0 %v6353_v2  ;;  %5177 = vmatpush3.bf16.msra.mxu1 %v6357_v3 }
 0x2d3   :  { %5178 = vmatprep.subr.bf16.mxu0 %v5901_v0  ;;  %5202 = vmatprep.subr.bf16.mxu1 %v5901_v0 }
 0x367   :  { %v928_v4 = vpop.f32.mrb[8].mxu0  ;;  %v1021_v8 = vpop.f32.mrb[8].mxu1 }
 0x368   :  { %v4036_v10 = vpop.f32.mrb[9].mxu0  ;;  %v4071_v11 = vpop.f32.mrb[9].mxu1  ;;  %v1025_v20 = vadd.f32 %v1021_v8, %v843_v14  ;;  %v932_v21 = vadd.f32 %v928_v4, %v842_v17  ;;  %v1415_v4 = vld [vmem:[#allocation10 + $0x120] sm:$0xff]  ;;  %v1416_v8 = vld [vmem:[#allocation10 + $0x128] sm:$0xff] }
 0x369   :  { %v1503_v10 = vld [vmem:[#allocation10 + $0x1a0] sm:$0xff]  ;;  %v1504_v11 = vld [vmem:[#allocation10 + $0x1a8] sm:$0xff]  ;;  %v6391_v14 = vpack.c.bf16 %v1416_v8, %v1415_v4  ;;  %v1221_v4 = vld [vmem:[#allocation4 + $0x60] sm:$0xff] }
 0x36a   :  { %v3161_v22 = vmul.f32 -1.442695, %v1025_v20  ;;  %v3160_v28 = vmul.f32 -1.442695, %v932_v21  ;;  %v6393_v17 = vpack.c.bf16 %v1504_v11, %v1503_v10  ;;  %v1417_v20 = vld [vmem:[#allocation10 + $0x130] sm:$0xff]  ;;  %v1418_v21 = vld [vmem:[#allocation10 + $0x138] sm:$0xff] }
 0x36c   :  { %5655 = vpow2.f32 %v3161_v22  ;;  %v1505_v22 = vld [vmem:[#allocation10 + $0x1b0] sm:$0xff] }
 0x36d   :  { %5657 = vpow2.f32 %v3160_v28  ;;  %v1506_v28 = vld [vmem:[#allocation10 + $0x1b8] sm:$0xff] }
 0x376   :  { %v5656_v29 = vpop.eup %5655 }
 0x377   :  { %v5658_v32 = vpop.eup %5657  ;;  %v1029_v35 = vadd.f32 1.0, %v5656_v29  ;;  %v6399_v29 = vpack.c.bf16 %v1418_v21, %v1417_v20 }
 0x378   :  { %v936_v55 = vadd.f32 1.0, %v5658_v32  ;;  %v6401_v32 = vpack.c.bf16 %v1506_v28, %v1505_v22 }
 0x379   :  { %5659 = vrcp.f32 %v1029_v35  ;;  %v1419_v35 = vld [vmem:[#allocation10 + $0x140] sm:$0xff] }
 0x37a   :  { %5661 = vrcp.f32 %v936_v55  ;;  %v1420_v55 = vld [vmem:[#allocation10 + $0x148] sm:$0xff] }
 0x383   :  { %v5660_v51 = vpop.eup %5659 }
 0x384   :  { %v5662_v38 = vpop.eup %5661  ;;  %v1213_v45 = vmul.f32 %v5660_v51, %v6257_v27 }
 0x387   :  { %v1114_v6 = vpop.f32.mrb[10].mxu0  ;;  %v1202_v15 = vpop.f32.mrb[10].mxu1 }
 0x388   :  { %v1118_v16 = vadd.f32 %v1114_v6, %v844_v56  ;;  %v1206_v23 = vadd.f32 %v1202_v15, %v845_v61  ;;  %v4106_v33 = vpop.f32.mrb[11].mxu0  ;;  %v4141_v41 = vpop.f32.mrb[11].mxu1  ;;  %v1507_v56 = vld [vmem:[#allocation10 + $0x1c0] sm:$0xff]  ;;  %v1508_v61 = vld [vmem:[#allocation10 + $0x1c8] sm:$0xff]  ;;  %v6407_v6 = vpack.c.bf16 %v1420_v55, %v1419_v35 }
 0x389   :  { %v6409_v15 = vpack.c.bf16 %v1508_v61, %v1507_v56  ;;  %v1509_v33 = vld [vmem:[#allocation10 + $0x1d0] sm:$0xff]  ;;  %v1510_v41 = vld [vmem:[#allocation10 + $0x1d8] sm:$0xff]  ;;  %v1223_v55 = vld [vmem:[#allocation4 + $0x70] sm:$0xff] }
 0x38a   :  { %5663 = vtanh.f32 %v1118_v16  ;;  %v3162_v44 = vmul.f32 -1.442695, %v1206_v23  ;;  %v1421_v16 = vld [vmem:[#allocation10 + $0x150] sm:$0xff]  ;;  %v1422_v23 = vld [vmem:[#allocation10 + $0x158] sm:$0xff]  ;;  %v6417_v51 = vpack.c.bf16 %v1510_v41, %v1509_v33  ;;  %v1224_v56 = vld [vmem:[#allocation4 + $0x78] sm:$0xff] }
 0x38c   :  { %5665 = vpow2.f32 %v3162_v44  ;;  %v6415_v44 = vpack.c.bf16 %v1422_v23, %v1421_v16 }
 0x394   :  { %v5664_v40 = vpop.eup %5663 }
 0x395   :  { %v1214_v46 = vmul.f32 %v5664_v40, %v5662_v38  ;;  %v1423_v38 = vld [vmem:[#allocation10 + $0x160] sm:$0xff]  ;;  %v1424_v40 = vld [vmem:[#allocation10 + $0x168] sm:$0xff] }
 0x396   :  { %v5666_v50 = vpop.eup %5665 }
 0x397   :  { %v6365_v54 = vadd.f32 %v1214_v46, %v1213_v45  ;;  %v1210_v57 = vadd.f32 1.0, %v5666_v50  ;;  %v1511_v45 = vld [vmem:[#allocation10 + $0x1e0] sm:$0xff]  ;;  %v1512_v46 = vld [vmem:[#allocation10 + $0x1e8] sm:$0xff]  ;;  %v6423_v50 = vpack.c.bf16 %v1424_v40, %v1423_v38 }
 0x399   :  { %5667 = vtanh.f32 %v6365_v54 }
 0x39a   :  { %5669 = vrcp.f32 %v1210_v57  ;;  %v6425_v57 = vpack.c.bf16 %v1512_v46, %v1511_v45 }
 0x3a3   :  { %v5668_v18 = vpop.eup %5667 }
 0x3a4   :  { %v5670_v24 = vpop.eup %5669 }
 0x3a5   :  { %v6372_v27 = vmul.f32 %v5670_v24, %v5668_v18  ;;  %v6431_v18 = vpack.c.bf16 %v1426_v5, %v1425_v58  ;;  %v6433_v24 = vpack.c.bf16 %v1514_v13, %v1513_v12 }
 0x3a7   :  { %4175 = vmatmul.mubr.f32.vlgmr.msra.gmra.mrb[12].mxu0 %v6372_v27  ;;  %1219 = vst [vmem:[#allocation12 + $0x10] sm:$0xff] %v6372_v27  ;;  %4210 = vmatmul.mubr.f32.vlgmr.msra.gmra.mrb[12].mxu1 %v6372_v27 }
 0x3a8   :  { %5180 = vmatpush3.bf16.msra.mxu0 %v6368_v30  ;;  %5204 = vmatpush3.bf16.msra.mxu1 %v6370_v31 }
 0x3a9   :  { %5181 = vmatprep.subr.bf16.mxu0 %v5901_v0  ;;  %5205 = vmatprep.subr.bf16.mxu1 %v5901_v0 }
 0x3aa   :  { %4244 = vmatprep.mubr.msk.f32.mxu0 %vm5902_vm0, %v5903_v1  ;;  %4279 = vmatprep.mubr.msk.f32.mxu1 %vm5902_vm0, %v5903_v1 }
 0x3ac   :  { %5183 = vmatpush3.bf16.msra.mxu0 %v6379_v60  ;;  %5207 = vmatpush3.bf16.msra.mxu1 %v6381_v63 }
 0x3ad   :  { %5184 = vmatprep.subr.bf16.mxu0 %v5901_v0  ;;  %5208 = vmatprep.subr.bf16.mxu1 %v5901_v0 }
 0x3b0   :  { %5186 = vmatpush3.bf16.msra.mxu0 %v6391_v14  ;;  %5210 = vmatpush3.bf16.msra.mxu1 %v6393_v17 }
 0x3b1   :  { %5187 = vmatprep.subr.bf16.mxu0 %v5901_v0  ;;  %5211 = vmatprep.subr.bf16.mxu1 %v5901_v0 }
 0x3b4   :  { %5189 = vmatpush3.bf16.msra.mxu0 %v6399_v29  ;;  %5213 = vmatpush3.bf16.msra.mxu1 %v6401_v32 }
 0x3b5   :  { %5190 = vmatprep.subr.bf16.mxu0 %v5901_v0  ;;  %5214 = vmatprep.subr.bf16.mxu1 %v5901_v0 }
 0x3b8   :  { %5192 = vmatpush3.bf16.msra.mxu0 %v6407_v6  ;;  %5216 = vmatpush3.bf16.msra.mxu1 %v6409_v15 }
 0x3b9   :  { %5193 = vmatprep.subr.bf16.mxu0 %v5901_v0  ;;  %5217 = vmatprep.subr.bf16.mxu1 %v5901_v0 }
 0x3bc   :  { %5195 = vmatpush3.bf16.msra.mxu0 %v6415_v44  ;;  %5219 = vmatpush3.bf16.msra.mxu1 %v6417_v51 }
 0x3bd   :  { %5196 = vmatprep.subr.bf16.mxu0 %v5901_v0  ;;  %5220 = vmatprep.subr.bf16.mxu1 %v5901_v0 }
 0x3c0   :  { %5198 = vmatpush3.bf16.msra.mxu0 %v6423_v50  ;;  %5222 = vmatpush3.bf16.msra.mxu1 %v6425_v57 }
 0x3c1   :  { %5199 = vmatprep.subr.bf16.mxu0 %v5901_v0  ;;  %5223 = vmatprep.subr.bf16.mxu1 %v5901_v0 }
 0x3c4   :  { %5201 = vmatpush3.bf16.msra.mxu0 %v6431_v18  ;;  %5225 = vmatpush3.bf16.msra.mxu1 %v6433_v24 }
 0x3c5   :  { %5226 = vmatprep.subr.bf16.mxu0 %v5901_v0  ;;  %5250 = vmatprep.subr.bf16.mxu1 %v5901_v0 }
 0x3c7   :  { %4245 = vmatmul.mubr.f32.vlgmr.msra.gmra.mrb[14].mxu0 %v6372_v27  ;;  %4280 = vmatmul.mubr.f32.vlgmr.msra.gmra.mrb[14].mxu1 %v6372_v27 }
 0x3c8   :  { %5228 = vmatpush3.bf16.msra.mxu0 %v6300_v62  ;;  %5252 = vmatpush3.bf16.msra.mxu1 %v6302_v7 }
 0x3c9   :  { %5229 = vmatprep.subr.bf16.mxu0 %v5901_v0  ;;  %5253 = vmatprep.subr.bf16.mxu1 %v5901_v0 }
 0x3ca   :  { %4314 = vmatprep.mubr.msk.f32.mxu0 %vm5902_vm0, %v5903_v1  ;;  %4349 = vmatprep.mubr.msk.f32.mxu1 %vm5902_vm0, %v5903_v1 }
 0x3cc   :  { %5231 = vmatpush3.bf16.msra.mxu0 %v6308_v26  ;;  %5255 = vmatpush3.bf16.msra.mxu1 %v6310_v34 }
 0x3cd   :  { %5232 = vmatprep.subr.bf16.mxu0 %v5901_v0  ;;  %5256 = vmatprep.subr.bf16.mxu1 %v5901_v0 }
 0x3d0   :  { %5234 = vmatpush3.bf16.msra.mxu0 %v6316_v52  ;;  %5258 = vmatpush3.bf16.msra.mxu1 %v6318_v39 }
 0x3d1   :  { %5235 = vmatprep.subr.bf16.mxu0 %v5901_v0  ;;  %5259 = vmatprep.subr.bf16.mxu1 %v5901_v0 }
 0x3d4   :  { %5237 = vmatpush3.bf16.msra.mxu0 %v6324_v47  ;;  %5261 = vmatpush3.bf16.msra.mxu1 %v6326_v53 }
 0x3d5   :  { %5238 = vmatprep.subr.bf16.mxu0 %v5901_v0  ;;  %5262 = vmatprep.subr.bf16.mxu1 %v5901_v0 }
 0x3d8   :  { %5240 = vmatpush3.bf16.msra.mxu0 %v6332_v59  ;;  %5264 = vmatpush3.bf16.msra.mxu1 %v6334_v9 }
 0x3d9   :  { %5241 = vmatprep.subr.bf16.mxu0 %v5901_v0  ;;  %5265 = vmatprep.subr.bf16.mxu1 %v5901_v0 }
 0x3dc   :  { %5243 = vmatpush3.bf16.msra.mxu0 %v6340_v19  ;;  %5267 = vmatpush3.bf16.msra.mxu1 %v6342_v25 }
 0x3dd   :  { %5244 = vmatprep.subr.bf16.mxu0 %v5901_v0  ;;  %5268 = vmatprep.subr.bf16.mxu1 %v5901_v0 }
 0x3e0   :  { %5246 = vmatpush3.bf16.msra.mxu0 %v6345_v37  ;;  %5270 = vmatpush3.bf16.msra.mxu1 %v6349_v43 }
 0x3e1   :  { %5247 = vmatprep.subr.bf16.mxu0 %v5901_v0  ;;  %5271 = vmatprep.subr.bf16.mxu1 %v5901_v0 }
 0x3e4   :  { %5249 = vmatpush3.bf16.msra.mxu0 %v6353_v2  ;;  %5273 = vmatpush3.bf16.msra.mxu1 %v6357_v3 }
 0x3e5   :  { %5274 = vmatprep.subr.bf16.mxu0 %v5901_v0  ;;  %5298 = vmatprep.subr.bf16.mxu1 %v5901_v0 }
 0x47a   :  { %v1307_v36 = vpop.f32.mrb[12].mxu0  ;;  %v1400_v27 = vpop.f32.mrb[12].mxu1 }
 0x47b   :  { %v4176_v42 = vpop.f32.mrb[13].mxu0  ;;  %v4211_v48 = vpop.f32.mrb[13].mxu1  ;;  %v1404_v8 = vadd.f32 %v1400_v27, %v1222_v49  ;;  %v1311_v10 = vadd.f32 %v1307_v36, %v1221_v4 }
 0x47d   :  { %v3164_v11 = vmul.f32 -1.442695, %v1404_v8  ;;  %v3163_v20 = vmul.f32 -1.442695, %v1311_v10 }
 0x47f   :  { %5671 = vpow2.f32 %v3164_v11 }
 0x480   :  { %5673 = vpow2.f32 %v3163_v20 }
 0x489   :  { %v5672_v21 = vpop.eup %5671 }
 0x48a   :  { %v5674_v22 = vpop.eup %5673  ;;  %v1408_v28 = vadd.f32 1.0, %v5672_v21 }
 0x48b   :  { %v1315_v35 = vadd.f32 1.0, %v5674_v22 }
 0x48c   :  { %5675 = vrcp.f32 %v1408_v28 }
 0x48d   :  { %5677 = vrcp.f32 %v1315_v35 }
 0x496   :  { %v5676_v45 = vpop.eup %5675 }
 0x497   :  { %v5678_v46 = vpop.eup %5677  ;;  %v1592_v5 = vmul.f32 %v5676_v45, %v6365_v54 }
 0x49a   :  { %v1493_v61 = vpop.f32.mrb[14].mxu0  ;;  %v1581_v16 = vpop.f32.mrb[14].mxu1 }
 0x49b   :  { %v1497_v23 = vadd.f32 %v1493_v61, %v1223_v55  ;;  %v1585_v33 = vadd.f32 %v1581_v16, %v1224_v56  ;;  %v4246_v41 = vpop.f32.mrb[15].mxu0  ;;  %v4281_v38 = vpop.f32.mrb[15].mxu1 }
 0x49d   :  { %5679 = vtanh.f32 %v1497_v23  ;;  %v3165_v40 = vmul.f32 -1.442695, %v1585_v33 }
 0x49f   :  { %5681 = vpow2.f32 %v3165_v40  ;;  %v2460_v40 = vld [vmem:[#allocation10 + $0xa8] sm:$0xff] }
 0x4a7   :  { %v5680_v58 = vpop.eup %5679 }
 0x4a8   :  { %v1593_v12 = vmul.f32 %v5680_v58, %v5678_v46  ;;  %v2368_v46 = vld [vmem:[#allocation10 + $0x30] sm:$0xff]  ;;  %v2369_v58 = vld [vmem:[#allocation10 + $0x38] sm:$0xff] }
 0x4a9   :  { %v5682_v13 = vpop.eup %5681 }
 0x4aa   :  { %v6480_v36 = vadd.f32 %v1593_v12, %v1592_v5  ;;  %v1589_v27 = vadd.f32 1.0, %v5682_v13  ;;  %v2461_v5 = vld [vmem:[#allocation10 + $0xb0] sm:$0xff]  ;;  %v6623_v12 = vpack.c.bf16 %v2369_v58, %v2368_v46  ;;  %v2462_v13 = vld [vmem:[#allocation10 + $0xb8] sm:$0xff] }
 0x4ac   :  { %5683 = vtanh.f32 %v6480_v36 }
 0x4ad   :  { %5685 = vrcp.f32 %v1589_v27  ;;  %v2370_v27 = vld [vmem:[#allocation10 + $0x40] sm:$0xff] }
 0x4b6   :  { %v5684_v42 = vpop.eup %5683 }
 0x4b7   :  { %v5686_v48 = vpop.eup %5685 }
 0x4b8   :  { %v1596_v49 = vmul.f32 %v5686_v48, %v5684_v42  ;;  %v2371_v42 = vld [vmem:[#allocation10 + $0x48] sm:$0xff]  ;;  %v2463_v48 = vld [vmem:[#allocation10 + $0xc0] sm:$0xff] }
 0x4ba   :  { %4315 = vmatmul.mubr.f32.vlgmr.msra.gmra.mrb[16].mxu0 %v1596_v49  ;;  %1598 = vst [vmem:[#allocation12 + $0x18] sm:$0xff] %v1596_v49  ;;  %4350 = vmatmul.mubr.f32.vlgmr.msra.gmra.mrb[16].mxu1 %v1596_v49 }
 0x4bb   :  { %5276 = vmatpush3.bf16.msra.mxu0 %v6368_v30  ;;  %5300 = vmatpush3.bf16.msra.mxu1 %v6370_v31 }
 0x4bc   :  { %5277 = vmatprep.subr.bf16.mxu0 %v5901_v0  ;;  %5301 = vmatprep.subr.bf16.mxu1 %v5901_v0 }
 0x4bd   :  { %4384 = vmatprep.mubr.msk.f32.mxu0 %vm5902_vm0, %v5903_v1  ;;  %4419 = vmatprep.mubr.msk.f32.mxu1 %vm5902_vm0, %v5903_v1 }
 0x4bf   :  { %5279 = vmatpush3.bf16.msra.mxu0 %v6379_v60  ;;  %5303 = vmatpush3.bf16.msra.mxu1 %v6381_v63 }
 0x4c0   :  { %5280 = vmatprep.subr.bf16.mxu0 %v5901_v0  ;;  %5304 = vmatprep.subr.bf16.mxu1 %v5901_v0 }
 0x4c3   :  { %5282 = vmatpush3.bf16.msra.mxu0 %v6391_v14  ;;  %5306 = vmatpush3.bf16.msra.mxu1 %v6393_v17 }
 0x4c4   :  { %5283 = vmatprep.subr.bf16.mxu0 %v5901_v0  ;;  %5307 = vmatprep.subr.bf16.mxu1 %v5901_v0 }
 0x4c7   :  { %5285 = vmatpush3.bf16.msra.mxu0 %v6399_v29  ;;  %5309 = vmatpush3.bf16.msra.mxu1 %v6401_v32 }
 0x4c8   :  { %5286 = vmatprep.subr.bf16.mxu0 %v5901_v0  ;;  %5310 = vmatprep.subr.bf16.mxu1 %v5901_v0 }
 0x4cb   :  { %5288 = vmatpush3.bf16.msra.mxu0 %v6407_v6  ;;  %5312 = vmatpush3.bf16.msra.mxu1 %v6409_v15 }
 0x4cc   :  { %5289 = vmatprep.subr.bf16.mxu0 %v5901_v0  ;;  %5313 = vmatprep.subr.bf16.mxu1 %v5901_v0 }
 0x4cf   :  { %5291 = vmatpush3.bf16.msra.mxu0 %v6415_v44  ;;  %5315 = vmatpush3.bf16.msra.mxu1 %v6417_v51 }
 0x4d0   :  { %5292 = vmatprep.subr.bf16.mxu0 %v5901_v0  ;;  %5316 = vmatprep.subr.bf16.mxu1 %v5901_v0 }
 0x4d3   :  { %5294 = vmatpush3.bf16.msra.mxu0 %v6423_v50  ;;  %5318 = vmatpush3.bf16.msra.mxu1 %v6425_v57 }
 0x4d4   :  { %5295 = vmatprep.subr.bf16.mxu0 %v5901_v0  ;;  %5319 = vmatprep.subr.bf16.mxu1 %v5901_v0 }
 0x4d7   :  { %5297 = vmatpush3.bf16.msra.mxu0 %v6431_v18  ;;  %5321 = vmatpush3.bf16.msra.mxu1 %v6433_v24 }
 0x4d8   :  { %5322 = vmatprep.subr.bf16.mxu0 %v5901_v0  ;;  %5346 = vmatprep.subr.bf16.mxu1 %v5901_v0 }
 0x4da   :  { %4385 = vmatmul.mubr.f32.vlgmr.msra.gmra.mrb[18].mxu0 %v1596_v49  ;;  %4420 = vmatmul.mubr.f32.vlgmr.msra.gmra.mrb[18].mxu1 %v1596_v49  ;;  %v6631_v49 = vpack.c.bf16 %v2371_v42, %v2370_v27 }
 0x4db   :  { %5324 = vmatpush3.bf16.msra.mxu0 %v6300_v62  ;;  %5348 = vmatpush3.bf16.msra.mxu1 %v6302_v7 }
 0x4dc   :  { %5325 = vmatprep.subr.bf16.mxu0 %v5901_v0  ;;  %5349 = vmatprep.subr.bf16.mxu1 %v5901_v0 }
 0x4dd   :  { %4454 = vmatprep.mubr.msk.f32.mxu0 %vm5902_vm0, %v5903_v1  ;;  %4489 = vmatprep.mubr.msk.f32.mxu1 %vm5902_vm0, %v5903_v1 }
 0x4df   :  { %5327 = vmatpush3.bf16.msra.mxu0 %v6308_v26  ;;  %5351 = vmatpush3.bf16.msra.mxu1 %v6310_v34 }
 0x4e0   :  { %5328 = vmatprep.subr.bf16.mxu0 %v5901_v0  ;;  %5352 = vmatprep.subr.bf16.mxu1 %v5901_v0 }
 0x4e3   :  { %5330 = vmatpush3.bf16.msra.mxu0 %v6316_v52  ;;  %5354 = vmatpush3.bf16.msra.mxu1 %v6318_v39  ;;  %v1601_v52 = vld [vmem:[#allocation4 + $0x88] sm:$0xff]  ;;  %v1600_v39 = vld [vmem:[#allocation4 + $0x80] sm:$0xff] }
 0x4e4   :  { %5331 = vmatprep.subr.bf16.mxu0 %v5901_v0  ;;  %5355 = vmatprep.subr.bf16.mxu1 %v5901_v0 }
 0x4e7   :  { %5333 = vmatpush3.bf16.msra.mxu0 %v6324_v47  ;;  %5357 = vmatpush3.bf16.msra.mxu1 %v6326_v53 }
 0x4e8   :  { %5334 = vmatprep.subr.bf16.mxu0 %v5901_v0  ;;  %5358 = vmatprep.subr.bf16.mxu1 %v5901_v0 }
 0x4eb   :  { %5336 = vmatpush3.bf16.msra.mxu0 %v6332_v59  ;;  %5360 = vmatpush3.bf16.msra.mxu1 %v6334_v9 }
 0x4ec   :  { %5337 = vmatprep.subr.bf16.mxu0 %v5901_v0  ;;  %5361 = vmatprep.subr.bf16.mxu1 %v5901_v0 }
 0x4ef   :  { %5339 = vmatpush3.bf16.msra.mxu0 %v6340_v19  ;;  %5363 = vmatpush3.bf16.msra.mxu1 %v6342_v25 }
 0x4f0   :  { %5340 = vmatprep.subr.bf16.mxu0 %v5901_v0  ;;  %5364 = vmatprep.subr.bf16.mxu1 %v5901_v0 }
 0x4f3   :  { %5342 = vmatpush3.bf16.msra.mxu0 %v6345_v37  ;;  %5366 = vmatpush3.bf16.msra.mxu1 %v6349_v43 }
 0x4f4   :  { %5343 = vmatprep.subr.bf16.mxu0 %v5901_v0  ;;  %5367 = vmatprep.subr.bf16.mxu1 %v5901_v0 }
 0x4f7   :  { %5345 = vmatpush3.bf16.msra.mxu0 %v6353_v2  ;;  %5369 = vmatpush3.bf16.msra.mxu1 %v6357_v3  ;;  %v1602_v2 = vld [vmem:[#allocation4 + $0x90] sm:$0xff]  ;;  %v1603_v3 = vld [vmem:[#allocation4 + $0x98] sm:$0xff] }
 0x4f8   :  { %5370 = vmatprep.subr.bf16.mxu0 %v5901_v0  ;;  %5394 = vmatprep.subr.bf16.mxu1 %v5901_v0 }
 0x58d   :  { %v1686_v62 = vpop.f32.mrb[16].mxu0  ;;  %v1779_v7 = vpop.f32.mrb[16].mxu1 }
 0x58e   :  { %v4316_v26 = vpop.f32.mrb[17].mxu0  ;;  %v4351_v34 = vpop.f32.mrb[17].mxu1  ;;  %v1783_v47 = vadd.f32 %v1779_v7, %v1601_v52  ;;  %v1690_v53 = vadd.f32 %v1686_v62, %v1600_v39  ;;  %v2464_v62 = vld [vmem:[#allocation10 + $0xc8] sm:$0xff]  ;;  %v2465_v52 = vld [vmem:[#allocation10 + $0xd0] sm:$0xff] }
 0x58f   :  { %v6633_v7 = vpack.c.bf16 %v2464_v62, %v2463_v48  ;;  %v2372_v26 = vld [vmem:[#allocation10 + $0x50] sm:$0xff]  ;;  %v2373_v34 = vld [vmem:[#allocation10 + $0x58] sm:$0xff]  ;;  %v2548_v48 = vld [vmem:[#allocation10 + $0x100] sm:$0xff] }
 0x590   :  { %v3167_v59 = vmul.f32 -1.442695, %v1783_v47  ;;  %v3166_v9 = vmul.f32 -1.442695, %v1690_v53  ;;  %v6639_v39 = vpack.c.bf16 %v2373_v34, %v2372_v26  ;;  %v2466_v47 = vld [vmem:[#allocation10 + $0xd8] sm:$0xff]  ;;  %v2549_v62 = vld [vmem:[#allocation10 + $0x108] sm:$0xff] }
 0x591   :  { %v6641_v53 = vpack.c.bf16 %v2466_v47, %v2465_v52  ;;  %v2636_v26 = vld [vmem:[#allocation10 + $0x180] sm:$0xff]  ;;  %v2637_v34 = vld [vmem:[#allocation10 + $0x188] sm:$0xff] }
 0x592   :  { %5687 = vpow2.f32 %v3167_v59  ;;  %v2374_v59 = vld [vmem:[#allocation10 + $0x60] sm:$0xff] }
 0x593   :  { %5689 = vpow2.f32 %v3166_v9  ;;  %v2375_v9 = vld [vmem:[#allocation10 + $0x68] sm:$0xff] }
 0x59c   :  { %v5688_v19 = vpop.eup %5687 }
 0x59d   :  { %v5690_v25 = vpop.eup %5689  ;;  %v1787_v37 = vadd.f32 1.0, %v5688_v19  ;;  %v2467_v19 = vld [vmem:[#allocation10 + $0xe0] sm:$0xff] }
 0x59e   :  { %v1694_v43 = vadd.f32 1.0, %v5690_v25  ;;  %v6644_v25 = vpack.c.bf16 %v2375_v9, %v2374_v59  ;;  %v6667_v59 = vpack.c.bf16 %v2549_v62, %v2548_v48  ;;  %v6669_v9 = vpack.c.bf16 %v2637_v34, %v2636_v26  ;;  %v2562_v48 = vld [vmem:[#allocation10 + $0x170] sm:$0xff]  ;;  %v2563_v62 = vld [vmem:[#allocation10 + $0x178] sm:$0xff] }
 0x59f   :  { %5691 = vrcp.f32 %v1787_v37  ;;  %v2468_v37 = vld [vmem:[#allocation10 + $0xe8] sm:$0xff]  ;;  %v2650_v26 = vld [vmem:[#allocation10 + $0x1f0] sm:$0xff]  ;;  %v2651_v34 = vld [vmem:[#allocation10 + $0x1f8] sm:$0xff] }
 0x5a0   :  { %5693 = vrcp.f32 %v1694_v43  ;;  %v6648_v43 = vpack.c.bf16 %v2468_v37, %v2467_v19  ;;  %v2550_v19 = vld [vmem:[#allocation10 + $0x110] sm:$0xff]  ;;  %v2551_v37 = vld [vmem:[#allocation10 + $0x118] sm:$0xff] }
 0x5a9   :  { %v5692_v22 = vpop.eup %5691 }
 0x5aa   :  { %v5694_v28 = vpop.eup %5693  ;;  %v1971_v55 = vmul.f32 %v5692_v22, %v6480_v36  ;;  %v6625_v36 = vpack.c.bf16 %v2462_v13, %v2461_v5 }
 0x5ad   :  { %v1872_v54 = vpop.f32.mrb[18].mxu0  ;;  %v1960_v4 = vpop.f32.mrb[18].mxu1 }
 0x5ae   :  { %v1876_v8 = vadd.f32 %v1872_v54, %v1602_v2  ;;  %v1964_v10 = vadd.f32 %v1960_v4, %v1603_v3  ;;  %v4386_v11 = vpop.f32.mrb[19].mxu0  ;;  %v4421_v20 = vpop.f32.mrb[19].mxu1  ;;  %v2376_v2 = vld [vmem:[#allocation10 + $0x70] sm:$0xff]  ;;  %v2377_v3 = vld [vmem:[#allocation10 + $0x78] sm:$0xff] }
 0x5af   :  { %v2469_v54 = vld [vmem:[#allocation10 + $0xf0] sm:$0xff]  ;;  %v2470_v4 = vld [vmem:[#allocation10 + $0xf8] sm:$0xff] }
 0x5b0   :  { %5695 = vtanh.f32 %v1876_v8  ;;  %v3168_v21 = vmul.f32 -1.442695, %v1964_v10  ;;  %v6652_v8 = vpack.c.bf16 %v2377_v3, %v2376_v2  ;;  %v6656_v10 = vpack.c.bf16 %v2470_v4, %v2469_v54  ;;  %v2638_v2 = vld [vmem:[#allocation10 + $0x190] sm:$0xff]  ;;  %v2639_v3 = vld [vmem:[#allocation10 + $0x198] sm:$0xff] }
 0x5b1   :  { %v6678_v54 = vpack.c.bf16 %v2551_v37, %v2550_v19  ;;  %v6680_v4 = vpack.c.bf16 %v2639_v3, %v2638_v2 }
 0x5b2   :  { %5697 = vpow2.f32 %v3168_v21 }
 0x5ba   :  { %v5696_v35 = vpop.eup %5695 }
 0x5bb   :  { %v1972_v56 = vmul.f32 %v5696_v35, %v5694_v28  ;;  %v1980_v28 = vld [vmem:[#allocation4 + $0xa8] sm:$0xff]  ;;  %v1979_v35 = vld [vmem:[#allocation4 + $0xa0] sm:$0xff] }
 0x5bc   :  { %v5698_v61 = vpop.eup %5697 }
 0x5bd   :  { %v6556_v16 = vadd.f32 %v1972_v56, %v1971_v55  ;;  %v1968_v23 = vadd.f32 1.0, %v5698_v61 }
 0x5bf   :  { %5699 = vtanh.f32 %v6556_v16 }
 0x5c0   :  { %5701 = vrcp.f32 %v1968_v23 }
 0x5c9   :  { %v5700_v33 = vpop.eup %5699 }
 0x5ca   :  { %v5702_v41 = vpop.eup %5701 }
 0x5cb   :  { %v1975_v38 = vmul.f32 %v5702_v41, %v5700_v33 }
 0x5cd   :  { %4455 = vmatmul.mubr.f32.vlgmr.msra.gmra.mrb[20].mxu0 %v1975_v38  ;;  %1977 = vst [vmem:[#allocation12 + $0x20] sm:$0xff] %v1975_v38  ;;  %4490 = vmatmul.mubr.f32.vlgmr.msra.gmra.mrb[20].mxu1 %v1975_v38 }
 0x5ce   :  { %5372 = vmatpush3.bf16.msra.mxu0 %v6368_v30  ;;  %5396 = vmatpush3.bf16.msra.mxu1 %v6370_v31  ;;  %v2362_v30 = vld [vmem:[#allocation10] sm:$0xff]  ;;  %v2363_v31 = vld [vmem:[#allocation10 + $0x8] sm:$0xff] }
 0x5cf   :  { %5373 = vmatprep.subr.bf16.mxu0 %v5901_v0  ;;  %5397 = vmatprep.subr.bf16.mxu1 %v5901_v0 }
 0x5d0   :  { %4524 = vmatprep.mubr.msk.f32.mxu0 %vm5902_vm0, %v5903_v1  ;;  %4559 = vmatprep.mubr.msk.f32.mxu1 %vm5902_vm0, %v5903_v1 }
 0x5d2   :  { %5375 = vmatpush3.bf16.msra.mxu0 %v6379_v60  ;;  %5399 = vmatpush3.bf16.msra.mxu1 %v6381_v63  ;;  %v2455_v60 = vld [vmem:[#allocation10 + $0x80] sm:$0xff]  ;;  %v6599_v63 = vpack.c.bf16 %v2363_v31, %v2362_v30 }
 0x5d3   :  { %5376 = vmatprep.subr.bf16.mxu0 %v5901_v0  ;;  %5400 = vmatprep.subr.bf16.mxu1 %v5901_v0  ;;  %v1981_v31 = vld [vmem:[#allocation4 + $0xb0] sm:$0xff] }
 0x5d6   :  { %5378 = vmatpush3.bf16.msra.mxu0 %v6391_v14  ;;  %5402 = vmatpush3.bf16.msra.mxu1 %v6393_v17  ;;  %v2456_v14 = vld [vmem:[#allocation10 + $0x88] sm:$0xff] }
 0x5d7   :  { %5379 = vmatprep.subr.bf16.mxu0 %v5901_v0  ;;  %5403 = vmatprep.subr.bf16.mxu1 %v5901_v0  ;;  %v6601_v17 = vpack.c.bf16 %v2456_v14, %v2455_v60  ;;  %v1982_v60 = vld [vmem:[#allocation4 + $0xb8] sm:$0xff] }
 0x5da   :  { %5381 = vmatpush3.bf16.msra.mxu0 %v6399_v29  ;;  %5405 = vmatpush3.bf16.msra.mxu1 %v6401_v32  ;;  %v2364_v29 = vld [vmem:[#allocation10 + $0x10] sm:$0xff]  ;;  %v2365_v32 = vld [vmem:[#allocation10 + $0x18] sm:$0xff] }
 0x5db   :  { %5382 = vmatprep.subr.bf16.mxu0 %v5901_v0  ;;  %5406 = vmatprep.subr.bf16.mxu1 %v5901_v0 }
 0x5de   :  { %5384 = vmatpush3.bf16.msra.mxu0 %v6407_v6  ;;  %5408 = vmatpush3.bf16.msra.mxu1 %v6409_v15  ;;  %v2457_v6 = vld [vmem:[#allocation10 + $0x90] sm:$0xff]  ;;  %v6607_v15 = vpack.c.bf16 %v2365_v32, %v2364_v29 }
 0x5df   :  { %5385 = vmatprep.subr.bf16.mxu0 %v5901_v0  ;;  %5409 = vmatprep.subr.bf16.mxu1 %v5901_v0 }
 0x5e2   :  { %5387 = vmatpush3.bf16.msra.mxu0 %v6415_v44  ;;  %5411 = vmatpush3.bf16.msra.mxu1 %v6417_v51  ;;  %v2458_v44 = vld [vmem:[#allocation10 + $0x98] sm:$0xff] }
 0x5e3   :  { %5388 = vmatprep.subr.bf16.mxu0 %v5901_v0  ;;  %5412 = vmatprep.subr.bf16.mxu1 %v5901_v0  ;;  %v6609_v51 = vpack.c.bf16 %v2458_v44, %v2457_v6 }
 0x5e6   :  { %5390 = vmatpush3.bf16.msra.mxu0 %v6423_v50  ;;  %5414 = vmatpush3.bf16.msra.mxu1 %v6425_v57  ;;  %v2366_v50 = vld [vmem:[#allocation10 + $0x20] sm:$0xff]  ;;  %v2367_v57 = vld [vmem:[#allocation10 + $0x28] sm:$0xff] }
 0x5e7   :  { %5391 = vmatprep.subr.bf16.mxu0 %v5901_v0  ;;  %5415 = vmatprep.subr.bf16.mxu1 %v5901_v0 }
 0x5ea   :  { %5393 = vmatpush3.bf16.msra.mxu0 %v6431_v18  ;;  %5417 = vmatpush3.bf16.msra.mxu1 %v6433_v24  ;;  %v2459_v18 = vld [vmem:[#allocation10 + $0xa0] sm:$0xff]  ;;  %v6615_v24 = vpack.c.bf16 %v2367_v57, %v2366_v50 }
 0x5eb   :  { %5418 = vmatprep.subr.bf16.mxu0 %v5901_v0  ;;  %5442 = vmatprep.subr.bf16.mxu1 %v5901_v0  ;;  %v6617_v45 = vpack.c.bf16 %v2460_v40, %v2459_v18 }
 0x5ed   :  { %4525 = vmatmul.mubr.f32.vlgmr.msra.gmra.mrb[22].mxu0 %v1975_v38  ;;  %4560 = vmatmul.mubr.f32.vlgmr.msra.gmra.mrb[22].mxu1 %v1975_v38 }
 0x5ee   :  { %4594 = vmatprep.mubr.msk.f32.mxu0 %vm5902_vm0, %v5903_v1  ;;  %4629 = vmatprep.mubr.msk.f32.mxu1 %vm5902_vm0, %v5903_v1 }
 0x5ef   :  { %5420 = vmatpush3.bf16.msra.mxu0 %v6599_v63  ;;  %5444 = vmatpush3.bf16.msra.mxu1 %v6601_v17 }
 0x5f0   :  { %5421 = vmatprep.subr.bf16.mxu0 %v5901_v0  ;;  %5445 = vmatprep.subr.bf16.mxu1 %v5901_v0 }
 0x5f3   :  { %5423 = vmatpush3.bf16.msra.mxu0 %v6607_v15  ;;  %5447 = vmatpush3.bf16.msra.mxu1 %v6609_v51 }
 0x5f4   :  { %5424 = vmatprep.subr.bf16.mxu0 %v5901_v0  ;;  %5448 = vmatprep.subr.bf16.mxu1 %v5901_v0 }
 0x5f7   :  { %5426 = vmatpush3.bf16.msra.mxu0 %v6615_v24  ;;  %5450 = vmatpush3.bf16.msra.mxu1 %v6617_v45 }
 0x5f8   :  { %5427 = vmatprep.subr.bf16.mxu0 %v5901_v0  ;;  %5451 = vmatprep.subr.bf16.mxu1 %v5901_v0 }
 0x5fb   :  { %5429 = vmatpush3.bf16.msra.mxu0 %v6623_v12  ;;  %5453 = vmatpush3.bf16.msra.mxu1 %v6625_v36 }
 0x5fc   :  { %5430 = vmatprep.subr.bf16.mxu0 %v5901_v0  ;;  %5454 = vmatprep.subr.bf16.mxu1 %v5901_v0 }
 0x5ff   :  { %5432 = vmatpush3.bf16.msra.mxu0 %v6631_v49  ;;  %5456 = vmatpush3.bf16.msra.mxu1 %v6633_v7 }
 0x600   :  { %5433 = vmatprep.subr.bf16.mxu0 %v5901_v0  ;;  %5457 = vmatprep.subr.bf16.mxu1 %v5901_v0 }
 0x603   :  { %5435 = vmatpush3.bf16.msra.mxu0 %v6639_v39  ;;  %5459 = vmatpush3.bf16.msra.mxu1 %v6641_v53 }
 0x604   :  { %5436 = vmatprep.subr.bf16.mxu0 %v5901_v0  ;;  %5460 = vmatprep.subr.bf16.mxu1 %v5901_v0 }
 0x607   :  { %5438 = vmatpush3.bf16.msra.mxu0 %v6644_v25  ;;  %5462 = vmatpush3.bf16.msra.mxu1 %v6648_v43 }
 0x608   :  { %5439 = vmatprep.subr.bf16.mxu0 %v5901_v0  ;;  %5463 = vmatprep.subr.bf16.mxu1 %v5901_v0 }
 0x60b   :  { %5441 = vmatpush3.bf16.msra.mxu0 %v6652_v8  ;;  %5465 = vmatpush3.bf16.msra.mxu1 %v6656_v10 }
 0x60c   :  { %5466 = vmatprep.subr.bf16.mxu0 %v5901_v0  ;;  %5490 = vmatprep.subr.bf16.mxu1 %v5901_v0 }
 0x6a0   :  { %v2065_v11 = vpop.f32.mrb[20].mxu0  ;;  %v2158_v20 = vpop.f32.mrb[20].mxu1 }
 0x6a1   :  { %v4456_v21 = vpop.f32.mrb[21].mxu0  ;;  %v4491_v22 = vpop.f32.mrb[21].mxu1  ;;  %v2162_v55 = vadd.f32 %v2158_v20, %v1980_v28  ;;  %v2069_v56 = vadd.f32 %v2065_v11, %v1979_v35  ;;  %v2552_v11 = vld [vmem:[#allocation10 + $0x120] sm:$0xff]  ;;  %v2553_v20 = vld [vmem:[#allocation10 + $0x128] sm:$0xff] }
 0x6a2   :  { %v2640_v21 = vld [vmem:[#allocation10 + $0x1a0] sm:$0xff]  ;;  %v2641_v22 = vld [vmem:[#allocation10 + $0x1a8] sm:$0xff]  ;;  %v6690_v28 = vpack.c.bf16 %v2553_v20, %v2552_v11 }
 0x6a3   :  { %v3170_v61 = vmul.f32 -1.442695, %v2162_v55  ;;  %v3169_v23 = vmul.f32 -1.442695, %v2069_v56  ;;  %v6692_v35 = vpack.c.bf16 %v2641_v22, %v2640_v21  ;;  %v2554_v55 = vld [vmem:[#allocation10 + $0x130] sm:$0xff]  ;;  %v2555_v56 = vld [vmem:[#allocation10 + $0x138] sm:$0xff] }
 0x6a5   :  { %5703 = vpow2.f32 %v3170_v61  ;;  %v2642_v61 = vld [vmem:[#allocation10 + $0x1b0] sm:$0xff] }
 0x6a6   :  { %5705 = vpow2.f32 %v3169_v23  ;;  %v2643_v23 = vld [vmem:[#allocation10 + $0x1b8] sm:$0xff] }
 0x6af   :  { %v5704_v33 = vpop.eup %5703 }
 0x6b0   :  { %v5706_v41 = vpop.eup %5705  ;;  %v2166_v38 = vadd.f32 1.0, %v5704_v33  ;;  %v6698_v33 = vpack.c.bf16 %v2555_v56, %v2554_v55 }
 0x6b1   :  { %v2073_v30 = vadd.f32 1.0, %v5706_v41  ;;  %v6700_v41 = vpack.c.bf16 %v2643_v23, %v2642_v61 }
 0x6b2   :  { %5707 = vrcp.f32 %v2166_v38  ;;  %v2556_v38 = vld [vmem:[#allocation10 + $0x140] sm:$0xff] }
 0x6b3   :  { %5709 = vrcp.f32 %v2073_v30  ;;  %v2557_v30 = vld [vmem:[#allocation10 + $0x148] sm:$0xff] }
 0x6bc   :  { %v5708_v18 = vpop.eup %5707 }
 0x6bd   :  { %v5710_v40 = vpop.eup %5709  ;;  %v2350_v58 = vmul.f32 %v5708_v18, %v6556_v16 }
 0x6c0   :  { %v2251_v14 = vpop.f32.mrb[22].mxu0  ;;  %v2339_v29 = vpop.f32.mrb[22].mxu1 }
 0x6c1   :  { %v2255_v32 = vadd.f32 %v2251_v14, %v1981_v31  ;;  %v2343_v6 = vadd.f32 %v2339_v29, %v1982_v60  ;;  %v4526_v44 = vpop.f32.mrb[23].mxu0  ;;  %v4561_v50 = vpop.f32.mrb[23].mxu1  ;;  %v2644_v31 = vld [vmem:[#allocation10 + $0x1c0] sm:$0xff]  ;;  %v2645_v60 = vld [vmem:[#allocation10 + $0x1c8] sm:$0xff]  ;;  %v6706_v14 = vpack.c.bf16 %v2557_v30, %v2556_v38 }
 0x6c2   :  { %v6708_v29 = vpack.c.bf16 %v2645_v60, %v2644_v31  ;;  %v2646_v44 = vld [vmem:[#allocation10 + $0x1d0] sm:$0xff]  ;;  %v2647_v50 = vld [vmem:[#allocation10 + $0x1d8] sm:$0xff] }
 0x6c3   :  { %5711 = vtanh.f32 %v2255_v32  ;;  %v3171_v57 = vmul.f32 -1.442695, %v2343_v6  ;;  %v2558_v32 = vld [vmem:[#allocation10 + $0x150] sm:$0xff]  ;;  %v2559_v6 = vld [vmem:[#allocation10 + $0x158] sm:$0xff]  ;;  %v6716_v18 = vpack.c.bf16 %v2647_v50, %v2646_v44  ;;  %v2739_v44 = vld [vmem:[#allocation4 + $0xf0] sm:$0xff] }
 0x6c4   :  { %v2740_v50 = vld [vmem:[#allocation4 + $0xf8] sm:$0xff] }
 0x6c5   :  { %5713 = vpow2.f32 %v3171_v57  ;;  %v6714_v57 = vpack.c.bf16 %v2559_v6, %v2558_v32 }
 0x6cd   :  { %v5712_v46 = vpop.eup %5711 }
 0x6ce   :  { %v2351_v5 = vmul.f32 %v5712_v46, %v5710_v40  ;;  %v2560_v40 = vld [vmem:[#allocation10 + $0x160] sm:$0xff]  ;;  %v2561_v46 = vld [vmem:[#allocation10 + $0x168] sm:$0xff] }
 0x6cf   :  { %v5714_v13 = vpop.eup %5713 }
 0x6d0   :  { %v6664_v27 = vadd.f32 %v2351_v5, %v2350_v58  ;;  %v2347_v42 = vadd.f32 1.0, %v5714_v13  ;;  %v2648_v58 = vld [vmem:[#allocation10 + $0x1e0] sm:$0xff]  ;;  %v2649_v5 = vld [vmem:[#allocation10 + $0x1e8] sm:$0xff]  ;;  %v6722_v13 = vpack.c.bf16 %v2561_v46, %v2560_v40 }
 0x6d2   :  { %5715 = vtanh.f32 %v6664_v27 }
 0x6d3   :  { %5717 = vrcp.f32 %v2347_v42  ;;  %v6724_v42 = vpack.c.bf16 %v2649_v5, %v2648_v58 }
 0x6dc   :  { %v5716_v52 = vpop.eup %5715 }
 0x6dd   :  { %v5718_v47 = vpop.eup %5717 }
 0x6de   :  { %v6671_v16 = vmul.f32 %v5718_v47, %v5716_v52  ;;  %v6730_v52 = vpack.c.bf16 %v2563_v62, %v2562_v48  ;;  %v6732_v47 = vpack.c.bf16 %v2651_v34, %v2650_v26 }
 0x6e0   :  { %4595 = vmatmul.mubr.f32.vlgmr.msra.gmra.mrb[24].mxu0 %v6671_v16  ;;  %2356 = vst [vmem:[#allocation12 + $0x28] sm:$0xff] %v6671_v16  ;;  %4630 = vmatmul.mubr.f32.vlgmr.msra.gmra.mrb[24].mxu1 %v6671_v16 }
 0x6e1   :  { %5468 = vmatpush3.bf16.msra.mxu0 %v6667_v59  ;;  %5492 = vmatpush3.bf16.msra.mxu1 %v6669_v9 }
 0x6e2   :  { %5469 = vmatprep.subr.bf16.mxu0 %v5901_v0  ;;  %5493 = vmatprep.subr.bf16.mxu1 %v5901_v0 }
 0x6e3   :  { %4664 = vmatprep.mubr.msk.f32.mxu0 %vm5902_vm0, %v5903_v1  ;;  %4699 = vmatprep.mubr.msk.f32.mxu1 %vm5902_vm0, %v5903_v1 }
 0x6e5   :  { %5471 = vmatpush3.bf16.msra.mxu0 %v6678_v54  ;;  %5495 = vmatpush3.bf16.msra.mxu1 %v6680_v4 }
 0x6e6   :  { %5472 = vmatprep.subr.bf16.mxu0 %v5901_v0  ;;  %5496 = vmatprep.subr.bf16.mxu1 %v5901_v0 }
 0x6e9   :  { %5474 = vmatpush3.bf16.msra.mxu0 %v6690_v28  ;;  %5498 = vmatpush3.bf16.msra.mxu1 %v6692_v35 }
 0x6ea   :  { %5475 = vmatprep.subr.bf16.mxu0 %v5901_v0  ;;  %5499 = vmatprep.subr.bf16.mxu1 %v5901_v0 }
 0x6ed   :  { %5477 = vmatpush3.bf16.msra.mxu0 %v6698_v33  ;;  %5501 = vmatpush3.bf16.msra.mxu1 %v6700_v41 }
 0x6ee   :  { %5478 = vmatprep.subr.bf16.mxu0 %v5901_v0  ;;  %5502 = vmatprep.subr.bf16.mxu1 %v5901_v0 }
 0x6f1   :  { %5480 = vmatpush3.bf16.msra.mxu0 %v6706_v14  ;;  %5504 = vmatpush3.bf16.msra.mxu1 %v6708_v29 }
 0x6f2   :  { %5481 = vmatprep.subr.bf16.mxu0 %v5901_v0  ;;  %5505 = vmatprep.subr.bf16.mxu1 %v5901_v0 }
 0x6f5   :  { %5483 = vmatpush3.bf16.msra.mxu0 %v6714_v57  ;;  %5507 = vmatpush3.bf16.msra.mxu1 %v6716_v18 }
 0x6f6   :  { %5484 = vmatprep.subr.bf16.mxu0 %v5901_v0  ;;  %5508 = vmatprep.subr.bf16.mxu1 %v5901_v0 }
 0x6f9   :  { %5486 = vmatpush3.bf16.msra.mxu0 %v6722_v13  ;;  %5510 = vmatpush3.bf16.msra.mxu1 %v6724_v42 }
 0x6fa   :  { %5487 = vmatprep.subr.bf16.mxu0 %v5901_v0  ;;  %5511 = vmatprep.subr.bf16.mxu1 %v5901_v0 }
 0x6fd   :  { %5489 = vmatpush3.bf16.msra.mxu0 %v6730_v52  ;;  %5513 = vmatpush3.bf16.msra.mxu1 %v6732_v47 }
 0x6fe   :  { %5514 = vmatprep.subr.bf16.mxu0 %v5901_v0  ;;  %5538 = vmatprep.subr.bf16.mxu1 %v5901_v0 }
 0x700   :  { %4665 = vmatmul.mubr.f32.vlgmr.msra.gmra.mrb[26].mxu0 %v6671_v16  ;;  %4700 = vmatmul.mubr.f32.vlgmr.msra.gmra.mrb[26].mxu1 %v6671_v16 }
 0x701   :  { %5516 = vmatpush3.bf16.msra.mxu0 %v6599_v63  ;;  %5540 = vmatpush3.bf16.msra.mxu1 %v6601_v17 }
 0x702   :  { %5517 = vmatprep.subr.bf16.mxu0 %v5901_v0  ;;  %5541 = vmatprep.subr.bf16.mxu1 %v5901_v0 }
 0x703   :  { %4734 = vmatprep.mubr.msk.f32.mxu0 %vm5902_vm0, %v5903_v1  ;;  %4769 = vmatprep.mubr.msk.f32.mxu1 %vm5902_vm0, %v5903_v1 }
 0x705   :  { %5519 = vmatpush3.bf16.msra.mxu0 %v6607_v15  ;;  %5543 = vmatpush3.bf16.msra.mxu1 %v6609_v51 }
 0x706   :  { %5520 = vmatprep.subr.bf16.mxu0 %v5901_v0  ;;  %5544 = vmatprep.subr.bf16.mxu1 %v5901_v0 }
 0x709   :  { %5522 = vmatpush3.bf16.msra.mxu0 %v6615_v24  ;;  %5546 = vmatpush3.bf16.msra.mxu1 %v6617_v45  ;;  %v2359_v24 = vld [vmem:[#allocation4 + $0xc8] sm:$0xff]  ;;  %v2358_v45 = vld [vmem:[#allocation4 + $0xc0] sm:$0xff] }
 0x70a   :  { %5523 = vmatprep.subr.bf16.mxu0 %v5901_v0  ;;  %5547 = vmatprep.subr.bf16.mxu1 %v5901_v0 }
 0x70d   :  { %5525 = vmatpush3.bf16.msra.mxu0 %v6623_v12  ;;  %5549 = vmatpush3.bf16.msra.mxu1 %v6625_v36 }
 0x70e   :  { %5526 = vmatprep.subr.bf16.mxu0 %v5901_v0  ;;  %5550 = vmatprep.subr.bf16.mxu1 %v5901_v0 }
 0x711   :  { %5528 = vmatpush3.bf16.msra.mxu0 %v6631_v49  ;;  %5552 = vmatpush3.bf16.msra.mxu1 %v6633_v7 }
 0x712   :  { %5529 = vmatprep.subr.bf16.mxu0 %v5901_v0  ;;  %5553 = vmatprep.subr.bf16.mxu1 %v5901_v0 }
 0x715   :  { %5531 = vmatpush3.bf16.msra.mxu0 %v6639_v39  ;;  %5555 = vmatpush3.bf16.msra.mxu1 %v6641_v53 }
 0x716   :  { %5532 = vmatprep.subr.bf16.mxu0 %v5901_v0  ;;  %5556 = vmatprep.subr.bf16.mxu1 %v5901_v0 }
 0x719   :  { %5534 = vmatpush3.bf16.msra.mxu0 %v6644_v25  ;;  %5558 = vmatpush3.bf16.msra.mxu1 %v6648_v43 }
 0x71a   :  { %5535 = vmatprep.subr.bf16.mxu0 %v5901_v0  ;;  %5559 = vmatprep.subr.bf16.mxu1 %v5901_v0 }
 0x71d   :  { %5537 = vmatpush3.bf16.msra.mxu0 %v6652_v8  ;;  %5561 = vmatpush3.bf16.msra.mxu1 %v6656_v10  ;;  %v2360_v8 = vld [vmem:[#allocation4 + $0xd0] sm:$0xff]  ;;  %v2361_v10 = vld [vmem:[#allocation4 + $0xd8] sm:$0xff] }
 0x71e   :  { %5562 = vmatprep.subr.bf16.mxu0 %v5901_v0  ;;  %5586 = vmatprep.subr.bf16.mxu1 %v5901_v0 }
 0x7b3   :  { %v2444_v63 = vpop.f32.mrb[24].mxu0  ;;  %v2537_v17 = vpop.f32.mrb[24].mxu1 }
 0x7b4   :  { %v4596_v15 = vpop.f32.mrb[25].mxu0  ;;  %v4631_v51 = vpop.f32.mrb[25].mxu1  ;;  %v2541_v12 = vadd.f32 %v2537_v17, %v2359_v24  ;;  %v2448_v36 = vadd.f32 %v2444_v63, %v2358_v45 }
 0x7b6   :  { %v3173_v49 = vmul.f32 -1.442695, %v2541_v12  ;;  %v3172_v7 = vmul.f32 -1.442695, %v2448_v36 }
 0x7b8   :  { %5719 = vpow2.f32 %v3173_v49 }
 0x7b9   :  { %5721 = vpow2.f32 %v3172_v7 }
 0x7c2   :  { %v5720_v39 = vpop.eup %5719 }
 0x7c3   :  { %v5722_v53 = vpop.eup %5721  ;;  %v2545_v25 = vadd.f32 1.0, %v5720_v39 }
 0x7c4   :  { %v2452_v43 = vadd.f32 1.0, %v5722_v53 }
 0x7c5   :  { %5723 = vrcp.f32 %v2545_v25 }
 0x7c6   :  { %5725 = vrcp.f32 %v2452_v43 }
 0x7cf   :  { %v5724_v21 = vpop.eup %5723 }
 0x7d0   :  { %v5726_v22 = vpop.eup %5725  ;;  %v2729_v56 = vmul.f32 %v5724_v21, %v6664_v27 }
 0x7d3   :  { %v2630_v19 = vpop.f32.mrb[26].mxu0  ;;  %v2718_v16 = vpop.f32.mrb[26].mxu1 }
 0x7d4   :  { %v2634_v37 = vadd.f32 %v2630_v19, %v2360_v8  ;;  %v2722_v2 = vadd.f32 %v2718_v16, %v2361_v10  ;;  %v4666_v3 = vpop.f32.mrb[27].mxu0  ;;  %v4701_v11 = vpop.f32.mrb[27].mxu1 }
 0x7d6   :  { %5727 = vtanh.f32 %v2634_v37  ;;  %v3174_v20 = vmul.f32 -1.442695, %v2722_v2 }
 0x7d8   :  { %5729 = vpow2.f32 %v3174_v20 }
 0x7e0   :  { %v5728_v55 = vpop.eup %5727 }
 0x7e1   :  { %v2730_v61 = vmul.f32 %v5728_v55, %v5726_v22 }
 0x7e2   :  { %v5730_v23 = vpop.eup %5729 }
 0x7e3   :  { %v6779_v38 = vadd.f32 %v2730_v61, %v2729_v56  ;;  %v2726_v30 = vadd.f32 1.0, %v5730_v23 }
 0x7e5   :  { %5731 = vtanh.f32 %v6779_v38 }
 0x7e6   :  { %5733 = vrcp.f32 %v2726_v30 }
 0x7ef   :  { %v5732_v31 = vpop.eup %5731 }
 0x7f0   :  { %v5734_v60 = vpop.eup %5733 }
 0x7f1   :  { %v2733_v32 = vmul.f32 %v5734_v60, %v5732_v31 }
 0x7f3   :  { %4735 = vmatmul.mubr.f32.vlgmr.msra.gmra.mrb[28].mxu0 %v2733_v32  ;;  %2735 = vst [vmem:[#allocation12 + $0x30] sm:$0xff] %v2733_v32  ;;  %4770 = vmatmul.mubr.f32.vlgmr.msra.gmra.mrb[28].mxu1 %v2733_v32 }
 0x7f4   :  { %5564 = vmatpush3.bf16.msra.mxu0 %v6667_v59  ;;  %5588 = vmatpush3.bf16.msra.mxu1 %v6669_v9 }
 0x7f5   :  { %5565 = vmatprep.subr.bf16.mxu0 %v5901_v0  ;;  %5589 = vmatprep.subr.bf16.mxu1 %v5901_v0 }
 0x7f6   :  { %4804 = vmatprep.mubr.msk.f32.mxu0 %vm5902_vm0, %v5903_v1  ;;  %4839 = vmatprep.mubr.msk.f32.mxu1 %vm5902_vm0, %v5903_v1 }
 0x7f8   :  { %5567 = vmatpush3.bf16.msra.mxu0 %v6678_v54  ;;  %5591 = vmatpush3.bf16.msra.mxu1 %v6680_v4  ;;  %v2738_v54 = vld [vmem:[#allocation4 + $0xe8] sm:$0xff]  ;;  %v2737_v4 = vld [vmem:[#allocation4 + $0xe0] sm:$0xff] }
 0x7f9   :  { %5568 = vmatprep.subr.bf16.mxu0 %v5901_v0  ;;  %5592 = vmatprep.subr.bf16.mxu1 %v5901_v0 }
 0x7fc   :  { %5570 = vmatpush3.bf16.msra.mxu0 %v6690_v28  ;;  %5594 = vmatpush3.bf16.msra.mxu1 %v6692_v35 }
 0x7fd   :  { %5571 = vmatprep.subr.bf16.mxu0 %v5901_v0  ;;  %5595 = vmatprep.subr.bf16.mxu1 %v5901_v0 }
 0x800   :  { %5573 = vmatpush3.bf16.msra.mxu0 %v6698_v33  ;;  %5597 = vmatpush3.bf16.msra.mxu1 %v6700_v41 }
 0x801   :  { %5574 = vmatprep.subr.bf16.mxu0 %v5901_v0  ;;  %5598 = vmatprep.subr.bf16.mxu1 %v5901_v0 }
 0x804   :  { %5576 = vmatpush3.bf16.msra.mxu0 %v6706_v14  ;;  %5600 = vmatpush3.bf16.msra.mxu1 %v6708_v29 }
 0x805   :  { %5577 = vmatprep.subr.bf16.mxu0 %v5901_v0  ;;  %5601 = vmatprep.subr.bf16.mxu1 %v5901_v0 }
 0x808   :  { %5579 = vmatpush3.bf16.msra.mxu0 %v6714_v57  ;;  %5603 = vmatpush3.bf16.msra.mxu1 %v6716_v18 }
 0x809   :  { %5580 = vmatprep.subr.bf16.mxu0 %v5901_v0  ;;  %5604 = vmatprep.subr.bf16.mxu1 %v5901_v0 }
 0x80c   :  { %5582 = vmatpush3.bf16.msra.mxu0 %v6722_v13  ;;  %5606 = vmatpush3.bf16.msra.mxu1 %v6724_v42 }
 0x80d   :  { %5583 = vmatprep.subr.bf16.mxu0 %v5901_v0  ;;  %5607 = vmatprep.subr.bf16.mxu1 %v5901_v0 }
 0x810   :  { %5585 = vmatpush3.bf16.msra.mxu0 %v6730_v52  ;;  %5609 = vmatpush3.bf16.msra.mxu1 %v6732_v47 }
 0x813   :  { %4805 = vmatmul.mubr.f32.vlgmr.msra.gmra.mrb[30].mxu0 %v2733_v32  ;;  %4840 = vmatmul.mubr.f32.vlgmr.msra.gmra.mrb[30].mxu1 %v2733_v32 }
 0x8c6   :  { %v2823_v1 = vpop.f32.mrb[28].mxu0  ;;  %v2916_v27 = vpop.f32.mrb[28].mxu1 }
 0x8c7   :  { %v4736_v59 = vpop.f32.mrb[29].mxu0  ;;  %v4771_v9 = vpop.f32.mrb[29].mxu1  ;;  %v2920_v28 = vadd.f32 %v2916_v27, %v2738_v54  ;;  %v2827_v35 = vadd.f32 %v2823_v1, %v2737_v4 }
 0x8c9   :  { %v3176_v33 = vmul.f32 -1.442695, %v2920_v28  ;;  %v3175_v41 = vmul.f32 -1.442695, %v2827_v35 }
 0x8cb   :  { %5735 = vpow2.f32 %v3176_v33 }
 0x8cc   :  { %5737 = vpow2.f32 %v3175_v41 }
 0x8d5   :  { %v5736_v14 = vpop.eup %5735 }
 0x8d6   :  { %v5738_v0 = vpop.eup %5737  ;;  %v2924_v29 = vadd.f32 1.0, %v5736_v14 }
 0x8d7   :  { %v2831_v6 = vadd.f32 1.0, %v5738_v0 }
 0x8d8   :  { %5739 = vrcp.f32 %v2924_v29 }
 0x8d9   :  { %5741 = vrcp.f32 %v2831_v6 }
 0x8e2   :  { %v5740_v42 = vpop.eup %5739 }
 0x8e3   :  { %v5742_v48 = vpop.eup %5741  ;;  %v3108_v26 = vmul.f32 %v5740_v42, %v6779_v38 }
 0x8e6   :  { %v3009_v57 = vpop.f32.mrb[30].mxu0  ;;  %v3097_v18 = vpop.f32.mrb[30].mxu1 }
 0x8e7   :  { %v3013_v40 = vadd.f32 %v3009_v57, %v2739_v44  ;;  %v3101_v46 = vadd.f32 %v3097_v18, %v2740_v50  ;;  %v4806_v58 = vpop.f32.mrb[31].mxu0  ;;  %v4841_v5 = vpop.f32.mrb[31].mxu1 }
 0x8e9   :  { %5743 = vtanh.f32 %v3013_v40  ;;  %v3177_v13 = vmul.f32 -1.442695, %v3101_v46 }
 0x8eb   :  { %5745 = vpow2.f32 %v3177_v13 }
 0x8f3   :  { %v5744_v62 = vpop.eup %5743 }
 0x8f4   :  { %v3109_v34 = vmul.f32 %v5744_v62, %v5742_v48 }
 0x8f5   :  { %v5746_v52 = vpop.eup %5745 }
 0x8f6   :  { %v3110_v47 = vadd.f32 %v3109_v34, %v3108_v26  ;;  %v3105_v63 = vadd.f32 1.0, %v5746_v52 }
 0x8f8   :  { %5747 = vtanh.f32 %v3110_v47  ;;  %3120 = vst [vmem:[#allocation13] sm:$0xff] %v3110_v47 }
 0x8f9   :  { %5749 = vrcp.f32 %v3105_v63 }
 0x8fa   :  { %5850 = shalt.err (!%p5847_p8)
}
 0x8fb   :  { %s5851_s20 = scalar_lea.hbm %s6849_s5, 128 }
 0x8fc   :  { %p5852_p9 = scmp.ne.s32.totalorder %s6849_s5, %s5851_s20  ;;  %p5855_p10 = scmp.lt.u32.totalorder %s5851_s20, %s6849_s5 }
 0x8fe   :  { %p5857_p11 = pnand %p5855_p10, %p5852_p9 }
 0x900   :  { %5860 = shalt.err (!%p5857_p11)
}
 0x901   :  { %3142 = dma.vmem_to_hbm [thread:$0]  %s3140_s16, 128, %s6849_s5, [#allocation14]  }
 0x902   :  { %s5905_s28 = smov [#allocation12]   ;;  %v5748_v17 = vpop.eup %5747 }
 0x903   :  { %s3126_s29 = sshll.u32 %s5905_s28, 4  ;;  %v5750_v15 = vpop.eup %5749  ;;  %s3127_s29 = int_to_ptr.vmem [resolvable:$true] %s3126_s29 }
 0x904   :  { %v3112_v51 = vmul.f32 %v5750_v15, %v5748_v17  ;;  %s5861_s0 = scalar_lea.vmem %s3127_s29, 1024  ;;  %p5866_p13 = scmp.lt.s32.totalorder %s3127_s29, %s3127_s29 }
 0x905   :  { %p5862_p12 = scmp.ne.s32.totalorder %s3127_s29, %s5861_s0  ;;  %p5867_p0 = scmp.lt.s32.totalorder %s5861_s0, %s5861_s0 }
 0x906   :  { %3114 = vst [vmem:[#allocation12 + $0x38] sm:$0xff] %v3112_v51 }
 0x907   :  { %p5868_p1 = por %p5867_p0, %p5866_p13 }
 0x909   :  { %p5869_p2 = pnand %p5868_p1, %p5862_p12 }
 0x90b   :  { %5872 = shalt.err (!%p5869_p2)
}
 0x90c   :  { %s5873_s6 = scalar_lea.hbm %s6848_s4, 1024 }
 0x90d   :  { %p5874_p3 = scmp.ne.s32.totalorder %s6848_s4, %s5873_s6  ;;  %p5877_p4 = scmp.lt.u32.totalorder %s5873_s6, %s6848_s4 }
 0x90f   :  { %p5879_p5 = pnand %p5877_p4, %p5874_p3 }
 0x911   :  { %5882 = shalt.err (!%p5879_p5)
}
 0x912   :  { %3132 = dma.vmem_to_hbm [thread:$0]  %s3127_s29, 1024, %s6848_s4, [#allocation6], %s5899_s2, %s5899_s2, %s5900_s14  }
 0x913   :  { %5889 = dma.done.wait [#allocation6], 1024  }
 0x914   :  { %5890 = vsyncadd [#allocation6], 4294966272 }
 0x915   :  { %5891 = dma.done.wait [#allocation14], 128  }
 0x916   :  { %5892 = vsyncadd [#allocation14], 4294967168 }
 0x917   :  { %3149 = vsyncpa [#allocation5], 1 }
 0x918   :  { %3150 = vsyncpa [#allocation8], 1 }
 0x919   :  { %3151 = vsyncpa [#allocation11], 1 }
 0x91a   :  { %3152 = vsyncpa [#allocation6], 1 }
 0x91b   :  { %3153 = vsyncpa [#allocation14], 1 }

// kernel: tpu_custom_call.1
= control target key start
LH: loop header
LB: loop body
LE: loop exit
PB: predicated region body
PF: predicated region fallthrough
CT: control target
= control target key end

     0   :  { %11 = vsyncpa [#allocation5], 0  ;;  %s6844_s0 = inlined_call_operand.hbm [shape: f32[8,8,512], index: 0, kind: input, shape index: {}]   ;;  %s6845_s1 = inlined_call_operand.hbm [shape: f32[8,128], index: 1, kind: input, shape index: {}]   ;;  %s6846_s2 = inlined_call_operand.hbm [shape: f32[8,128], index: 2, kind: input, shape index: {}]   ;;  %s6847_s3 = inlined_call_operand.hbm [shape: f32[4,128,128], index: 3, kind: input, shape index: {}]   ;;  %s6848_s4 = inlined_call_operand.hbm [shape: f32[8,8,128], index: 4, kind: output, shape index: {0}]   ;;  %s6849_s5 = inlined_call_operand.hbm [shape: f32[8,128], index: 5, kind: output, shape index: {1}]  }
   0x1   :  { %12 = vsyncpa [#allocation8], 0 }
   0x2   :  { %13 = vsyncpa [#allocation11], 0 }
   0x3   :  { %14 = vsyncpa [#allocation6], 0 }
   0x4   :  { %15 = vsyncpa [#allocation14], 0  ;;  %s5893_s18 = smov [#allocation7]   ;;  %s5894_s20 = smov [#allocation4]  }
   0x5   :  { %s34_s19 = sshll.u32 %s5893_s18, 4  ;;  %s21_s21 = sshll.u32 %s5894_s20, 4  ;;  %s35_s19 = int_to_ptr.vmem [resolvable:$true] %s34_s19  ;;  %s5936_s21 = int_to_ptr.vmem [resolvable:$true] %s21_s21 }
   0x6   :  { %s5751_s24 = scalar_lea.hbm %s6845_s1, 128 }
   0x7   :  { %p5752_p0 = scmp.ne.s32.totalorder %s6845_s1, %s5751_s24  ;;  %p5755_p1 = scmp.lt.u32.totalorder %s5751_s24, %s6845_s1 }
   0x9   :  { %p5757_p2 = pnand %p5755_p1, %p5752_p0 }
   0xb   :  { %5760 = shalt.err (!%p5757_p2)
}
   0xc   :  { %s5761_s29 = scalar_lea.vmem %s35_s19, 128  ;;  %p5766_p4 = scmp.lt.s32.totalorder %s35_s19, %s35_s19 }
   0xd   :  { %p5762_p3 = scmp.ne.s32.totalorder %s35_s19, %s5761_s29  ;;  %p5767_p5 = scmp.lt.s32.totalorder %s5761_s29, %s5761_s29 }
   0xf   :  { %p5768_p6 = por %p5767_p5, %p5766_p4 }
  0x11   :  { %p5769_p7 = pnand %p5768_p6, %p5762_p3 }
  0x13   :  { %5772 = shalt.err (!%p5769_p7)
}
  0x14   :  { %37 = dma.hbm_to_vmem [thread:$0]  %s6845_s1, 128, %s35_s19, [#allocation8]  }
  0x15   :  { %s5773_s9 = scalar_lea.hbm %s6844_s0, 4096 }
  0x16   :  { %p5774_p8 = scmp.ne.s32.totalorder %s6844_s0, %s5773_s9  ;;  %p5777_p9 = scmp.lt.u32.totalorder %s5773_s9, %s6844_s0 }
  0x18   :  { %p5779_p10 = pnand %p5777_p9, %p5774_p8 }
  0x1a   :  { %5782 = shalt.err (!%p5779_p10)
}
  0x1b   :  { %s5783_s14 = scalar_lea.vmem %s5936_s21, 4096  ;;  %p5788_p12 = scmp.lt.s32.totalorder %s5936_s21, %s5936_s21 }
  0x1c   :  { %p5784_p11 = scmp.ne.s32.totalorder %s5936_s21, %s5783_s14  ;;  %p5789_p13 = scmp.lt.s32.totalorder %s5783_s14, %s5783_s14 }
  0x1e   :  { %p5790_p0 = por %p5789_p13, %p5788_p12 }
  0x20   :  { %p5791_p1 = pnand %p5790_p0, %p5784_p11 }
  0x22   :  { %5794 = shalt.err (!%p5791_p1)
}
  0x23   :  { %s5895_s1 = smov 512   ;;  %s5896_s15 = smov 32  }
  0x24   :  { %27 = dma.hbm_to_vmem [thread:$0]  %s6844_s0, 4096, %s5936_s21, [#allocation5], %s5895_s1, %s5895_s1, %s5896_s15  }
  0x25   :  { %s5897_s18 = smov [#allocation9]   ;;  %s5898_s20 = smov [#allocation10]  }
  0x26   :  { %s44_s19 = sshll.u32 %s5897_s18, 4  ;;  %s53_s22 = sshll.u32 %s5898_s20, 4  ;;  %s45_s19 = int_to_ptr.vmem [resolvable:$true] %s44_s19  ;;  %s5967_s22 = int_to_ptr.vmem [resolvable:$true] %s53_s22 }
  0x27   :  { %s5795_s25 = scalar_lea.hbm %s6846_s2, 128 }
  0x28   :  { %p5796_p2 = scmp.ne.s32.totalorder %s6846_s2, %s5795_s25  ;;  %p5799_p3 = scmp.lt.u32.totalorder %s5795_s25, %s6846_s2 }
  0x2a   :  { %p5801_p4 = pnand %p5799_p3, %p5796_p2 }
  0x2c   :  { %5804 = shalt.err (!%p5801_p4)
}
  0x2d   :  { %s5805_s0 = scalar_lea.vmem %s45_s19, 128  ;;  %p5810_p6 = scmp.lt.s32.totalorder %s45_s19, %s45_s19 }
  0x2e   :  { %p5806_p5 = scmp.ne.s32.totalorder %s45_s19, %s5805_s0  ;;  %p5811_p7 = scmp.lt.s32.totalorder %s5805_s0, %s5805_s0 }
  0x30   :  { %p5812_p8 = por %p5811_p7, %p5810_p6 }
  0x32   :  { %p5813_p9 = pnand %p5812_p8, %p5806_p5 }
  0x34   :  { %5816 = shalt.err (!%p5813_p9)
}
  0x35   :  { %47 = dma.hbm_to_vmem [thread:$0]  %s6846_s2, 128, %s45_s19, [#allocation8]  }
  0x36   :  { %s5817_s8 = scalar_lea.hbm %s6847_s3, 8192 }
  0x37   :  { %p5818_p10 = scmp.ne.s32.totalorder %s6847_s3, %s5817_s8  ;;  %p5821_p11 = scmp.lt.u32.totalorder %s5817_s8, %s6847_s3 }
  0x39   :  { %p5823_p12 = pnand %p5821_p11, %p5818_p10 }
  0x3b   :  { %5826 = shalt.err (!%p5823_p12)
}
  0x3c   :  { %s5827_s13 = scalar_lea.vmem %s5967_s22, 8192  ;;  %p5832_p0 = scmp.lt.s32.totalorder %s5967_s22, %s5967_s22 }
  0x3d   :  { %p5828_p13 = scmp.ne.s32.totalorder %s5967_s22, %s5827_s13  ;;  %p5833_p1 = scmp.lt.s32.totalorder %s5827_s13, %s5827_s13 }
  0x3f   :  { %p5834_p2 = por %p5833_p1, %p5832_p0 }
  0x41   :  { %p5835_p3 = pnand %p5834_p2, %p5828_p13 }
  0x43   :  { %5838 = shalt.err (!%p5835_p3)
}
  0x44   :  { %s5899_s2 = smov 128   ;;  %s5900_s14 = smov 8  }
  0x45   :  { %59 = dma.hbm_to_vmem [thread:$0]  %s6847_s3, 8192, %s5967_s22, [#allocation11], %s5899_s2, %s5899_s2, %s5900_s14  }
  0x46   :  { %5883 = dma.done.wait [#allocation5], 4096  }
  0x47   :  { %5884 = vsyncadd [#allocation5], 4294963200 }
  0x48   :  { %5885 = dma.done.wait [#allocation8], 256  }
  0x49   :  { %5886 = vsyncadd [#allocation8], 4294967040 }
  0x4a   :  { %5887 = dma.done.wait [#allocation11], 8192  }
  0x4b   :  { %5888 = vsyncadd [#allocation11], 4294959104  ;;  %v5901_v0 = vmov 0.0|0.0   ;;  %vm5902_vm0 = vmmov 0   ;;  %v5903_v1 = vmov 0.0   ;;  %v86_v2 = vld [vmem:[#allocation10] sm:$0xff] }
  0x4c   :  { %4842 = vmatprep.subr.bf16.mxu0 %v5901_v0  ;;  %4866 = vmatprep.subr.bf16.mxu1 %v5901_v0  ;;  %v87_v3 = vld [vmem:[#allocation10 + $0x8] sm:$0xff]  ;;  %v180_v4 = vld [vmem:[#allocation10 + $0x80] sm:$0xff]  ;;  %v88_v7 = vld [vmem:[#allocation10 + $0x10] sm:$0xff]  ;;  %s5904_s3 = smov [#allocation13]  }
  0x4d   :  { %3754 = vmatprep.mubr.msk.f32.mxu0 %vm5902_vm0, %v5903_v1  ;;  %3789 = vmatprep.mubr.msk.f32.mxu1 %vm5902_vm0, %v5903_v1  ;;  %v6007_v5 = vpack.c.bf16 %v87_v3, %v86_v2  ;;  %v181_v6 = vld [vmem:[#allocation10 + $0x88] sm:$0xff]  ;;  %v89_v8 = vld [vmem:[#allocation10 + $0x18] sm:$0xff]  ;;  %v182_v10 = vld [vmem:[#allocation10 + $0x90] sm:$0xff]  ;;  %s3139_s16 = sshll.u32 %s5904_s3, 4  ;;  %s3140_s16 = int_to_ptr.vmem [resolvable:$true] %s3139_s16 }
  0x4e   :  { %v6009_v9 = vpack.c.bf16 %v181_v6, %v180_v4  ;;  %v183_v11 = vld [vmem:[#allocation10 + $0x98] sm:$0xff]  ;;  %v6012_v12 = vpack.c.bf16 %v89_v8, %v88_v7  ;;  %v90_v14 = vld [vmem:[#allocation10 + $0x20] sm:$0xff]  ;;  %v91_v15 = vld [vmem:[#allocation10 + $0x28] sm:$0xff]  ;;  %s5839_s17 = scalar_lea.vmem %s3140_s16, 128  ;;  %p5844_p5 = scmp.lt.s32.totalorder %s3140_s16, %s3140_s16 }
  0x4f   :  { %4844 = vmatpush3.bf16.msra.mxu0 %v6007_v5  ;;  %v6016_v13 = vpack.c.bf16 %v183_v11, %v182_v10  ;;  %v184_v16 = vld [vmem:[#allocation10 + $0xa0] sm:$0xff]  ;;  %v185_v17 = vld [vmem:[#allocation10 + $0xa8] sm:$0xff]  ;;  %v6020_v18 = vpack.c.bf16 %v91_v15, %v90_v14  ;;  %v92_v20 = vld [vmem:[#allocation10 + $0x30] sm:$0xff]  ;;  %p5840_p4 = scmp.ne.s32.totalorder %s3140_s16, %s5839_s17  ;;  %p5845_p6 = scmp.lt.s32.totalorder %s5839_s17, %s5839_s17 }
  0x50   :  { %4868 = vmatpush3.bf16.msra.mxu1 %v6009_v9  ;;  %4845 = vmatprep.subr.bf16.mxu0 %v5901_v0  ;;  %v6024_v19 = vpack.c.bf16 %v185_v17, %v184_v16  ;;  %v93_v21 = vld [vmem:[#allocation10 + $0x38] sm:$0xff]  ;;  %v186_v22 = vld [vmem:[#allocation10 + $0xb0] sm:$0xff]  ;;  %v94_v26 = vld [vmem:[#allocation10 + $0x40] sm:$0xff] }
  0x51   :  { %4869 = vmatprep.subr.bf16.mxu1 %v5901_v0  ;;  %v187_v23 = vld [vmem:[#allocation10 + $0xb8] sm:$0xff]  ;;  %v6028_v24 = vpack.c.bf16 %v93_v21, %v92_v20  ;;  %v95_v27 = vld [vmem:[#allocation10 + $0x48] sm:$0xff]  ;;  %v188_v28 = vld [vmem:[#allocation10 + $0xc0] sm:$0xff]  ;;  %p5846_p7 = por %p5845_p6, %p5844_p5 }
  0x52   :  { %v6032_v25 = vpack.c.bf16 %v187_v23, %v186_v22  ;;  %v189_v29 = vld [vmem:[#allocation10 + $0xc8] sm:$0xff]  ;;  %v6036_v30 = vpack.c.bf16 %v95_v27, %v94_v26  ;;  %v96_v32 = vld [vmem:[#allocation10 + $0x50] sm:$0xff]  ;;  %v97_v33 = vld [vmem:[#allocation10 + $0x58] sm:$0xff] }
  0x53   :  { %4847 = vmatpush3.bf16.msra.mxu0 %v6012_v12  ;;  %v6040_v31 = vpack.c.bf16 %v189_v29, %v188_v28  ;;  %v190_v34 = vld [vmem:[#allocation10 + $0xd0] sm:$0xff]  ;;  %v191_v35 = vld [vmem:[#allocation10 + $0xd8] sm:$0xff]  ;;  %v6044_v36 = vpack.c.bf16 %v97_v33, %v96_v32  ;;  %v98_v38 = vld [vmem:[#allocation10 + $0x60] sm:$0xff]  ;;  %p5847_p8 = pnand %p5846_p7, %p5840_p4 }
  0x54   :  { %4871 = vmatpush3.bf16.msra.mxu1 %v6016_v13  ;;  %4848 = vmatprep.subr.bf16.mxu0 %v5901_v0  ;;  %v6048_v37 = vpack.c.bf16 %v191_v35, %v190_v34  ;;  %v99_v39 = vld [vmem:[#allocation10 + $0x68] sm:$0xff]  ;;  %v192_v40 = vld [vmem:[#allocation10 + $0xe0] sm:$0xff]  ;;  %v100_v44 = vld [vmem:[#allocation10 + $0x70] sm:$0xff] }
  0x55   :  { %4872 = vmatprep.subr.bf16.mxu1 %v5901_v0  ;;  %v193_v41 = vld [vmem:[#allocation10 + $0xe8] sm:$0xff]  ;;  %v6052_v42 = vpack.c.bf16 %v99_v39, %v98_v38  ;;  %v101_v45 = vld [vmem:[#allocation10 + $0x78] sm:$0xff]  ;;  %v194_v46 = vld [vmem:[#allocation10 + $0xf0] sm:$0xff] }
  0x56   :  { %v6056_v43 = vpack.c.bf16 %v193_v41, %v192_v40  ;;  %v195_v47 = vld [vmem:[#allocation10 + $0xf8] sm:$0xff]  ;;  %v6060_v48 = vpack.c.bf16 %v101_v45, %v100_v44  ;;  %v274_v50 = vld [vmem:[#allocation10 + $0x100] sm:$0xff]  ;;  %v275_v51 = vld [vmem:[#allocation10 + $0x108] sm:$0xff] }
  0x57   :  { %4850 = vmatpush3.bf16.msra.mxu0 %v6020_v18  ;;  %v6064_v49 = vpack.c.bf16 %v195_v47, %v194_v46  ;;  %v363_v52 = vld [vmem:[#allocation10 + $0x180] sm:$0xff]  ;;  %v364_v53 = vld [vmem:[#allocation10 + $0x188] sm:$0xff]  ;;  %v6068_v54 = vld [vmem:[#allocation7] sm:$0xff]  ;;  %v6070_v55 = vpack.c.bf16 %v275_v51, %v274_v50 }
  0x58   :  { %4874 = vmatpush3.bf16.msra.mxu1 %v6024_v19  ;;  %4851 = vmatprep.subr.bf16.mxu0 %v5901_v0  ;;  %v6074_v56 = vpack.c.bf16 %v364_v53, %v363_v52  ;;  %v276_v57 = vld [vmem:[#allocation10 + $0x110] sm:$0xff]  ;;  %v277_v58 = vld [vmem:[#allocation10 + $0x118] sm:$0xff]  ;;  %v278_v63 = vld [vmem:[#allocation10 + $0x120] sm:$0xff] }
  0x59   :  { %4875 = vmatprep.subr.bf16.mxu1 %v5901_v0  ;;  %v365_v59 = vld [vmem:[#allocation10 + $0x190] sm:$0xff]  ;;  %v366_v60 = vld [vmem:[#allocation10 + $0x198] sm:$0xff]  ;;  %v6080_v61 = vpack.c.bf16 %v277_v58, %v276_v57  ;;  %v279_v2 = vld [vmem:[#allocation10 + $0x128] sm:$0xff] }
  0x5a   :  { %v6084_v62 = vpack.c.bf16 %v366_v60, %v365_v59  ;;  %v367_v3 = vld [vmem:[#allocation10 + $0x1a0] sm:$0xff]  ;;  %v368_v4 = vld [vmem:[#allocation10 + $0x1a8] sm:$0xff]  ;;  %v6092_v6 = vpack.c.bf16 %v279_v2, %v278_v63  ;;  %v280_v8 = vld [vmem:[#allocation10 + $0x130] sm:$0xff] }
  0x5b   :  { %4853 = vmatpush3.bf16.msra.mxu0 %v6028_v24  ;;  %v6096_v7 = vpack.c.bf16 %v368_v4, %v367_v3  ;;  %v281_v10 = vld [vmem:[#allocation10 + $0x138] sm:$0xff]  ;;  %v369_v11 = vld [vmem:[#allocation10 + $0x1b0] sm:$0xff]  ;;  %v282_v17 = vld [vmem:[#allocation10 + $0x140] sm:$0xff] }
  0x5c   :  { %4877 = vmatpush3.bf16.msra.mxu1 %v6032_v25  ;;  %4854 = vmatprep.subr.bf16.mxu0 %v5901_v0  ;;  %v370_v14 = vld [vmem:[#allocation10 + $0x1b8] sm:$0xff]  ;;  %v6100_v15 = vpack.c.bf16 %v281_v10, %v280_v8  ;;  %v283_v20 = vld [vmem:[#allocation10 + $0x148] sm:$0xff]  ;;  %v371_v21 = vld [vmem:[#allocation10 + $0x1c0] sm:$0xff] }
  0x5d   :  { %4878 = vmatprep.subr.bf16.mxu1 %v5901_v0  ;;  %v6104_v16 = vpack.c.bf16 %v370_v14, %v369_v11  ;;  %v372_v22 = vld [vmem:[#allocation10 + $0x1c8] sm:$0xff]  ;;  %v6108_v23 = vpack.c.bf16 %v283_v20, %v282_v17  ;;  %v284_v27 = vld [vmem:[#allocation10 + $0x150] sm:$0xff]  ;;  %v285_v28 = vld [vmem:[#allocation10 + $0x158] sm:$0xff] }
  0x5e   :  { %v6112_v26 = vpack.c.bf16 %v372_v22, %v371_v21  ;;  %v373_v29 = vld [vmem:[#allocation10 + $0x1d0] sm:$0xff]  ;;  %v374_v32 = vld [vmem:[#allocation10 + $0x1d8] sm:$0xff]  ;;  %v6116_v33 = vpack.c.bf16 %v285_v28, %v284_v27  ;;  %v286_v35 = vld [vmem:[#allocation10 + $0x160] sm:$0xff] }
  0x5f   :  { %4856 = vmatpush3.bf16.msra.mxu0 %v6036_v30  ;;  %v6120_v34 = vpack.c.bf16 %v374_v32, %v373_v29  ;;  %v287_v38 = vld [vmem:[#allocation10 + $0x168] sm:$0xff]  ;;  %v375_v39 = vld [vmem:[#allocation10 + $0x1e0] sm:$0xff]  ;;  %v288_v45 = vld [vmem:[#allocation10 + $0x170] sm:$0xff] }
  0x60   :  { %4880 = vmatpush3.bf16.msra.mxu1 %v6040_v31  ;;  %4857 = vmatprep.subr.bf16.mxu0 %v5901_v0  ;;  %v376_v40 = vld [vmem:[#allocation10 + $0x1e8] sm:$0xff]  ;;  %v6124_v41 = vpack.c.bf16 %v287_v38, %v286_v35  ;;  %v289_v46 = vld [vmem:[#allocation10 + $0x178] sm:$0xff]  ;;  %v377_v47 = vld [vmem:[#allocation10 + $0x1f0] sm:$0xff] }
  0x61   :  { %4881 = vmatprep.subr.bf16.mxu1 %v5901_v0  ;;  %v6128_v44 = vpack.c.bf16 %v376_v40, %v375_v39  ;;  %v378_v50 = vld [vmem:[#allocation10 + $0x1f8] sm:$0xff]  ;;  %v6132_v51 = vpack.c.bf16 %v289_v46, %v288_v45  ;;  %v82_v60 = vld [vmem:[#allocation4] sm:$0xff]  ;;  %v84_v17 = vld [vmem:[#allocation4 + $0x10] sm:$0xff] }
  0x62   :  { %v6136_v52 = vpack.c.bf16 %v378_v50, %v377_v47  ;;  %v83_v59 = vld [vmem:[#allocation4 + $0x8] sm:$0xff]  ;;  %v85_v20 = vld [vmem:[#allocation4 + $0x18] sm:$0xff] }
  0x63   :  { %4859 = vmatpush3.bf16.msra.mxu0 %v6044_v36  ;;  %v78_v39 = vld [vmem:[#allocation9] sm:$0xff] }
  0x64   :  { %4883 = vmatpush3.bf16.msra.mxu1 %v6048_v37  ;;  %4860 = vmatprep.subr.bf16.mxu0 %v5901_v0 }
  0x65   :  { %4884 = vmatprep.subr.bf16.mxu1 %v5901_v0 }
  0x67   :  { %4862 = vmatpush3.bf16.msra.mxu0 %v6052_v42 }
  0x68   :  { %4886 = vmatpush3.bf16.msra.mxu1 %v6056_v43  ;;  %4863 = vmatprep.subr.bf16.mxu0 %v5901_v0 }
  0x69   :  { %4887 = vmatprep.subr.bf16.mxu1 %v5901_v0 }
  0x6b   :  { %4865 = vmatpush3.bf16.msra.mxu0 %v6060_v48 }
  0x6c   :  { %4889 = vmatpush3.bf16.msra.mxu1 %v6064_v49  ;;  %4890 = vmatprep.subr.bf16.mxu0 %v5901_v0 }
  0x6d   :  { %4914 = vmatprep.subr.bf16.mxu1 %v5901_v0 }
  0x6e   :  { %3755 = vmatmul.mubr.f32.vlgmr.msra.gmra.mrb[0].mxu0 %v6068_v54 }
  0x6f   :  { %3790 = vmatmul.mubr.f32.vlgmr.msra.gmra.mrb[0].mxu1 %v6068_v54  ;;  %4892 = vmatpush3.bf16.msra.mxu0 %v6070_v55 }
  0x70   :  { %4916 = vmatpush3.bf16.msra.mxu1 %v6074_v56  ;;  %4893 = vmatprep.subr.bf16.mxu0 %v5901_v0 }
  0x71   :  { %4917 = vmatprep.subr.bf16.mxu1 %v5901_v0  ;;  %3824 = vmatprep.mubr.msk.f32.mxu0 %vm5902_vm0, %v5903_v1 }
  0x72   :  { %3859 = vmatprep.mubr.msk.f32.mxu1 %vm5902_vm0, %v5903_v1 }
  0x73   :  { %4895 = vmatpush3.bf16.msra.mxu0 %v6080_v61 }
  0x74   :  { %4919 = vmatpush3.bf16.msra.mxu1 %v6084_v62  ;;  %4896 = vmatprep.subr.bf16.mxu0 %v5901_v0 }
  0x75   :  { %4920 = vmatprep.subr.bf16.mxu1 %v5901_v0 }
  0x77   :  { %4898 = vmatpush3.bf16.msra.mxu0 %v6092_v6 }
  0x78   :  { %4922 = vmatpush3.bf16.msra.mxu1 %v6096_v7  ;;  %4899 = vmatprep.subr.bf16.mxu0 %v5901_v0 }
  0x79   :  { %4923 = vmatprep.subr.bf16.mxu1 %v5901_v0 }
  0x7b   :  { %4901 = vmatpush3.bf16.msra.mxu0 %v6100_v15 }
  0x7c   :  { %4925 = vmatpush3.bf16.msra.mxu1 %v6104_v16  ;;  %4902 = vmatprep.subr.bf16.mxu0 %v5901_v0 }
  0x7d   :  { %4926 = vmatprep.subr.bf16.mxu1 %v5901_v0 }
  0x7f   :  { %4904 = vmatpush3.bf16.msra.mxu0 %v6108_v23 }
  0x80   :  { %4928 = vmatpush3.bf16.msra.mxu1 %v6112_v26  ;;  %4905 = vmatprep.subr.bf16.mxu0 %v5901_v0 }
  0x81   :  { %4929 = vmatprep.subr.bf16.mxu1 %v5901_v0 }
  0x83   :  { %4907 = vmatpush3.bf16.msra.mxu0 %v6116_v33 }
  0x84   :  { %4931 = vmatpush3.bf16.msra.mxu1 %v6120_v34  ;;  %4908 = vmatprep.subr.bf16.mxu0 %v5901_v0 }
  0x85   :  { %4932 = vmatprep.subr.bf16.mxu1 %v5901_v0 }
  0x87   :  { %4910 = vmatpush3.bf16.msra.mxu0 %v6124_v41 }
  0x88   :  { %4934 = vmatpush3.bf16.msra.mxu1 %v6128_v44  ;;  %4911 = vmatprep.subr.bf16.mxu0 %v5901_v0 }
  0x89   :  { %4935 = vmatprep.subr.bf16.mxu1 %v5901_v0 }
  0x8b   :  { %4913 = vmatpush3.bf16.msra.mxu0 %v6132_v51 }
  0x8c   :  { %4937 = vmatpush3.bf16.msra.mxu1 %v6136_v52  ;;  %4938 = vmatprep.subr.bf16.mxu0 %v5901_v0 }
  0x8d   :  { %4962 = vmatprep.subr.bf16.mxu1 %v5901_v0 }
  0x8e   :  { %3825 = vmatmul.mubr.f32.vlgmr.msra.gmra.mrb[2].mxu0 %v6068_v54 }
  0x8f   :  { %3860 = vmatmul.mubr.f32.vlgmr.msra.gmra.mrb[2].mxu1 %v6068_v54  ;;  %4940 = vmatpush3.bf16.msra.mxu0 %v6007_v5 }
  0x90   :  { %4964 = vmatpush3.bf16.msra.mxu1 %v6009_v9  ;;  %4941 = vmatprep.subr.bf16.mxu0 %v5901_v0 }
  0x91   :  { %4965 = vmatprep.subr.bf16.mxu1 %v5901_v0  ;;  %3894 = vmatprep.mubr.msk.f32.mxu0 %vm5902_vm0, %v5903_v1 }
  0x92   :  { %3929 = vmatprep.mubr.msk.f32.mxu1 %vm5902_vm0, %v5903_v1 }
  0x93   :  { %4943 = vmatpush3.bf16.msra.mxu0 %v6012_v12 }
  0x94   :  { %4967 = vmatpush3.bf16.msra.mxu1 %v6016_v13  ;;  %4944 = vmatprep.subr.bf16.mxu0 %v5901_v0 }
  0x95   :  { %4968 = vmatprep.subr.bf16.mxu1 %v5901_v0 }
  0x97   :  { %4946 = vmatpush3.bf16.msra.mxu0 %v6020_v18 }
  0x98   :  { %4970 = vmatpush3.bf16.msra.mxu1 %v6024_v19  ;;  %4947 = vmatprep.subr.bf16.mxu0 %v5901_v0 }
  0x99   :  { %4971 = vmatprep.subr.bf16.mxu1 %v5901_v0 }
  0x9b   :  { %4949 = vmatpush3.bf16.msra.mxu0 %v6028_v24 }
  0x9c   :  { %4973 = vmatpush3.bf16.msra.mxu1 %v6032_v25  ;;  %4950 = vmatprep.subr.bf16.mxu0 %v5901_v0 }
  0x9d   :  { %4974 = vmatprep.subr.bf16.mxu1 %v5901_v0 }
  0x9f   :  { %4952 = vmatpush3.bf16.msra.mxu0 %v6036_v30 }
  0xa0   :  { %4976 = vmatpush3.bf16.msra.mxu1 %v6040_v31  ;;  %4953 = vmatprep.subr.bf16.mxu0 %v5901_v0 }
  0xa1   :  { %4977 = vmatprep.subr.bf16.mxu1 %v5901_v0 }
  0xa3   :  { %4955 = vmatpush3.bf16.msra.mxu0 %v6044_v36 }
  0xa4   :  { %4979 = vmatpush3.bf16.msra.mxu1 %v6048_v37  ;;  %4956 = vmatprep.subr.bf16.mxu0 %v5901_v0 }
  0xa5   :  { %4980 = vmatprep.subr.bf16.mxu1 %v5901_v0 }
  0xa7   :  { %4958 = vmatpush3.bf16.msra.mxu0 %v6052_v42 }
  0xa8   :  { %4982 = vmatpush3.bf16.msra.mxu1 %v6056_v43  ;;  %4959 = vmatprep.subr.bf16.mxu0 %v5901_v0 }
  0xa9   :  { %4983 = vmatprep.subr.bf16.mxu1 %v5901_v0 }
  0xab   :  { %4961 = vmatpush3.bf16.msra.mxu0 %v6060_v48 }
  0xac   :  { %4985 = vmatpush3.bf16.msra.mxu1 %v6064_v49  ;;  %4986 = vmatprep.subr.bf16.mxu0 %v5901_v0 }
  0xad   :  { %5010 = vmatprep.subr.bf16.mxu1 %v5901_v0 }
 0x141   :  { %v168_v53 = vpop.f32.mrb[0].mxu0 }
 0x142   :  { %v262_v54 = vpop.f32.mrb[0].mxu1  ;;  %v3756_v57 = vpop.f32.mrb[1].mxu0  ;;  %v172_v2 = vadd.f32 %v168_v53, %v82_v60 }
 0x143   :  { %v3791_v58 = vpop.f32.mrb[1].mxu1  ;;  %v266_v63 = vadd.f32 %v262_v54, %v83_v59 }
 0x144   :  { %v3154_v4 = vmul.f32 -1.442695, %v172_v2 }
 0x145   :  { %v3155_v3 = vmul.f32 -1.442695, %v266_v63 }
 0x147   :  { %5623 = vpow2.f32 %v3155_v3 }
 0x148   :  { %5625 = vpow2.f32 %v3154_v4 }
 0x151   :  { %v5624_v8 = vpop.eup %5623 }
 0x152   :  { %v5626_v10 = vpop.eup %5625  ;;  %v270_v11 = vadd.f32 1.0, %v5624_v8 }
 0x153   :  { %v176_v14 = vadd.f32 1.0, %v5626_v10 }
 0x154   :  { %5627 = vrcp.f32 %v270_v11 }
 0x155   :  { %5629 = vrcp.f32 %v176_v14 }
 0x15e   :  { %v5628_v38 = vpop.eup %5627 }
 0x15f   :  { %v5630_v40 = vpop.eup %5629  ;;  %v456_v46 = vmul.f32 %v5628_v38, %v78_v39  ;;  %v1323_v38 = vld [vmem:[#allocation10 + $0xa8] sm:$0xff] }
 0x161   :  { %v356_v21 = vpop.f32.mrb[2].mxu0 }
 0x162   :  { %v360_v22 = vadd.f32 %v356_v21, %v84_v17  ;;  %v445_v27 = vpop.f32.mrb[2].mxu1  ;;  %v3826_v28 = vpop.f32.mrb[3].mxu0 }
 0x163   :  { %v449_v29 = vadd.f32 %v445_v27, %v85_v20  ;;  %v3861_v32 = vpop.f32.mrb[3].mxu1 }
 0x164   :  { %5631 = vtanh.f32 %v360_v22 }
 0x165   :  { %v3156_v35 = vmul.f32 -1.442695, %v449_v29 }
 0x167   :  { %5633 = vpow2.f32 %v3156_v35 }
 0x16e   :  { %v5632_v45 = vpop.eup %5631 }
 0x16f   :  { %v457_v47 = vmul.f32 %v5632_v45, %v5630_v40  ;;  %v1231_v40 = vld [vmem:[#allocation10 + $0x30] sm:$0xff]  ;;  %v1232_v45 = vld [vmem:[#allocation10 + $0x38] sm:$0xff] }
 0x171   :  { %v5634_v50 = vpop.eup %5633  ;;  %v6181_v53 = vadd.f32 %v457_v47, %v456_v46  ;;  %v1324_v46 = vld [vmem:[#allocation10 + $0xb0] sm:$0xff]  ;;  %v6324_v47 = vpack.c.bf16 %v1232_v45, %v1231_v40 }
 0x172   :  { %v453_v54 = vadd.f32 1.0, %v5634_v50  ;;  %v1325_v50 = vld [vmem:[#allocation10 + $0xb8] sm:$0xff] }
 0x173   :  { %5635 = vtanh.f32 %v6181_v53 }
 0x174   :  { %5637 = vrcp.f32 %v453_v54  ;;  %v1233_v54 = vld [vmem:[#allocation10 + $0x40] sm:$0xff] }
 0x17d   :  { %v5636_v57 = vpop.eup %5635 }
 0x17e   :  { %v5638_v58 = vpop.eup %5637 }
 0x17f   :  { %v460_v59 = vmul.f32 %v5638_v58, %v5636_v57  ;;  %v1234_v57 = vld [vmem:[#allocation10 + $0x48] sm:$0xff]  ;;  %v1326_v58 = vld [vmem:[#allocation10 + $0xc0] sm:$0xff] }
 0x181   :  { %3895 = vmatmul.mubr.f32.vlgmr.msra.gmra.mrb[4].mxu0 %v460_v59  ;;  %461 = vst [vmem:[#allocation12] sm:$0xff] %v460_v59  ;;  %3930 = vmatmul.mubr.f32.vlgmr.msra.gmra.mrb[4].mxu1 %v460_v59 }
 0x182   :  { %4988 = vmatpush3.bf16.msra.mxu0 %v6070_v55  ;;  %5012 = vmatpush3.bf16.msra.mxu1 %v6074_v56 }
 0x183   :  { %4989 = vmatprep.subr.bf16.mxu0 %v5901_v0  ;;  %5013 = vmatprep.subr.bf16.mxu1 %v5901_v0 }
 0x184   :  { %3964 = vmatprep.mubr.msk.f32.mxu0 %vm5902_vm0, %v5903_v1  ;;  %3999 = vmatprep.mubr.msk.f32.mxu1 %vm5902_vm0, %v5903_v1 }
 0x186   :  { %4991 = vmatpush3.bf16.msra.mxu0 %v6080_v61  ;;  %5015 = vmatpush3.bf16.msra.mxu1 %v6084_v62 }
 0x187   :  { %4992 = vmatprep.subr.bf16.mxu0 %v5901_v0  ;;  %5016 = vmatprep.subr.bf16.mxu1 %v5901_v0 }
 0x18a   :  { %4994 = vmatpush3.bf16.msra.mxu0 %v6092_v6  ;;  %5018 = vmatpush3.bf16.msra.mxu1 %v6096_v7 }
 0x18b   :  { %4995 = vmatprep.subr.bf16.mxu0 %v5901_v0  ;;  %5019 = vmatprep.subr.bf16.mxu1 %v5901_v0 }
 0x18e   :  { %4997 = vmatpush3.bf16.msra.mxu0 %v6100_v15  ;;  %5021 = vmatpush3.bf16.msra.mxu1 %v6104_v16 }
 0x18f   :  { %4998 = vmatprep.subr.bf16.mxu0 %v5901_v0  ;;  %5022 = vmatprep.subr.bf16.mxu1 %v5901_v0 }
 0x192   :  { %5000 = vmatpush3.bf16.msra.mxu0 %v6108_v23  ;;  %5024 = vmatpush3.bf16.msra.mxu1 %v6112_v26 }
 0x193   :  { %5001 = vmatprep.subr.bf16.mxu0 %v5901_v0  ;;  %5025 = vmatprep.subr.bf16.mxu1 %v5901_v0 }
 0x196   :  { %5003 = vmatpush3.bf16.msra.mxu0 %v6116_v33  ;;  %5027 = vmatpush3.bf16.msra.mxu1 %v6120_v34 }
 0x197   :  { %5004 = vmatprep.subr.bf16.mxu0 %v5901_v0  ;;  %5028 = vmatprep.subr.bf16.mxu1 %v5901_v0 }
 0x19a   :  { %5006 = vmatpush3.bf16.msra.mxu0 %v6124_v41  ;;  %5030 = vmatpush3.bf16.msra.mxu1 %v6128_v44 }
 0x19b   :  { %5007 = vmatprep.subr.bf16.mxu0 %v5901_v0  ;;  %5031 = vmatprep.subr.bf16.mxu1 %v5901_v0 }
 0x19e   :  { %5009 = vmatpush3.bf16.msra.mxu0 %v6132_v51  ;;  %5033 = vmatpush3.bf16.msra.mxu1 %v6136_v52 }
 0x19f   :  { %5034 = vmatprep.subr.bf16.mxu0 %v5901_v0  ;;  %5058 = vmatprep.subr.bf16.mxu1 %v5901_v0 }
 0x1a1   :  { %3965 = vmatmul.mubr.f32.vlgmr.msra.gmra.mrb[6].mxu0 %v460_v59  ;;  %4000 = vmatmul.mubr.f32.vlgmr.msra.gmra.mrb[6].mxu1 %v460_v59  ;;  %v6332_v59 = vpack.c.bf16 %v1234_v57, %v1233_v54 }
 0x1a2   :  { %5036 = vmatpush3.bf16.msra.mxu0 %v6007_v5  ;;  %5060 = vmatpush3.bf16.msra.mxu1 %v6009_v9 }
 0x1a3   :  { %5037 = vmatprep.subr.bf16.mxu0 %v5901_v0  ;;  %5061 = vmatprep.subr.bf16.mxu1 %v5901_v0 }
 0x1a4   :  { %4034 = vmatprep.mubr.msk.f32.mxu0 %vm5902_vm0, %v5903_v1  ;;  %4069 = vmatprep.mubr.msk.f32.mxu1 %vm5902_vm0, %v5903_v1 }
 0x1a6   :  { %5039 = vmatpush3.bf16.msra.mxu0 %v6012_v12  ;;  %5063 = vmatpush3.bf16.msra.mxu1 %v6016_v13 }
 0x1a7   :  { %5040 = vmatprep.subr.bf16.mxu0 %v5901_v0  ;;  %5064 = vmatprep.subr.bf16.mxu1 %v5901_v0 }
 0x1aa   :  { %5042 = vmatpush3.bf16.msra.mxu0 %v6020_v18  ;;  %5066 = vmatpush3.bf16.msra.mxu1 %v6024_v19  ;;  %v464_v18 = vld [vmem:[#allocation4 + $0x28] sm:$0xff]  ;;  %v463_v19 = vld [vmem:[#allocation4 + $0x20] sm:$0xff] }
 0x1ab   :  { %5043 = vmatprep.subr.bf16.mxu0 %v5901_v0  ;;  %5067 = vmatprep.subr.bf16.mxu1 %v5901_v0 }
 0x1ae   :  { %5045 = vmatpush3.bf16.msra.mxu0 %v6028_v24  ;;  %5069 = vmatpush3.bf16.msra.mxu1 %v6032_v25 }
 0x1af   :  { %5046 = vmatprep.subr.bf16.mxu0 %v5901_v0  ;;  %5070 = vmatprep.subr.bf16.mxu1 %v5901_v0 }
 0x1b2   :  { %5048 = vmatpush3.bf16.msra.mxu0 %v6036_v30  ;;  %5072 = vmatpush3.bf16.msra.mxu1 %v6040_v31 }
 0x1b3   :  { %5049 = vmatprep.subr.bf16.mxu0 %v5901_v0  ;;  %5073 = vmatprep.subr.bf16.mxu1 %v5901_v0 }
 0x1b6   :  { %5051 = vmatpush3.bf16.msra.mxu0 %v6044_v36  ;;  %5075 = vmatpush3.bf16.msra.mxu1 %v6048_v37 }
 0x1b7   :  { %5052 = vmatprep.subr.bf16.mxu0 %v5901_v0  ;;  %5076 = vmatprep.subr.bf16.mxu1 %v5901_v0 }
 0x1ba   :  { %5054 = vmatpush3.bf16.msra.mxu0 %v6052_v42  ;;  %5078 = vmatpush3.bf16.msra.mxu1 %v6056_v43 }
 0x1bb   :  { %5055 = vmatprep.subr.bf16.mxu0 %v5901_v0  ;;  %5079 = vmatprep.subr.bf16.mxu1 %v5901_v0 }
 0x1be   :  { %5057 = vmatpush3.bf16.msra.mxu0 %v6060_v48  ;;  %5081 = vmatpush3.bf16.msra.mxu1 %v6064_v49  ;;  %v465_v48 = vld [vmem:[#allocation4 + $0x30] sm:$0xff]  ;;  %v466_v49 = vld [vmem:[#allocation4 + $0x38] sm:$0xff] }
 0x1bf   :  { %5082 = vmatprep.subr.bf16.mxu0 %v5901_v0  ;;  %5106 = vmatprep.subr.bf16.mxu1 %v5901_v0 }
 0x254   :  { %v549_v5 = vpop.f32.mrb[4].mxu0  ;;  %v642_v9 = vpop.f32.mrb[4].mxu1 }
 0x255   :  { %v3896_v12 = vpop.f32.mrb[5].mxu0  ;;  %v3931_v13 = vpop.f32.mrb[5].mxu1  ;;  %v646_v24 = vadd.f32 %v642_v9, %v464_v18  ;;  %v553_v25 = vadd.f32 %v549_v5, %v463_v19  ;;  %v1327_v5 = vld [vmem:[#allocation10 + $0xc8] sm:$0xff]  ;;  %v1328_v18 = vld [vmem:[#allocation10 + $0xd0] sm:$0xff] }
 0x256   :  { %v6334_v9 = vpack.c.bf16 %v1327_v5, %v1326_v58  ;;  %v1235_v12 = vld [vmem:[#allocation10 + $0x50] sm:$0xff]  ;;  %v1236_v13 = vld [vmem:[#allocation10 + $0x58] sm:$0xff]  ;;  %v1411_v58 = vld [vmem:[#allocation10 + $0x100] sm:$0xff] }
 0x257   :  { %v3158_v30 = vmul.f32 -1.442695, %v646_v24  ;;  %v3157_v31 = vmul.f32 -1.442695, %v553_v25  ;;  %v6340_v19 = vpack.c.bf16 %v1236_v13, %v1235_v12  ;;  %v1329_v24 = vld [vmem:[#allocation10 + $0xd8] sm:$0xff]  ;;  %v1412_v5 = vld [vmem:[#allocation10 + $0x108] sm:$0xff] }
 0x258   :  { %v6342_v25 = vpack.c.bf16 %v1329_v24, %v1328_v18  ;;  %v1499_v12 = vld [vmem:[#allocation10 + $0x180] sm:$0xff]  ;;  %v1500_v13 = vld [vmem:[#allocation10 + $0x188] sm:$0xff] }
 0x259   :  { %5639 = vpow2.f32 %v3158_v30  ;;  %v1237_v30 = vld [vmem:[#allocation10 + $0x60] sm:$0xff] }
 0x25a   :  { %5641 = vpow2.f32 %v3157_v31  ;;  %v1238_v31 = vld [vmem:[#allocation10 + $0x68] sm:$0xff] }
 0x263   :  { %v5640_v36 = vpop.eup %5639 }
 0x264   :  { %v5642_v37 = vpop.eup %5641  ;;  %v650_v42 = vadd.f32 1.0, %v5640_v36  ;;  %v1330_v36 = vld [vmem:[#allocation10 + $0xe0] sm:$0xff] }
 0x265   :  { %v557_v43 = vadd.f32 1.0, %v5642_v37  ;;  %v6345_v37 = vpack.c.bf16 %v1238_v31, %v1237_v30  ;;  %v6368_v30 = vpack.c.bf16 %v1412_v5, %v1411_v58  ;;  %v6370_v31 = vpack.c.bf16 %v1500_v13, %v1499_v12  ;;  %v1425_v58 = vld [vmem:[#allocation10 + $0x170] sm:$0xff]  ;;  %v1426_v5 = vld [vmem:[#allocation10 + $0x178] sm:$0xff] }
 0x266   :  { %5643 = vrcp.f32 %v650_v42  ;;  %v1331_v42 = vld [vmem:[#allocation10 + $0xe8] sm:$0xff]  ;;  %v1513_v12 = vld [vmem:[#allocation10 + $0x1f0] sm:$0xff]  ;;  %v1514_v13 = vld [vmem:[#allocation10 + $0x1f8] sm:$0xff] }
 0x267   :  { %5645 = vrcp.f32 %v557_v43  ;;  %v6349_v43 = vpack.c.bf16 %v1331_v42, %v1330_v36  ;;  %v1413_v36 = vld [vmem:[#allocation10 + $0x110] sm:$0xff]  ;;  %v1414_v42 = vld [vmem:[#allocation10 + $0x118] sm:$0xff] }
 0x270   :  { %v5644_v11 = vpop.eup %5643 }
 0x271   :  { %v5646_v14 = vpop.eup %5645  ;;  %v834_v20 = vmul.f32 %v5644_v11, %v6181_v53  ;;  %v6326_v53 = vpack.c.bf16 %v1325_v50, %v1324_v46 }
 0x274   :  { %v735_v60 = vpop.f32.mrb[6].mxu0  ;;  %v823_v63 = vpop.f32.mrb[6].mxu1 }
 0x275   :  { %v739_v2 = vadd.f32 %v735_v60, %v465_v48  ;;  %v827_v3 = vadd.f32 %v823_v63, %v466_v49  ;;  %v3966_v4 = vpop.f32.mrb[7].mxu0  ;;  %v4001_v8 = vpop.f32.mrb[7].mxu1  ;;  %v1239_v48 = vld [vmem:[#allocation10 + $0x70] sm:$0xff]  ;;  %v1240_v49 = vld [vmem:[#allocation10 + $0x78] sm:$0xff] }
 0x276   :  { %v1332_v60 = vld [vmem:[#allocation10 + $0xf0] sm:$0xff]  ;;  %v1333_v63 = vld [vmem:[#allocation10 + $0xf8] sm:$0xff] }
 0x277   :  { %5647 = vtanh.f32 %v739_v2  ;;  %v3159_v10 = vmul.f32 -1.442695, %v827_v3  ;;  %v6353_v2 = vpack.c.bf16 %v1240_v49, %v1239_v48  ;;  %v6357_v3 = vpack.c.bf16 %v1333_v63, %v1332_v60  ;;  %v1501_v48 = vld [vmem:[#allocation10 + $0x190] sm:$0xff]  ;;  %v1502_v49 = vld [vmem:[#allocation10 + $0x198] sm:$0xff] }
 0x278   :  { %v6379_v60 = vpack.c.bf16 %v1414_v42, %v1413_v36  ;;  %v6381_v63 = vpack.c.bf16 %v1502_v49, %v1501_v48  ;;  %v1222_v49 = vld [vmem:[#allocation4 + $0x68] sm:$0xff] }
 0x279   :  { %5649 = vpow2.f32 %v3159_v10 }
 0x281   :  { %v5648_v17 = vpop.eup %5647 }
 0x282   :  { %v835_v21 = vmul.f32 %v5648_v17, %v5646_v14  ;;  %v843_v14 = vld [vmem:[#allocation4 + $0x48] sm:$0xff]  ;;  %v842_v17 = vld [vmem:[#allocation4 + $0x40] sm:$0xff] }
 0x283   :  { %v5650_v22 = vpop.eup %5649 }
 0x284   :  { %v6257_v27 = vadd.f32 %v835_v21, %v834_v20  ;;  %v831_v28 = vadd.f32 1.0, %v5650_v22 }
 0x286   :  { %5651 = vtanh.f32 %v6257_v27 }
 0x287   :  { %5653 = vrcp.f32 %v831_v28 }
 0x290   :  { %v5652_v29 = vpop.eup %5651 }
 0x291   :  { %v5654_v32 = vpop.eup %5653 }
 0x292   :  { %v838_v35 = vmul.f32 %v5654_v32, %v5652_v29 }
 0x294   :  { %4035 = vmatmul.mubr.f32.vlgmr.msra.gmra.mrb[8].mxu0 %v838_v35  ;;  %840 = vst [vmem:[#allocation12 + $0x8] sm:$0xff] %v838_v35  ;;  %4070 = vmatmul.mubr.f32.vlgmr.msra.gmra.mrb[8].mxu1 %v838_v35 }
 0x295   :  { %5084 = vmatpush3.bf16.msra.mxu0 %v6070_v55  ;;  %5108 = vmatpush3.bf16.msra.mxu1 %v6074_v56  ;;  %v1225_v55 = vld [vmem:[#allocation10] sm:$0xff]  ;;  %v1226_v56 = vld [vmem:[#allocation10 + $0x8] sm:$0xff] }
 0x296   :  { %5085 = vmatprep.subr.bf16.mxu0 %v5901_v0  ;;  %5109 = vmatprep.subr.bf16.mxu1 %v5901_v0 }
 0x297   :  { %4104 = vmatprep.mubr.msk.f32.mxu0 %vm5902_vm0, %v5903_v1  ;;  %4139 = vmatprep.mubr.msk.f32.mxu1 %vm5902_vm0, %v5903_v1 }
 0x299   :  { %5087 = vmatpush3.bf16.msra.mxu0 %v6080_v61  ;;  %5111 = vmatpush3.bf16.msra.mxu1 %v6084_v62  ;;  %v1318_v61 = vld [vmem:[#allocation10 + $0x80] sm:$0xff]  ;;  %v6300_v62 = vpack.c.bf16 %v1226_v56, %v1225_v55 }
 0x29a   :  { %5088 = vmatprep.subr.bf16.mxu0 %v5901_v0  ;;  %5112 = vmatprep.subr.bf16.mxu1 %v5901_v0  ;;  %v844_v56 = vld [vmem:[#allocation4 + $0x50] sm:$0xff] }
 0x29d   :  { %5090 = vmatpush3.bf16.msra.mxu0 %v6092_v6  ;;  %5114 = vmatpush3.bf16.msra.mxu1 %v6096_v7  ;;  %v1319_v6 = vld [vmem:[#allocation10 + $0x88] sm:$0xff] }
 0x29e   :  { %5091 = vmatprep.subr.bf16.mxu0 %v5901_v0  ;;  %5115 = vmatprep.subr.bf16.mxu1 %v5901_v0  ;;  %v6302_v7 = vpack.c.bf16 %v1319_v6, %v1318_v61  ;;  %v845_v61 = vld [vmem:[#allocation4 + $0x58] sm:$0xff] }
 0x2a1   :  { %5093 = vmatpush3.bf16.msra.mxu0 %v6100_v15  ;;  %5117 = vmatpush3.bf16.msra.mxu1 %v6104_v16  ;;  %v1227_v15 = vld [vmem:[#allocation10 + $0x10] sm:$0xff]  ;;  %v1228_v16 = vld [vmem:[#allocation10 + $0x18] sm:$0xff] }
 0x2a2   :  { %5094 = vmatprep.subr.bf16.mxu0 %v5901_v0  ;;  %5118 = vmatprep.subr.bf16.mxu1 %v5901_v0 }
 0x2a5   :  { %5096 = vmatpush3.bf16.msra.mxu0 %v6108_v23  ;;  %5120 = vmatpush3.bf16.msra.mxu1 %v6112_v26  ;;  %v1320_v23 = vld [vmem:[#allocation10 + $0x90] sm:$0xff]  ;;  %v6308_v26 = vpack.c.bf16 %v1228_v16, %v1227_v15 }
 0x2a6   :  { %5097 = vmatprep.subr.bf16.mxu0 %v5901_v0  ;;  %5121 = vmatprep.subr.bf16.mxu1 %v5901_v0 }
 0x2a9   :  { %5099 = vmatpush3.bf16.msra.mxu0 %v6116_v33  ;;  %5123 = vmatpush3.bf16.msra.mxu1 %v6120_v34  ;;  %v1321_v33 = vld [vmem:[#allocation10 + $0x98] sm:$0xff] }
 0x2aa   :  { %5100 = vmatprep.subr.bf16.mxu0 %v5901_v0  ;;  %5124 = vmatprep.subr.bf16.mxu1 %v5901_v0  ;;  %v6310_v34 = vpack.c.bf16 %v1321_v33, %v1320_v23 }
 0x2ad   :  { %5102 = vmatpush3.bf16.msra.mxu0 %v6124_v41  ;;  %5126 = vmatpush3.bf16.msra.mxu1 %v6128_v44  ;;  %v1229_v41 = vld [vmem:[#allocation10 + $0x20] sm:$0xff]  ;;  %v1230_v44 = vld [vmem:[#allocation10 + $0x28] sm:$0xff] }
 0x2ae   :  { %5103 = vmatprep.subr.bf16.mxu0 %v5901_v0  ;;  %5127 = vmatprep.subr.bf16.mxu1 %v5901_v0 }
 0x2b1   :  { %5105 = vmatpush3.bf16.msra.mxu0 %v6132_v51  ;;  %5129 = vmatpush3.bf16.msra.mxu1 %v6136_v52  ;;  %v1322_v51 = vld [vmem:[#allocation10 + $0xa0] sm:$0xff]  ;;  %v6316_v52 = vpack.c.bf16 %v1230_v44, %v1229_v41 }
 0x2b2   :  { %5130 = vmatprep.subr.bf16.mxu0 %v5901_v0  ;;  %5154 = vmatprep.subr.bf16.mxu1 %v5901_v0  ;;  %v6318_v39 = vpack.c.bf16 %v1323_v38, %v1322_v51 }
 0x2b4   :  { %4105 = vmatmul.mubr.f32.vlgmr.msra.gmra.mrb[10].mxu0 %v838_v35  ;;  %4140 = vmatmul.mubr.f32.vlgmr.msra.gmra.mrb[10].mxu1 %v838_v35 }
 0x2b5   :  { %4174 = vmatprep.mubr.msk.f32.mxu0 %vm5902_vm0, %v5903_v1  ;;  %4209 = vmatprep.mubr.msk.f32.mxu1 %vm5902_vm0, %v5903_v1 }
 0x2b6   :  { %5132 = vmatpush3.bf16.msra.mxu0 %v6300_v62  ;;  %5156 = vmatpush3.bf16.msra.mxu1 %v6302_v7 }
 0x2b7   :  { %5133 = vmatprep.subr.bf16.mxu0 %v5901_v0  ;;  %5157 = vmatprep.subr.bf16.mxu1 %v5901_v0 }
 0x2ba   :  { %5135 = vmatpush3.bf16.msra.mxu0 %v6308_v26  ;;  %5159 = vmatpush3.bf16.msra.mxu1 %v6310_v34 }
 0x2bb   :  { %5136 = vmatprep.subr.bf16.mxu0 %v5901_v0  ;;  %5160 = vmatprep.subr.bf16.mxu1 %v5901_v0 }
 0x2be   :  { %5138 = vmatpush3.bf16.msra.mxu0 %v6316_v52  ;;  %5162 = vmatpush3.bf16.msra.mxu1 %v6318_v39 }
 0x2bf   :  { %5139 = vmatprep.subr.bf16.mxu0 %v5901_v0  ;;  %5163 = vmatprep.subr.bf16.mxu1 %v5901_v0 }
 0x2c2   :  { %5141 = vmatpush3.bf16.msra.mxu0 %v6324_v47  ;;  %5165 = vmatpush3.bf16.msra.mxu1 %v6326_v53 }
 0x2c3   :  { %5142 = vmatprep.subr.bf16.mxu0 %v5901_v0  ;;  %5166 = vmatprep.subr.bf16.mxu1 %v5901_v0 }
 0x2c6   :  { %5144 = vmatpush3.bf16.msra.mxu0 %v6332_v59  ;;  %5168 = vmatpush3.bf16.msra.mxu1 %v6334_v9 }
 0x2c7   :  { %5145 = vmatprep.subr.bf16.mxu0 %v5901_v0  ;;  %5169 = vmatprep.subr.bf16.mxu1 %v5901_v0 }
 0x2ca   :  { %5147 = vmatpush3.bf16.msra.mxu0 %v6340_v19  ;;  %5171 = vmatpush3.bf16.msra.mxu1 %v6342_v25 }
 0x2cb   :  { %5148 = vmatprep.subr.bf16.mxu0 %v5901_v0  ;;  %5172 = vmatprep.subr.bf16.mxu1 %v5901_v0 }
 0x2ce   :  { %5150 = vmatpush3.bf16.msra.mxu0 %v6345_v37  ;;  %5174 = vmatpush3.bf16.msra.mxu1 %v6349_v43 }
 0x2cf   :  { %5151 = vmatprep.subr.bf16.mxu0 %v5901_v0  ;;  %5175 = vmatprep.subr.bf16.mxu1 %v5901_v0 }
 0x2d2   :  { %5153 = vmatpush3.bf16.msra.mxu0 %v6353_v2  ;;  %5177 = vmatpush3.bf16.msra.mxu1 %v6357_v3 }
 0x2d3   :  { %5178 = vmatprep.subr.bf16.mxu0 %v5901_v0  ;;  %5202 = vmatprep.subr.bf16.mxu1 %v5901_v0 }
 0x367   :  { %v928_v4 = vpop.f32.mrb[8].mxu0  ;;  %v1021_v8 = vpop.f32.mrb[8].mxu1 }
 0x368   :  { %v4036_v10 = vpop.f32.mrb[9].mxu0  ;;  %v4071_v11 = vpop.f32.mrb[9].mxu1  ;;  %v1025_v20 = vadd.f32 %v1021_v8, %v843_v14  ;;  %v932_v21 = vadd.f32 %v928_v4, %v842_v17  ;;  %v1415_v4 = vld [vmem:[#allocation10 + $0x120] sm:$0xff]  ;;  %v1416_v8 = vld [vmem:[#allocation10 + $0x128] sm:$0xff] }
 0x369   :  { %v1503_v10 = vld [vmem:[#allocation10 + $0x1a0] sm:$0xff]  ;;  %v1504_v11 = vld [vmem:[#allocation10 + $0x1a8] sm:$0xff]  ;;  %v6391_v14 = vpack.c.bf16 %v1416_v8, %v1415_v4  ;;  %v1221_v4 = vld [vmem:[#allocation4 + $0x60] sm:$0xff] }
 0x36a   :  { %v3161_v22 = vmul.f32 -1.442695, %v1025_v20  ;;  %v3160_v28 = vmul.f32 -1.442695, %v932_v21  ;;  %v6393_v17 = vpack.c.bf16 %v1504_v11, %v1503_v10  ;;  %v1417_v20 = vld [vmem:[#allocation10 + $0x130] sm:$0xff]  ;;  %v1418_v21 = vld [vmem:[#allocation10 + $0x138] sm:$0xff] }
 0x36c   :  { %5655 = vpow2.f32 %v3161_v22  ;;  %v1505_v22 = vld [vmem:[#allocation10 + $0x1b0] sm:$0xff] }
 0x36d   :  { %5657 = vpow2.f32 %v3160_v28  ;;  %v1506_v28 = vld [vmem:[#allocation10 + $0x1b8] sm:$0xff] }
 0x376   :  { %v5656_v29 = vpop.eup %5655 }
 0x377   :  { %v5658_v32 = vpop.eup %5657  ;;  %v1029_v35 = vadd.f32 1.0, %v5656_v29  ;;  %v6399_v29 = vpack.c.bf16 %v1418_v21, %v1417_v20 }
 0x378   :  { %v936_v55 = vadd.f32 1.0, %v5658_v32  ;;  %v6401_v32 = vpack.c.bf16 %v1506_v28, %v1505_v22 }
 0x379   :  { %5659 = vrcp.f32 %v1029_v35  ;;  %v1419_v35 = vld [vmem:[#allocation10 + $0x140] sm:$0xff] }
 0x37a   :  { %5661 = vrcp.f32 %v936_v55  ;;  %v1420_v55 = vld [vmem:[#allocation10 + $0x148] sm:$0xff] }
 0x383   :  { %v5660_v51 = vpop.eup %5659 }
 0x384   :  { %v5662_v38 = vpop.eup %5661  ;;  %v1213_v45 = vmul.f32 %v5660_v51, %v6257_v27 }
 0x387   :  { %v1114_v6 = vpop.f32.mrb[10].mxu0  ;;  %v1202_v15 = vpop.f32.mrb[10].mxu1 }
 0x388   :  { %v1118_v16 = vadd.f32 %v1114_v6, %v844_v56  ;;  %v1206_v23 = vadd.f32 %v1202_v15, %v845_v61  ;;  %v4106_v33 = vpop.f32.mrb[11].mxu0  ;;  %v4141_v41 = vpop.f32.mrb[11].mxu1  ;;  %v1507_v56 = vld [vmem:[#allocation10 + $0x1c0] sm:$0xff]  ;;  %v1508_v61 = vld [vmem:[#allocation10 + $0x1c8] sm:$0xff]  ;;  %v6407_v6 = vpack.c.bf16 %v1420_v55, %v1419_v35 }
 0x389   :  { %v6409_v15 = vpack.c.bf16 %v1508_v61, %v1507_v56  ;;  %v1509_v33 = vld [vmem:[#allocation10 + $0x1d0] sm:$0xff]  ;;  %v1510_v41 = vld [vmem:[#allocation10 + $0x1d8] sm:$0xff]  ;;  %v1223_v55 = vld [vmem:[#allocation4 + $0x70] sm:$0xff] }
 0x38a   :  { %5663 = vtanh.f32 %v1118_v16  ;;  %v3162_v44 = vmul.f32 -1.442695, %v1206_v23  ;;  %v1421_v16 = vld [vmem:[#allocation10 + $0x150] sm:$0xff]  ;;  %v1422_v23 = vld [vmem:[#allocation10 + $0x158] sm:$0xff]  ;;  %v6417_v51 = vpack.c.bf16 %v1510_v41, %v1509_v33  ;;  %v1224_v56 = vld [vmem:[#allocation4 + $0x78] sm:$0xff] }
 0x38c   :  { %5665 = vpow2.f32 %v3162_v44  ;;  %v6415_v44 = vpack.c.bf16 %v1422_v23, %v1421_v16 }
 0x394   :  { %v5664_v40 = vpop.eup %5663 }
 0x395   :  { %v1214_v46 = vmul.f32 %v5664_v40, %v5662_v38  ;;  %v1423_v38 = vld [vmem:[#allocation10 + $0x160] sm:$0xff]  ;;  %v1424_v40 = vld [vmem:[#allocation10 + $0x168] sm:$0xff] }
 0x396   :  { %v5666_v50 = vpop.eup %5665 }
 0x397   :  { %v6365_v54 = vadd.f32 %v1214_v46, %v1213_v45  ;;  %v1210_v57 = vadd.f32 1.0, %v5666_v50  ;;  %v1511_v45 = vld [vmem:[#allocation10 + $0x1e0] sm:$0xff]  ;;  %v1512_v46 = vld [vmem:[#allocation10 + $0x1e8] sm:$0xff]  ;;  %v6423_v50 = vpack.c.bf16 %v1424_v40, %v1423_v38 }
 0x399   :  { %5667 = vtanh.f32 %v6365_v54 }
 0x39a   :  { %5669 = vrcp.f32 %v1210_v57  ;;  %v6425_v57 = vpack.c.bf16 %v1512_v46, %v1511_v45 }
 0x3a3   :  { %v5668_v18 = vpop.eup %5667 }
 0x3a4   :  { %v5670_v24 = vpop.eup %5669 }
 0x3a5   :  { %v6372_v27 = vmul.f32 %v5670_v24, %v5668_v18  ;;  %v6431_v18 = vpack.c.bf16 %v1426_v5, %v1425_v58  ;;  %v6433_v24 = vpack.c.bf16 %v1514_v13, %v1513_v12 }
 0x3a7   :  { %4175 = vmatmul.mubr.f32.vlgmr.msra.gmra.mrb[12].mxu0 %v6372_v27  ;;  %1219 = vst [vmem:[#allocation12 + $0x10] sm:$0xff] %v6372_v27  ;;  %4210 = vmatmul.mubr.f32.vlgmr.msra.gmra.mrb[12].mxu1 %v6372_v27 }
 0x3a8   :  { %5180 = vmatpush3.bf16.msra.mxu0 %v6368_v30  ;;  %5204 = vmatpush3.bf16.msra.mxu1 %v6370_v31 }
 0x3a9   :  { %5181 = vmatprep.subr.bf16.mxu0 %v5901_v0  ;;  %5205 = vmatprep.subr.bf16.mxu1 %v5901_v0 }
 0x3aa   :  { %4244 = vmatprep.mubr.msk.f32.mxu0 %vm5902_vm0, %v5903_v1  ;;  %4279 = vmatprep.mubr.msk.f32.mxu1 %vm5902_vm0, %v5903_v1 }
 0x3ac   :  { %5183 = vmatpush3.bf16.msra.mxu0 %v6379_v60  ;;  %5207 = vmatpush3.bf16.msra.mxu1 %v6381_v63 }
 0x3ad   :  { %5184 = vmatprep.subr.bf16.mxu0 %v5901_v0  ;;  %5208 = vmatprep.subr.bf16.mxu1 %v5901_v0 }
 0x3b0   :  { %5186 = vmatpush3.bf16.msra.mxu0 %v6391_v14  ;;  %5210 = vmatpush3.bf16.msra.mxu1 %v6393_v17 }
 0x3b1   :  { %5187 = vmatprep.subr.bf16.mxu0 %v5901_v0  ;;  %5211 = vmatprep.subr.bf16.mxu1 %v5901_v0 }
 0x3b4   :  { %5189 = vmatpush3.bf16.msra.mxu0 %v6399_v29  ;;  %5213 = vmatpush3.bf16.msra.mxu1 %v6401_v32 }
 0x3b5   :  { %5190 = vmatprep.subr.bf16.mxu0 %v5901_v0  ;;  %5214 = vmatprep.subr.bf16.mxu1 %v5901_v0 }
 0x3b8   :  { %5192 = vmatpush3.bf16.msra.mxu0 %v6407_v6  ;;  %5216 = vmatpush3.bf16.msra.mxu1 %v6409_v15 }
 0x3b9   :  { %5193 = vmatprep.subr.bf16.mxu0 %v5901_v0  ;;  %5217 = vmatprep.subr.bf16.mxu1 %v5901_v0 }
 0x3bc   :  { %5195 = vmatpush3.bf16.msra.mxu0 %v6415_v44  ;;  %5219 = vmatpush3.bf16.msra.mxu1 %v6417_v51 }
 0x3bd   :  { %5196 = vmatprep.subr.bf16.mxu0 %v5901_v0  ;;  %5220 = vmatprep.subr.bf16.mxu1 %v5901_v0 }
 0x3c0   :  { %5198 = vmatpush3.bf16.msra.mxu0 %v6423_v50  ;;  %5222 = vmatpush3.bf16.msra.mxu1 %v6425_v57 }
 0x3c1   :  { %5199 = vmatprep.subr.bf16.mxu0 %v5901_v0  ;;  %5223 = vmatprep.subr.bf16.mxu1 %v5901_v0 }
 0x3c4   :  { %5201 = vmatpush3.bf16.msra.mxu0 %v6431_v18  ;;  %5225 = vmatpush3.bf16.msra.mxu1 %v6433_v24 }
 0x3c5   :  { %5226 = vmatprep.subr.bf16.mxu0 %v5901_v0  ;;  %5250 = vmatprep.subr.bf16.mxu1 %v5901_v0 }
 0x3c7   :  { %4245 = vmatmul.mubr.f32.vlgmr.msra.gmra.mrb[14].mxu0 %v6372_v27  ;;  %4280 = vmatmul.mubr.f32.vlgmr.msra.gmra.mrb[14].mxu1 %v6372_v27 }
 0x3c8   :  { %5228 = vmatpush3.bf16.msra.mxu0 %v6300_v62  ;;  %5252 = vmatpush3.bf16.msra.mxu1 %v6302_v7 }
 0x3c9   :  { %5229 = vmatprep.subr.bf16.mxu0 %v5901_v0  ;;  %5253 = vmatprep.subr.bf16.mxu1 %v5901_v0 }
 0x3ca   :  { %4314 = vmatprep.mubr.msk.f32.mxu0 %vm5902_vm0, %v5903_v1  ;;  %4349 = vmatprep.mubr.msk.f32.mxu1 %vm5902_vm0, %v5903_v1 }
 0x3cc   :  { %5231 = vmatpush3.bf16.msra.mxu0 %v6308_v26  ;;  %5255 = vmatpush3.bf16.msra.mxu1 %v6310_v34 }
 0x3cd   :  { %5232 = vmatprep.subr.bf16.mxu0 %v5901_v0  ;;  %5256 = vmatprep.subr.bf16.mxu1 %v5901_v0 }
 0x3d0   :  { %5234 = vmatpush3.bf16.msra.mxu0 %v6316_v52  ;;  %5258 = vmatpush3.bf16.msra.mxu1 %v6318_v39 }
 0x3d1   :  { %5235 = vmatprep.subr.bf16.mxu0 %v5901_v0  ;;  %5259 = vmatprep.subr.bf16.mxu1 %v5901_v0 }
 0x3d4   :  { %5237 = vmatpush3.bf16.msra.mxu0 %v6324_v47  ;;  %5261 = vmatpush3.bf16.msra.mxu1 %v6326_v53 }
 0x3d5   :  { %5238 = vmatprep.subr.bf16.mxu0 %v5901_v0  ;;  %5262 = vmatprep.subr.bf16.mxu1 %v5901_v0 }
 0x3d8   :  { %5240 = vmatpush3.bf16.msra.mxu0 %v6332_v59  ;;  %5264 = vmatpush3.bf16.msra.mxu1 %v6334_v9 }
 0x3d9   :  { %5241 = vmatprep.subr.bf16.mxu0 %v5901_v0  ;;  %5265 = vmatprep.subr.bf16.mxu1 %v5901_v0 }
 0x3dc   :  { %5243 = vmatpush3.bf16.msra.mxu0 %v6340_v19  ;;  %5267 = vmatpush3.bf16.msra.mxu1 %v6342_v25 }
 0x3dd   :  { %5244 = vmatprep.subr.bf16.mxu0 %v5901_v0  ;;  %5268 = vmatprep.subr.bf16.mxu1 %v5901_v0 }
 0x3e0   :  { %5246 = vmatpush3.bf16.msra.mxu0 %v6345_v37  ;;  %5270 = vmatpush3.bf16.msra.mxu1 %v6349_v43 }
 0x3e1   :  { %5247 = vmatprep.subr.bf16.mxu0 %v5901_v0  ;;  %5271 = vmatprep.subr.bf16.mxu1 %v5901_v0 }
 0x3e4   :  { %5249 = vmatpush3.bf16.msra.mxu0 %v6353_v2  ;;  %5273 = vmatpush3.bf16.msra.mxu1 %v6357_v3 }
 0x3e5   :  { %5274 = vmatprep.subr.bf16.mxu0 %v5901_v0  ;;  %5298 = vmatprep.subr.bf16.mxu1 %v5901_v0 }
 0x47a   :  { %v1307_v36 = vpop.f32.mrb[12].mxu0  ;;  %v1400_v27 = vpop.f32.mrb[12].mxu1 }
 0x47b   :  { %v4176_v42 = vpop.f32.mrb[13].mxu0  ;;  %v4211_v48 = vpop.f32.mrb[13].mxu1  ;;  %v1404_v8 = vadd.f32 %v1400_v27, %v1222_v49  ;;  %v1311_v10 = vadd.f32 %v1307_v36, %v1221_v4 }
 0x47d   :  { %v3164_v11 = vmul.f32 -1.442695, %v1404_v8  ;;  %v3163_v20 = vmul.f32 -1.442695, %v1311_v10 }
 0x47f   :  { %5671 = vpow2.f32 %v3164_v11 }
 0x480   :  { %5673 = vpow2.f32 %v3163_v20 }
 0x489   :  { %v5672_v21 = vpop.eup %5671 }
 0x48a   :  { %v5674_v22 = vpop.eup %5673  ;;  %v1408_v28 = vadd.f32 1.0, %v5672_v21 }
 0x48b   :  { %v1315_v35 = vadd.f32 1.0, %v5674_v22 }
 0x48c   :  { %5675 = vrcp.f32 %v1408_v28 }
 0x48d   :  { %5677 = vrcp.f32 %v1315_v35 }
 0x496   :  { %v5676_v45 = vpop.eup %5675 }
 0x497   :  { %v5678_v46 = vpop.eup %5677  ;;  %v1592_v5 = vmul.f32 %v5676_v45, %v6365_v54 }
 0x49a   :  { %v1493_v61 = vpop.f32.mrb[14].mxu0  ;;  %v1581_v16 = vpop.f32.mrb[14].mxu1 }
 0x49b   :  { %v1497_v23 = vadd.f32 %v1493_v61, %v1223_v55  ;;  %v1585_v33 = vadd.f32 %v1581_v16, %v1224_v56  ;;  %v4246_v41 = vpop.f32.mrb[15].mxu0  ;;  %v4281_v38 = vpop.f32.mrb[15].mxu1 }
 0x49d   :  { %5679 = vtanh.f32 %v1497_v23  ;;  %v3165_v40 = vmul.f32 -1.442695, %v1585_v33 }
 0x49f   :  { %5681 = vpow2.f32 %v3165_v40  ;;  %v2460_v40 = vld [vmem:[#allocation10 + $0xa8] sm:$0xff] }
 0x4a7   :  { %v5680_v58 = vpop.eup %5679 }
 0x4a8   :  { %v1593_v12 = vmul.f32 %v5680_v58, %v5678_v46  ;;  %v2368_v46 = vld [vmem:[#allocation10 + $0x30] sm:$0xff]  ;;  %v2369_v58 = vld [vmem:[#allocation10 + $0x38] sm:$0xff] }
 0x4a9   :  { %v5682_v13 = vpop.eup %5681 }
 0x4aa   :  { %v6480_v36 = vadd.f32 %v1593_v12, %v1592_v5  ;;  %v1589_v27 = vadd.f32 1.0, %v5682_v13  ;;  %v2461_v5 = vld [vmem:[#allocation10 + $0xb0] sm:$0xff]  ;;  %v6623_v12 = vpack.c.bf16 %v2369_v58, %v2368_v46  ;;  %v2462_v13 = vld [vmem:[#allocation10 + $0xb8] sm:$0xff] }
 0x4ac   :  { %5683 = vtanh.f32 %v6480_v36 }
 0x4ad   :  { %5685 = vrcp.f32 %v1589_v27  ;;  %v2370_v27 = vld [vmem:[#allocation10 + $0x40] sm:$0xff] }
 0x4b6   :  { %v5684_v42 = vpop.eup %5683 }
 0x4b7   :  { %v5686_v48 = vpop.eup %5685 }
 0x4b8   :  { %v1596_v49 = vmul.f32 %v5686_v48, %v5684_v42  ;;  %v2371_v42 = vld [vmem:[#allocation10 + $0x48] sm:$0xff]  ;;  %v2463_v48 = vld [vmem:[#allocation10 + $0xc0] sm:$0xff] }
 0x4ba   :  { %4315 = vmatmul.mubr.f32.vlgmr.msra.gmra.mrb[16].mxu0 %v1596_v49  ;;  %1598 = vst [vmem:[#allocation12 + $0x18] sm:$0xff] %v1596_v49  ;;  %4350 = vmatmul.mubr.f32.vlgmr.msra.gmra.mrb[16].mxu1 %v1596_v49 }
 0x4bb   :  { %5276 = vmatpush3.bf16.msra.mxu0 %v6368_v30  ;;  %5300 = vmatpush3.bf16.msra.mxu1 %v6370_v31 }
 0x4bc   :  { %5277 = vmatprep.subr.bf16.mxu0 %v5901_v0  ;;  %5301 = vmatprep.subr.bf16.mxu1 %v5901_v0 }
 0x4bd   :  { %4384 = vmatprep.mubr.msk.f32.mxu0 %vm5902_vm0, %v5903_v1  ;;  %4419 = vmatprep.mubr.msk.f32.mxu1 %vm5902_vm0, %v5903_v1 }
 0x4bf   :  { %5279 = vmatpush3.bf16.msra.mxu0 %v6379_v60  ;;  %5303 = vmatpush3.bf16.msra.mxu1 %v6381_v63 }
 0x4c0   :  { %5280 = vmatprep.subr.bf16.mxu0 %v5901_v0  ;;  %5304 = vmatprep.subr.bf16.mxu1 %v5901_v0 }
 0x4c3   :  { %5282 = vmatpush3.bf16.msra.mxu0 %v6391_v14  ;;  %5306 = vmatpush3.bf16.msra.mxu1 %v6393_v17 }
 0x4c4   :  { %5283 = vmatprep.subr.bf16.mxu0 %v5901_v0  ;;  %5307 = vmatprep.subr.bf16.mxu1 %v5901_v0 }
 0x4c7   :  { %5285 = vmatpush3.bf16.msra.mxu0 %v6399_v29  ;;  %5309 = vmatpush3.bf16.msra.mxu1 %v6401_v32 }
 0x4c8   :  { %5286 = vmatprep.subr.bf16.mxu0 %v5901_v0  ;;  %5310 = vmatprep.subr.bf16.mxu1 %v5901_v0 }
 0x4cb   :  { %5288 = vmatpush3.bf16.msra.mxu0 %v6407_v6  ;;  %5312 = vmatpush3.bf16.msra.mxu1 %v6409_v15 }
 0x4cc   :  { %5289 = vmatprep.subr.bf16.mxu0 %v5901_v0  ;;  %5313 = vmatprep.subr.bf16.mxu1 %v5901_v0 }
 0x4cf   :  { %5291 = vmatpush3.bf16.msra.mxu0 %v6415_v44  ;;  %5315 = vmatpush3.bf16.msra.mxu1 %v6417_v51 }
 0x4d0   :  { %5292 = vmatprep.subr.bf16.mxu0 %v5901_v0  ;;  %5316 = vmatprep.subr.bf16.mxu1 %v5901_v0 }
 0x4d3   :  { %5294 = vmatpush3.bf16.msra.mxu0 %v6423_v50  ;;  %5318 = vmatpush3.bf16.msra.mxu1 %v6425_v57 }
 0x4d4   :  { %5295 = vmatprep.subr.bf16.mxu0 %v5901_v0  ;;  %5319 = vmatprep.subr.bf16.mxu1 %v5901_v0 }
 0x4d7   :  { %5297 = vmatpush3.bf16.msra.mxu0 %v6431_v18  ;;  %5321 = vmatpush3.bf16.msra.mxu1 %v6433_v24 }
 0x4d8   :  { %5322 = vmatprep.subr.bf16.mxu0 %v5901_v0  ;;  %5346 = vmatprep.subr.bf16.mxu1 %v5901_v0 }
 0x4da   :  { %4385 = vmatmul.mubr.f32.vlgmr.msra.gmra.mrb[18].mxu0 %v1596_v49  ;;  %4420 = vmatmul.mubr.f32.vlgmr.msra.gmra.mrb[18].mxu1 %v1596_v49  ;;  %v6631_v49 = vpack.c.bf16 %v2371_v42, %v2370_v27 }
 0x4db   :  { %5324 = vmatpush3.bf16.msra.mxu0 %v6300_v62  ;;  %5348 = vmatpush3.bf16.msra.mxu1 %v6302_v7 }
 0x4dc   :  { %5325 = vmatprep.subr.bf16.mxu0 %v5901_v0  ;;  %5349 = vmatprep.subr.bf16.mxu1 %v5901_v0 }
 0x4dd   :  { %4454 = vmatprep.mubr.msk.f32.mxu0 %vm5902_vm0, %v5903_v1  ;;  %4489 = vmatprep.mubr.msk.f32.mxu1 %vm5902_vm0, %v5903_v1 }
 0x4df   :  { %5327 = vmatpush3.bf16.msra.mxu0 %v6308_v26  ;;  %5351 = vmatpush3.bf16.msra.mxu1 %v6310_v34 }
 0x4e0   :  { %5328 = vmatprep.subr.bf16.mxu0 %v5901_v0  ;;  %5352 = vmatprep.subr.bf16.mxu1 %v5901_v0 }
 0x4e3   :  { %5330 = vmatpush3.bf16.msra.mxu0 %v6316_v52  ;;  %5354 = vmatpush3.bf16.msra.mxu1 %v6318_v39  ;;  %v1601_v52 = vld [vmem:[#allocation4 + $0x88] sm:$0xff]  ;;  %v1600_v39 = vld [vmem:[#allocation4 + $0x80] sm:$0xff] }
 0x4e4   :  { %5331 = vmatprep.subr.bf16.mxu0 %v5901_v0  ;;  %5355 = vmatprep.subr.bf16.mxu1 %v5901_v0 }
 0x4e7   :  { %5333 = vmatpush3.bf16.msra.mxu0 %v6324_v47  ;;  %5357 = vmatpush3.bf16.msra.mxu1 %v6326_v53 }
 0x4e8   :  { %5334 = vmatprep.subr.bf16.mxu0 %v5901_v0  ;;  %5358 = vmatprep.subr.bf16.mxu1 %v5901_v0 }
 0x4eb   :  { %5336 = vmatpush3.bf16.msra.mxu0 %v6332_v59  ;;  %5360 = vmatpush3.bf16.msra.mxu1 %v6334_v9 }
 0x4ec   :  { %5337 = vmatprep.subr.bf16.mxu0 %v5901_v0  ;;  %5361 = vmatprep.subr.bf16.mxu1 %v5901_v0 }
 0x4ef   :  { %5339 = vmatpush3.bf16.msra.mxu0 %v6340_v19  ;;  %5363 = vmatpush3.bf16.msra.mxu1 %v6342_v25 }
 0x4f0   :  { %5340 = vmatprep.subr.bf16.mxu0 %v5901_v0  ;;  %5364 = vmatprep.subr.bf16.mxu1 %v5901_v0 }
 0x4f3   :  { %5342 = vmatpush3.bf16.msra.mxu0 %v6345_v37  ;;  %5366 = vmatpush3.bf16.msra.mxu1 %v6349_v43 }
 0x4f4   :  { %5343 = vmatprep.subr.bf16.mxu0 %v5901_v0  ;;  %5367 = vmatprep.subr.bf16.mxu1 %v5901_v0 }
 0x4f7   :  { %5345 = vmatpush3.bf16.msra.mxu0 %v6353_v2  ;;  %5369 = vmatpush3.bf16.msra.mxu1 %v6357_v3  ;;  %v1602_v2 = vld [vmem:[#allocation4 + $0x90] sm:$0xff]  ;;  %v1603_v3 = vld [vmem:[#allocation4 + $0x98] sm:$0xff] }
 0x4f8   :  { %5370 = vmatprep.subr.bf16.mxu0 %v5901_v0  ;;  %5394 = vmatprep.subr.bf16.mxu1 %v5901_v0 }
 0x58d   :  { %v1686_v62 = vpop.f32.mrb[16].mxu0  ;;  %v1779_v7 = vpop.f32.mrb[16].mxu1 }
 0x58e   :  { %v4316_v26 = vpop.f32.mrb[17].mxu0  ;;  %v4351_v34 = vpop.f32.mrb[17].mxu1  ;;  %v1783_v47 = vadd.f32 %v1779_v7, %v1601_v52  ;;  %v1690_v53 = vadd.f32 %v1686_v62, %v1600_v39  ;;  %v2464_v62 = vld [vmem:[#allocation10 + $0xc8] sm:$0xff]  ;;  %v2465_v52 = vld [vmem:[#allocation10 + $0xd0] sm:$0xff] }
 0x58f   :  { %v6633_v7 = vpack.c.bf16 %v2464_v62, %v2463_v48  ;;  %v2372_v26 = vld [vmem:[#allocation10 + $0x50] sm:$0xff]  ;;  %v2373_v34 = vld [vmem:[#allocation10 + $0x58] sm:$0xff]  ;;  %v2548_v48 = vld [vmem:[#allocation10 + $0x100] sm:$0xff] }
 0x590   :  { %v3167_v59 = vmul.f32 -1.442695, %v1783_v47  ;;  %v3166_v9 = vmul.f32 -1.442695, %v1690_v53  ;;  %v6639_v39 = vpack.c.bf16 %v2373_v34, %v2372_v26  ;;  %v2466_v47 = vld [vmem:[#allocation10 + $0xd8] sm:$0xff]  ;;  %v2549_v62 = vld [vmem:[#allocation10 + $0x108] sm:$0xff] }
 0x591   :  { %v6641_v53 = vpack.c.bf16 %v2466_v47, %v2465_v52  ;;  %v2636_v26 = vld [vmem:[#allocation10 + $0x180] sm:$0xff]  ;;  %v2637_v34 = vld [vmem:[#allocation10 + $0x188] sm:$0xff] }
 0x592   :  { %5687 = vpow2.f32 %v3167_v59  ;;  %v2374_v59 = vld [vmem:[#allocation10 + $0x60] sm:$0xff] }
 0x593   :  { %5689 = vpow2.f32 %v3166_v9  ;;  %v2375_v9 = vld [vmem:[#allocation10 + $0x68] sm:$0xff] }
 0x59c   :  { %v5688_v19 = vpop.eup %5687 }
 0x59d   :  { %v5690_v25 = vpop.eup %5689  ;;  %v1787_v37 = vadd.f32 1.0, %v5688_v19  ;;  %v2467_v19 = vld [vmem:[#allocation10 + $0xe0] sm:$0xff] }
 0x59e   :  { %v1694_v43 = vadd.f32 1.0, %v5690_v25  ;;  %v6644_v25 = vpack.c.bf16 %v2375_v9, %v2374_v59  ;;  %v6667_v59 = vpack.c.bf16 %v2549_v62, %v2548_v48  ;;  %v6669_v9 = vpack.c.bf16 %v2637_v34, %v2636_v26  ;;  %v2562_v48 = vld [vmem:[#allocation10 + $0x170] sm:$0xff]  ;;  %v2563_v62 = vld [vmem:[#allocation10 + $0x178] sm:$0xff] }
 0x59f   :  { %5691 = vrcp.f32 %v1787_v37  ;;  %v2468_v37 = vld [vmem:[#allocation10 + $0xe8] sm:$0xff]  ;;  %v2650_v26 = vld [vmem:[#allocation10 + $0x1f0] sm:$0xff]  ;;  %v2651_v34 = vld [vmem:[#allocation10 + $0x1f8] sm:$0xff] }
 0x5a0   :  { %5693 = vrcp.f32 %v1694_v43  ;;  %v6648_v43 = vpack.c.bf16 %v2468_v37, %v2467_v19  ;;  %v2550_v19 = vld [vmem:[#allocation10 + $0x110] sm:$0xff]  ;;  %v2551_v37 = vld [vmem:[#allocation10 + $0x118] sm:$0xff] }
 0x5a9   :  { %v5692_v22 = vpop.eup %5691 }
 0x5aa   :  { %v5694_v28 = vpop.eup %5693  ;;  %v1971_v55 = vmul.f32 %v5692_v22, %v6480_v36  ;;  %v6625_v36 = vpack.c.bf16 %v2462_v13, %v2461_v5 }
 0x5ad   :  { %v1872_v54 = vpop.f32.mrb[18].mxu0  ;;  %v1960_v4 = vpop.f32.mrb[18].mxu1 }
 0x5ae   :  { %v1876_v8 = vadd.f32 %v1872_v54, %v1602_v2  ;;  %v1964_v10 = vadd.f32 %v1960_v4, %v1603_v3  ;;  %v4386_v11 = vpop.f32.mrb[19].mxu0  ;;  %v4421_v20 = vpop.f32.mrb[19].mxu1  ;;  %v2376_v2 = vld [vmem:[#allocation10 + $0x70] sm:$0xff]  ;;  %v2377_v3 = vld [vmem:[#allocation10 + $0x78] sm:$0xff] }
 0x5af   :  { %v2469_v54 = vld [vmem:[#allocation10 + $0xf0] sm:$0xff]  ;;  %v2470_v4 = vld [vmem:[#allocation10 + $0xf8] sm:$0xff] }
 0x5b0   :  { %5695 = vtanh.f32 %v1876_v8  ;;  %v3168_v21 = vmul.f32 -1.442695, %v1964_v10  ;;  %v6652_v8 = vpack.c.bf16 %v2377_v3, %v2376_v2  ;;  %v6656_v10 = vpack.c.bf16 %v2470_v4, %v2469_v54  ;;  %v2638_v2 = vld [vmem:[#allocation10 + $0x190] sm:$0xff]  ;;  %v2639_v3 = vld [vmem:[#allocation10 + $0x198] sm:$0xff] }
 0x5b1   :  { %v6678_v54 = vpack.c.bf16 %v2551_v37, %v2550_v19  ;;  %v6680_v4 = vpack.c.bf16 %v2639_v3, %v2638_v2 }
 0x5b2   :  { %5697 = vpow2.f32 %v3168_v21 }
 0x5ba   :  { %v5696_v35 = vpop.eup %5695 }
 0x5bb   :  { %v1972_v56 = vmul.f32 %v5696_v35, %v5694_v28  ;;  %v1980_v28 = vld [vmem:[#allocation4 + $0xa8] sm:$0xff]  ;;  %v1979_v35 = vld [vmem:[#allocation4 + $0xa0] sm:$0xff] }
 0x5bc   :  { %v5698_v61 = vpop.eup %5697 }
 0x5bd   :  { %v6556_v16 = vadd.f32 %v1972_v56, %v1971_v55  ;;  %v1968_v23 = vadd.f32 1.0, %v5698_v61 }
 0x5bf   :  { %5699 = vtanh.f32 %v6556_v16 }
 0x5c0   :  { %5701 = vrcp.f32 %v1968_v23 }
 0x5c9   :  { %v5700_v33 = vpop.eup %5699 }
 0x5ca   :  { %v5702_v41 = vpop.eup %5701 }
 0x5cb   :  { %v1975_v38 = vmul.f32 %v5702_v41, %v5700_v33 }
 0x5cd   :  { %4455 = vmatmul.mubr.f32.vlgmr.msra.gmra.mrb[20].mxu0 %v1975_v38  ;;  %1977 = vst [vmem:[#allocation12 + $0x20] sm:$0xff] %v1975_v38  ;;  %4490 = vmatmul.mubr.f32.vlgmr.msra.gmra.mrb[20].mxu1 %v1975_v38 }
 0x5ce   :  { %5372 = vmatpush3.bf16.msra.mxu0 %v6368_v30  ;;  %5396 = vmatpush3.bf16.msra.mxu1 %v6370_v31  ;;  %v2362_v30 = vld [vmem:[#allocation10] sm:$0xff]  ;;  %v2363_v31 = vld [vmem:[#allocation10 + $0x8] sm:$0xff] }
 0x5cf   :  { %5373 = vmatprep.subr.bf16.mxu0 %v5901_v0  ;;  %5397 = vmatprep.subr.bf16.mxu1 %v5901_v0 }
 0x5d0   :  { %4524 = vmatprep.mubr.msk.f32.mxu0 %vm5902_vm0, %v5903_v1  ;;  %4559 = vmatprep.mubr.msk.f32.mxu1 %vm5902_vm0, %v5903_v1 }
 0x5d2   :  { %5375 = vmatpush3.bf16.msra.mxu0 %v6379_v60  ;;  %5399 = vmatpush3.bf16.msra.mxu1 %v6381_v63  ;;  %v2455_v60 = vld [vmem:[#allocation10 + $0x80] sm:$0xff]  ;;  %v6599_v63 = vpack.c.bf16 %v2363_v31, %v2362_v30 }
 0x5d3   :  { %5376 = vmatprep.subr.bf16.mxu0 %v5901_v0  ;;  %5400 = vmatprep.subr.bf16.mxu1 %v5901_v0  ;;  %v1981_v31 = vld [vmem:[#allocation4 + $0xb0] sm:$0xff] }
 0x5d6   :  { %5378 = vmatpush3.bf16.msra.mxu0 %v6391_v14  ;;  %5402 = vmatpush3.bf16.msra.mxu1 %v6393_v17  ;;  %v2456_v14 = vld [vmem:[#allocation10 + $0x88] sm:$0xff] }
 0x5d7   :  { %5379 = vmatprep.subr.bf16.mxu0 %v5901_v0  ;;  %5403 = vmatprep.subr.bf16.mxu1 %v5901_v0  ;;  %v6601_v17 = vpack.c.bf16 %v2456_v14, %v2455_v60  ;;  %v1982_v60 = vld [vmem:[#allocation4 + $0xb8] sm:$0xff] }
 0x5da   :  { %5381 = vmatpush3.bf16.msra.mxu0 %v6399_v29  ;;  %5405 = vmatpush3.bf16.msra.mxu1 %v6401_v32  ;;  %v2364_v29 = vld [vmem:[#allocation10 + $0x10] sm:$0xff]  ;;  %v2365_v32 = vld [vmem:[#allocation10 + $0x18] sm:$0xff] }
 0x5db   :  { %5382 = vmatprep.subr.bf16.mxu0 %v5901_v0  ;;  %5406 = vmatprep.subr.bf16.mxu1 %v5901_v0 }
 0x5de   :  { %5384 = vmatpush3.bf16.msra.mxu0 %v6407_v6  ;;  %5408 = vmatpush3.bf16.msra.mxu1 %v6409_v15  ;;  %v2457_v6 = vld [vmem:[#allocation10 + $0x90] sm:$0xff]  ;;  %v6607_v15 = vpack.c.bf16 %v2365_v32, %v2364_v29 }
 0x5df   :  { %5385 = vmatprep.subr.bf16.mxu0 %v5901_v0  ;;  %5409 = vmatprep.subr.bf16.mxu1 %v5901_v0 }
 0x5e2   :  { %5387 = vmatpush3.bf16.msra.mxu0 %v6415_v44  ;;  %5411 = vmatpush3.bf16.msra.mxu1 %v6417_v51  ;;  %v2458_v44 = vld [vmem:[#allocation10 + $0x98] sm:$0xff] }
 0x5e3   :  { %5388 = vmatprep.subr.bf16.mxu0 %v5901_v0  ;;  %5412 = vmatprep.subr.bf16.mxu1 %v5901_v0  ;;  %v6609_v51 = vpack.c.bf16 %v2458_v44, %v2457_v6 }
 0x5e6   :  { %5390 = vmatpush3.bf16.msra.mxu0 %v6423_v50  ;;  %5414 = vmatpush3.bf16.msra.mxu1 %v6425_v57  ;;  %v2366_v50 = vld [vmem:[#allocation10 + $0x20] sm:$0xff]  ;;  %v2367_v57 = vld [vmem:[#allocation10 + $0x28] sm:$0xff] }
 0x5e7   :  { %5391 = vmatprep.subr.bf16.mxu0 %v5901_v0  ;;  %5415 = vmatprep.subr.bf16.mxu1 %v5901_v0 }
 0x5ea   :  { %5393 = vmatpush3.bf16.msra.mxu0 %v6431_v18  ;;  %5417 = vmatpush3.bf16.msra.mxu1 %v6433_v24  ;;  %v2459_v18 = vld [vmem:[#allocation10 + $0xa0] sm:$0xff]  ;;  %v6615_v24 = vpack.c.bf16 %v2367_v57, %v2366_v50 }
 0x5eb   :  { %5418 = vmatprep.subr.bf16.mxu0 %v5901_v0  ;;  %5442 = vmatprep.subr.bf16.mxu1 %v5901_v0  ;;  %v6617_v45 = vpack.c.bf16 %v2460_v40, %v2459_v18 }
 0x5ed   :  { %4525 = vmatmul.mubr.f32.vlgmr.msra.gmra.mrb[22].mxu0 %v1975_v38  ;;  %4560 = vmatmul.mubr.f32.vlgmr.msra.gmra.mrb[22].mxu1 %v1975_v38 }
 0x5ee   :  { %4594 = vmatprep.mubr.msk.f32.mxu0 %vm5902_vm0, %v5903_v1  ;;  %4629 = vmatprep.mubr.msk.f32.mxu1 %vm5902_vm0, %v5903_v1 }
 0x5ef   :  { %5420 = vmatpush3.bf16.msra.mxu0 %v6599_v63  ;;  %5444 = vmatpush3.bf16.msra.mxu1 %v6601_v17 }
 0x5f0   :  { %5421 = vmatprep.subr.bf16.mxu0 %v5901_v0  ;;  %5445 = vmatprep.subr.bf16.mxu1 %v5901_v0 }
 0x5f3   :  { %5423 = vmatpush3.bf16.msra.mxu0 %v6607_v15  ;;  %5447 = vmatpush3.bf16.msra.mxu1 %v6609_v51 }
 0x5f4   :  { %5424 = vmatprep.subr.bf16.mxu0 %v5901_v0  ;;  %5448 = vmatprep.subr.bf16.mxu1 %v5901_v0 }
 0x5f7   :  { %5426 = vmatpush3.bf16.msra.mxu0 %v6615_v24  ;;  %5450 = vmatpush3.bf16.msra.mxu1 %v6617_v45 }
 0x5f8   :  { %5427 = vmatprep.subr.bf16.mxu0 %v5901_v0  ;;  %5451 = vmatprep.subr.bf16.mxu1 %v5901_v0 }
 0x5fb   :  { %5429 = vmatpush3.bf16.msra.mxu0 %v6623_v12  ;;  %5453 = vmatpush3.bf16.msra.mxu1 %v6625_v36 }
 0x5fc   :  { %5430 = vmatprep.subr.bf16.mxu0 %v5901_v0  ;;  %5454 = vmatprep.subr.bf16.mxu1 %v5901_v0 }
 0x5ff   :  { %5432 = vmatpush3.bf16.msra.mxu0 %v6631_v49  ;;  %5456 = vmatpush3.bf16.msra.mxu1 %v6633_v7 }
 0x600   :  { %5433 = vmatprep.subr.bf16.mxu0 %v5901_v0  ;;  %5457 = vmatprep.subr.bf16.mxu1 %v5901_v0 }
 0x603   :  { %5435 = vmatpush3.bf16.msra.mxu0 %v6639_v39  ;;  %5459 = vmatpush3.bf16.msra.mxu1 %v6641_v53 }
 0x604   :  { %5436 = vmatprep.subr.bf16.mxu0 %v5901_v0  ;;  %5460 = vmatprep.subr.bf16.mxu1 %v5901_v0 }
 0x607   :  { %5438 = vmatpush3.bf16.msra.mxu0 %v6644_v25  ;;  %5462 = vmatpush3.bf16.msra.mxu1 %v6648_v43 }
 0x608   :  { %5439 = vmatprep.subr.bf16.mxu0 %v5901_v0  ;;  %5463 = vmatprep.subr.bf16.mxu1 %v5901_v0 }
 0x60b   :  { %5441 = vmatpush3.bf16.msra.mxu0 %v6652_v8  ;;  %5465 = vmatpush3.bf16.msra.mxu1 %v6656_v10 }
 0x60c   :  { %5466 = vmatprep.subr.bf16.mxu0 %v5901_v0  ;;  %5490 = vmatprep.subr.bf16.mxu1 %v5901_v0 }
 0x6a0   :  { %v2065_v11 = vpop.f32.mrb[20].mxu0  ;;  %v2158_v20 = vpop.f32.mrb[20].mxu1 }
 0x6a1   :  { %v4456_v21 = vpop.f32.mrb[21].mxu0  ;;  %v4491_v22 = vpop.f32.mrb[21].mxu1  ;;  %v2162_v55 = vadd.f32 %v2158_v20, %v1980_v28  ;;  %v2069_v56 = vadd.f32 %v2065_v11, %v1979_v35  ;;  %v2552_v11 = vld [vmem:[#allocation10 + $0x120] sm:$0xff]  ;;  %v2553_v20 = vld [vmem:[#allocation10 + $0x128] sm:$0xff] }
 0x6a2   :  { %v2640_v21 = vld [vmem:[#allocation10 + $0x1a0] sm:$0xff]  ;;  %v2641_v22 = vld [vmem:[#allocation10 + $0x1a8] sm:$0xff]  ;;  %v6690_v28 = vpack.c.bf16 %v2553_v20, %v2552_v11 }
 0x6a3   :  { %v3170_v61 = vmul.f32 -1.442695, %v2162_v55  ;;  %v3169_v23 = vmul.f32 -1.442695, %v2069_v56  ;;  %v6692_v35 = vpack.c.bf16 %v2641_v22, %v2640_v21  ;;  %v2554_v55 = vld [vmem:[#allocation10 + $0x130] sm:$0xff]  ;;  %v2555_v56 = vld [vmem:[#allocation10 + $0x138] sm:$0xff] }
 0x6a5   :  { %5703 = vpow2.f32 %v3170_v61  ;;  %v2642_v61 = vld [vmem:[#allocation10 + $0x1b0] sm:$0xff] }
 0x6a6   :  { %5705 = vpow2.f32 %v3169_v23  ;;  %v2643_v23 = vld [vmem:[#allocation10 + $0x1b8] sm:$0xff] }
 0x6af   :  { %v5704_v33 = vpop.eup %5703 }
 0x6b0   :  { %v5706_v41 = vpop.eup %5705  ;;  %v2166_v38 = vadd.f32 1.0, %v5704_v33  ;;  %v6698_v33 = vpack.c.bf16 %v2555_v56, %v2554_v55 }
 0x6b1   :  { %v2073_v30 = vadd.f32 1.0, %v5706_v41  ;;  %v6700_v41 = vpack.c.bf16 %v2643_v23, %v2642_v61 }
 0x6b2   :  { %5707 = vrcp.f32 %v2166_v38  ;;  %v2556_v38 = vld [vmem:[#allocation10 + $0x140] sm:$0xff] }
 0x6b3   :  { %5709 = vrcp.f32 %v2073_v30  ;;  %v2557_v30 = vld [vmem:[#allocation10 + $0x148] sm:$0xff] }
 0x6bc   :  { %v5708_v18 = vpop.eup %5707 }
 0x6bd   :  { %v5710_v40 = vpop.eup %5709  ;;  %v2350_v58 = vmul.f32 %v5708_v18, %v6556_v16 }
 0x6c0   :  { %v2251_v14 = vpop.f32.mrb[22].mxu0  ;;  %v2339_v29 = vpop.f32.mrb[22].mxu1 }
 0x6c1   :  { %v2255_v32 = vadd.f32 %v2251_v14, %v1981_v31  ;;  %v2343_v6 = vadd.f32 %v2339_v29, %v1982_v60  ;;  %v4526_v44 = vpop.f32.mrb[23].mxu0  ;;  %v4561_v50 = vpop.f32.mrb[23].mxu1  ;;  %v2644_v31 = vld [vmem:[#allocation10 + $0x1c0] sm:$0xff]  ;;  %v2645_v60 = vld [vmem:[#allocation10 + $0x1c8] sm:$0xff]  ;;  %v6706_v14 = vpack.c.bf16 %v2557_v30, %v2556_v38 }
 0x6c2   :  { %v6708_v29 = vpack.c.bf16 %v2645_v60, %v2644_v31  ;;  %v2646_v44 = vld [vmem:[#allocation10 + $0x1d0] sm:$0xff]  ;;  %v2647_v50 = vld [vmem:[#allocation10 + $0x1d8] sm:$0xff] }
 0x6c3   :  { %5711 = vtanh.f32 %v2255_v32  ;;  %v3171_v57 = vmul.f32 -1.442695, %v2343_v6  ;;  %v2558_v32 = vld [vmem:[#allocation10 + $0x150] sm:$0xff]  ;;  %v2559_v6 = vld [vmem:[#allocation10 + $0x158] sm:$0xff]  ;;  %v6716_v18 = vpack.c.bf16 %v2647_v50, %v2646_v44  ;;  %v2739_v44 = vld [vmem:[#allocation4 + $0xf0] sm:$0xff] }
 0x6c4   :  { %v2740_v50 = vld [vmem:[#allocation4 + $0xf8] sm:$0xff] }
 0x6c5   :  { %5713 = vpow2.f32 %v3171_v57  ;;  %v6714_v57 = vpack.c.bf16 %v2559_v6, %v2558_v32 }
 0x6cd   :  { %v5712_v46 = vpop.eup %5711 }
 0x6ce   :  { %v2351_v5 = vmul.f32 %v5712_v46, %v5710_v40  ;;  %v2560_v40 = vld [vmem:[#allocation10 + $0x160] sm:$0xff]  ;;  %v2561_v46 = vld [vmem:[#allocation10 + $0x168] sm:$0xff] }
 0x6cf   :  { %v5714_v13 = vpop.eup %5713 }
 0x6d0   :  { %v6664_v27 = vadd.f32 %v2351_v5, %v2350_v58  ;;  %v2347_v42 = vadd.f32 1.0, %v5714_v13  ;;  %v2648_v58 = vld [vmem:[#allocation10 + $0x1e0] sm:$0xff]  ;;  %v2649_v5 = vld [vmem:[#allocation10 + $0x1e8] sm:$0xff]  ;;  %v6722_v13 = vpack.c.bf16 %v2561_v46, %v2560_v40 }
 0x6d2   :  { %5715 = vtanh.f32 %v6664_v27 }
 0x6d3   :  { %5717 = vrcp.f32 %v2347_v42  ;;  %v6724_v42 = vpack.c.bf16 %v2649_v5, %v2648_v58 }
 0x6dc   :  { %v5716_v52 = vpop.eup %5715 }
 0x6dd   :  { %v5718_v47 = vpop.eup %5717 }
 0x6de   :  { %v6671_v16 = vmul.f32 %v5718_v47, %v5716_v52  ;;  %v6730_v52 = vpack.c.bf16 %v2563_v62, %v2562_v48  ;;  %v6732_v47 = vpack.c.bf16 %v2651_v34, %v2650_v26 }
 0x6e0   :  { %4595 = vmatmul.mubr.f32.vlgmr.msra.gmra.mrb[24].mxu0 %v6671_v16  ;;  %2356 = vst [vmem:[#allocation12 + $0x28] sm:$0xff] %v6671_v16  ;;  %4630 = vmatmul.mubr.f32.vlgmr.msra.gmra.mrb[24].mxu1 %v6671_v16 }
 0x6e1   :  { %5468 = vmatpush3.bf16.msra.mxu0 %v6667_v59  ;;  %5492 = vmatpush3.bf16.msra.mxu1 %v6669_v9 }
 0x6e2   :  { %5469 = vmatprep.subr.bf16.mxu0 %v5901_v0  ;;  %5493 = vmatprep.subr.bf16.mxu1 %v5901_v0 }
 0x6e3   :  { %4664 = vmatprep.mubr.msk.f32.mxu0 %vm5902_vm0, %v5903_v1  ;;  %4699 = vmatprep.mubr.msk.f32.mxu1 %vm5902_vm0, %v5903_v1 }
 0x6e5   :  { %5471 = vmatpush3.bf16.msra.mxu0 %v6678_v54  ;;  %5495 = vmatpush3.bf16.msra.mxu1 %v6680_v4 }
 0x6e6   :  { %5472 = vmatprep.subr.bf16.mxu0 %v5901_v0  ;;  %5496 = vmatprep.subr.bf16.mxu1 %v5901_v0 }
 0x6e9   :  { %5474 = vmatpush3.bf16.msra.mxu0 %v6690_v28  ;;  %5498 = vmatpush3.bf16.msra.mxu1 %v6692_v35 }
 0x6ea   :  { %5475 = vmatprep.subr.bf16.mxu0 %v5901_v0  ;;  %5499 = vmatprep.subr.bf16.mxu1 %v5901_v0 }
 0x6ed   :  { %5477 = vmatpush3.bf16.msra.mxu0 %v6698_v33  ;;  %5501 = vmatpush3.bf16.msra.mxu1 %v6700_v41 }
 0x6ee   :  { %5478 = vmatprep.subr.bf16.mxu0 %v5901_v0  ;;  %5502 = vmatprep.subr.bf16.mxu1 %v5901_v0 }
 0x6f1   :  { %5480 = vmatpush3.bf16.msra.mxu0 %v6706_v14  ;;  %5504 = vmatpush3.bf16.msra.mxu1 %v6708_v29 }
 0x6f2   :  { %5481 = vmatprep.subr.bf16.mxu0 %v5901_v0  ;;  %5505 = vmatprep.subr.bf16.mxu1 %v5901_v0 }
 0x6f5   :  { %5483 = vmatpush3.bf16.msra.mxu0 %v6714_v57  ;;  %5507 = vmatpush3.bf16.msra.mxu1 %v6716_v18 }
 0x6f6   :  { %5484 = vmatprep.subr.bf16.mxu0 %v5901_v0  ;;  %5508 = vmatprep.subr.bf16.mxu1 %v5901_v0 }
 0x6f9   :  { %5486 = vmatpush3.bf16.msra.mxu0 %v6722_v13  ;;  %5510 = vmatpush3.bf16.msra.mxu1 %v6724_v42 }
 0x6fa   :  { %5487 = vmatprep.subr.bf16.mxu0 %v5901_v0  ;;  %5511 = vmatprep.subr.bf16.mxu1 %v5901_v0 }
 0x6fd   :  { %5489 = vmatpush3.bf16.msra.mxu0 %v6730_v52  ;;  %5513 = vmatpush3.bf16.msra.mxu1 %v6732_v47 }
 0x6fe   :  { %5514 = vmatprep.subr.bf16.mxu0 %v5901_v0  ;;  %5538 = vmatprep.subr.bf16.mxu1 %v5901_v0 }
 0x700   :  { %4665 = vmatmul.mubr.f32.vlgmr.msra.gmra.mrb[26].mxu0 %v6671_v16  ;;  %4700 = vmatmul.mubr.f32.vlgmr.msra.gmra.mrb[26].mxu1 %v6671_v16 }
 0x701   :  { %5516 = vmatpush3.bf16.msra.mxu0 %v6599_v63  ;;  %5540 = vmatpush3.bf16.msra.mxu1 %v6601_v17 }
 0x702   :  { %5517 = vmatprep.subr.bf16.mxu0 %v5901_v0  ;;  %5541 = vmatprep.subr.bf16.mxu1 %v5901_v0 }
 0x703   :  { %4734 = vmatprep.mubr.msk.f32.mxu0 %vm5902_vm0, %v5903_v1  ;;  %4769 = vmatprep.mubr.msk.f32.mxu1 %vm5902_vm0, %v5903_v1 }
 0x705   :  { %5519 = vmatpush3.bf16.msra.mxu0 %v6607_v15  ;;  %5543 = vmatpush3.bf16.msra.mxu1 %v6609_v51 }
 0x706   :  { %5520 = vmatprep.subr.bf16.mxu0 %v5901_v0  ;;  %5544 = vmatprep.subr.bf16.mxu1 %v5901_v0 }
 0x709   :  { %5522 = vmatpush3.bf16.msra.mxu0 %v6615_v24  ;;  %5546 = vmatpush3.bf16.msra.mxu1 %v6617_v45  ;;  %v2359_v24 = vld [vmem:[#allocation4 + $0xc8] sm:$0xff]  ;;  %v2358_v45 = vld [vmem:[#allocation4 + $0xc0] sm:$0xff] }
 0x70a   :  { %5523 = vmatprep.subr.bf16.mxu0 %v5901_v0  ;;  %5547 = vmatprep.subr.bf16.mxu1 %v5901_v0 }
 0x70d   :  { %5525 = vmatpush3.bf16.msra.mxu0 %v6623_v12  ;;  %5549 = vmatpush3.bf16.msra.mxu1 %v6625_v36 }
 0x70e   :  { %5526 = vmatprep.subr.bf16.mxu0 %v5901_v0  ;;  %5550 = vmatprep.subr.bf16.mxu1 %v5901_v0 }
 0x711   :  { %5528 = vmatpush3.bf16.msra.mxu0 %v6631_v49  ;;  %5552 = vmatpush3.bf16.msra.mxu1 %v6633_v7 }
 0x712   :  { %5529 = vmatprep.subr.bf16.mxu0 %v5901_v0  ;;  %5553 = vmatprep.subr.bf16.mxu1 %v5901_v0 }
 0x715   :  { %5531 = vmatpush3.bf16.msra.mxu0 %v6639_v39  ;;  %5555 = vmatpush3.bf16.msra.mxu1 %v6641_v53 }
 0x716   :  { %5532 = vmatprep.subr.bf16.mxu0 %v5901_v0  ;;  %5556 = vmatprep.subr.bf16.mxu1 %v5901_v0 }
 0x719   :  { %5534 = vmatpush3.bf16.msra.mxu0 %v6644_v25  ;;  %5558 = vmatpush3.bf16.msra.mxu1 %v6648_v43 }
 0x71a   :  { %5535 = vmatprep.subr.bf16.mxu0 %v5901_v0  ;;  %5559 = vmatprep.subr.bf16.mxu1 %v5901_v0 }
 0x71d   :  { %5537 = vmatpush3.bf16.msra.mxu0 %v6652_v8  ;;  %5561 = vmatpush3.bf16.msra.mxu1 %v6656_v10  ;;  %v2360_v8 = vld [vmem:[#allocation4 + $0xd0] sm:$0xff]  ;;  %v2361_v10 = vld [vmem:[#allocation4 + $0xd8] sm:$0xff] }
 0x71e   :  { %5562 = vmatprep.subr.bf16.mxu0 %v5901_v0  ;;  %5586 = vmatprep.subr.bf16.mxu1 %v5901_v0 }
 0x7b3   :  { %v2444_v63 = vpop.f32.mrb[24].mxu0  ;;  %v2537_v17 = vpop.f32.mrb[24].mxu1 }
 0x7b4   :  { %v4596_v15 = vpop.f32.mrb[25].mxu0  ;;  %v4631_v51 = vpop.f32.mrb[25].mxu1  ;;  %v2541_v12 = vadd.f32 %v2537_v17, %v2359_v24  ;;  %v2448_v36 = vadd.f32 %v2444_v63, %v2358_v45 }
 0x7b6   :  { %v3173_v49 = vmul.f32 -1.442695, %v2541_v12  ;;  %v3172_v7 = vmul.f32 -1.442695, %v2448_v36 }
 0x7b8   :  { %5719 = vpow2.f32 %v3173_v49 }
 0x7b9   :  { %5721 = vpow2.f32 %v3172_v7 }
 0x7c2   :  { %v5720_v39 = vpop.eup %5719 }
 0x7c3   :  { %v5722_v53 = vpop.eup %5721  ;;  %v2545_v25 = vadd.f32 1.0, %v5720_v39 }
 0x7c4   :  { %v2452_v43 = vadd.f32 1.0, %v5722_v53 }
 0x7c5   :  { %5723 = vrcp.f32 %v2545_v25 }
 0x7c6   :  { %5725 = vrcp.f32 %v2452_v43 }
 0x7cf   :  { %v5724_v21 = vpop.eup %5723 }
 0x7d0   :  { %v5726_v22 = vpop.eup %5725  ;;  %v2729_v56 = vmul.f32 %v5724_v21, %v6664_v27 }
 0x7d3   :  { %v2630_v19 = vpop.f32.mrb[26].mxu0  ;;  %v2718_v16 = vpop.f32.mrb[26].mxu1 }
 0x7d4   :  { %v2634_v37 = vadd.f32 %v2630_v19, %v2360_v8  ;;  %v2722_v2 = vadd.f32 %v2718_v16, %v2361_v10  ;;  %v4666_v3 = vpop.f32.mrb[27].mxu0  ;;  %v4701_v11 = vpop.f32.mrb[27].mxu1 }
 0x7d6   :  { %5727 = vtanh.f32 %v2634_v37  ;;  %v3174_v20 = vmul.f32 -1.442695, %v2722_v2 }
 0x7d8   :  { %5729 = vpow2.f32 %v3174_v20 }
 0x7e0   :  { %v5728_v55 = vpop.eup %5727 }
 0x7e1   :  { %v2730_v61 = vmul.f32 %v5728_v55, %v5726_v22 }
 0x7e2   :  { %v5730_v23 = vpop.eup %5729 }
 0x7e3   :  { %v6779_v38 = vadd.f32 %v2730_v61, %v2729_v56  ;;  %v2726_v30 = vadd.f32 1.0, %v5730_v23 }
 0x7e5   :  { %5731 = vtanh.f32 %v6779_v38 }
 0x7e6   :  { %5733 = vrcp.f32 %v2726_v30 }
 0x7ef   :  { %v5732_v31 = vpop.eup %5731 }
 0x7f0   :  { %v5734_v60 = vpop.eup %5733 }
 0x7f1   :  { %v2733_v32 = vmul.f32 %v5734_v60, %v5732_v31 }
 0x7f3   :  { %4735 = vmatmul.mubr.f32.vlgmr.msra.gmra.mrb[28].mxu0 %v2733_v32  ;;  %2735 = vst [vmem:[#allocation12 + $0x30] sm:$0xff] %v2733_v32  ;;  %4770 = vmatmul.mubr.f32.vlgmr.msra.gmra.mrb[28].mxu1 %v2733_v32 }
 0x7f4   :  { %5564 = vmatpush3.bf16.msra.mxu0 %v6667_v59  ;;  %5588 = vmatpush3.bf16.msra.mxu1 %v6669_v9 }
 0x7f5   :  { %5565 = vmatprep.subr.bf16.mxu0 %v5901_v0  ;;  %5589 = vmatprep.subr.bf16.mxu1 %v5901_v0 }
 0x7f6   :  { %4804 = vmatprep.mubr.msk.f32.mxu0 %vm5902_vm0, %v5903_v1  ;;  %4839 = vmatprep.mubr.msk.f32.mxu1 %vm5902_vm0, %v5903_v1 }
 0x7f8   :  { %5567 = vmatpush3.bf16.msra.mxu0 %v6678_v54  ;;  %5591 = vmatpush3.bf16.msra.mxu1 %v6680_v4  ;;  %v2738_v54 = vld [vmem:[#allocation4 + $0xe8] sm:$0xff]  ;;  %v2737_v4 = vld [vmem:[#allocation4 + $0xe0] sm:$0xff] }
 0x7f9   :  { %5568 = vmatprep.subr.bf16.mxu0 %v5901_v0  ;;  %5592 = vmatprep.subr.bf16.mxu1 %v5901_v0 }
 0x7fc   :  { %5570 = vmatpush3.bf16.msra.mxu0 %v6690_v28  ;;  %5594 = vmatpush3.bf16.msra.mxu1 %v6692_v35 }
 0x7fd   :  { %5571 = vmatprep.subr.bf16.mxu0 %v5901_v0  ;;  %5595 = vmatprep.subr.bf16.mxu1 %v5901_v0 }
 0x800   :  { %5573 = vmatpush3.bf16.msra.mxu0 %v6698_v33  ;;  %5597 = vmatpush3.bf16.msra.mxu1 %v6700_v41 }
 0x801   :  { %5574 = vmatprep.subr.bf16.mxu0 %v5901_v0  ;;  %5598 = vmatprep.subr.bf16.mxu1 %v5901_v0 }
 0x804   :  { %5576 = vmatpush3.bf16.msra.mxu0 %v6706_v14  ;;  %5600 = vmatpush3.bf16.msra.mxu1 %v6708_v29 }
 0x805   :  { %5577 = vmatprep.subr.bf16.mxu0 %v5901_v0  ;;  %5601 = vmatprep.subr.bf16.mxu1 %v5901_v0 }
 0x808   :  { %5579 = vmatpush3.bf16.msra.mxu0 %v6714_v57  ;;  %5603 = vmatpush3.bf16.msra.mxu1 %v6716_v18 }
 0x809   :  { %5580 = vmatprep.subr.bf16.mxu0 %v5901_v0  ;;  %5604 = vmatprep.subr.bf16.mxu1 %v5901_v0 }
 0x80c   :  { %5582 = vmatpush3.bf16.msra.mxu0 %v6722_v13  ;;  %5606 = vmatpush3.bf16.msra.mxu1 %v6724_v42 }
 0x80d   :  { %5583 = vmatprep.subr.bf16.mxu0 %v5901_v0  ;;  %5607 = vmatprep.subr.bf16.mxu1 %v5901_v0 }
 0x810   :  { %5585 = vmatpush3.bf16.msra.mxu0 %v6730_v52  ;;  %5609 = vmatpush3.bf16.msra.mxu1 %v6732_v47 }
 0x813   :  { %4805 = vmatmul.mubr.f32.vlgmr.msra.gmra.mrb[30].mxu0 %v2733_v32  ;;  %4840 = vmatmul.mubr.f32.vlgmr.msra.gmra.mrb[30].mxu1 %v2733_v32 }
 0x8c6   :  { %v2823_v1 = vpop.f32.mrb[28].mxu0  ;;  %v2916_v27 = vpop.f32.mrb[28].mxu1 }
 0x8c7   :  { %v4736_v59 = vpop.f32.mrb[29].mxu0  ;;  %v4771_v9 = vpop.f32.mrb[29].mxu1  ;;  %v2920_v28 = vadd.f32 %v2916_v27, %v2738_v54  ;;  %v2827_v35 = vadd.f32 %v2823_v1, %v2737_v4 }
 0x8c9   :  { %v3176_v33 = vmul.f32 -1.442695, %v2920_v28  ;;  %v3175_v41 = vmul.f32 -1.442695, %v2827_v35 }
 0x8cb   :  { %5735 = vpow2.f32 %v3176_v33 }
 0x8cc   :  { %5737 = vpow2.f32 %v3175_v41 }
 0x8d5   :  { %v5736_v14 = vpop.eup %5735 }
 0x8d6   :  { %v5738_v0 = vpop.eup %5737  ;;  %v2924_v29 = vadd.f32 1.0, %v5736_v14 }
 0x8d7   :  { %v2831_v6 = vadd.f32 1.0, %v5738_v0 }
 0x8d8   :  { %5739 = vrcp.f32 %v2924_v29 }
 0x8d9   :  { %5741 = vrcp.f32 %v2831_v6 }
 0x8e2   :  { %v5740_v42 = vpop.eup %5739 }
 0x8e3   :  { %v5742_v48 = vpop.eup %5741  ;;  %v3108_v26 = vmul.f32 %v5740_v42, %v6779_v38 }
 0x8e6   :  { %v3009_v57 = vpop.f32.mrb[30].mxu0  ;;  %v3097_v18 = vpop.f32.mrb[30].mxu1 }
 0x8e7   :  { %v3013_v40 = vadd.f32 %v3009_v57, %v2739_v44  ;;  %v3101_v46 = vadd.f32 %v3097_v18, %v2740_v50  ;;  %v4806_v58 = vpop.f32.mrb[31].mxu0  ;;  %v4841_v5 = vpop.f32.mrb[31].mxu1 }
 0x8e9   :  { %5743 = vtanh.f32 %v3013_v40  ;;  %v3177_v13 = vmul.f32 -1.442695, %v3101_v46 }
 0x8eb   :  { %5745 = vpow2.f32 %v3177_v13 }
 0x8f3   :  { %v5744_v62 = vpop.eup %5743 }
 0x8f4   :  { %v3109_v34 = vmul.f32 %v5744_v62, %v5742_v48 }
 0x8f5   :  { %v5746_v52 = vpop.eup %5745 }
 0x8f6   :  { %v3110_v47 = vadd.f32 %v3109_v34, %v3108_v26  ;;  %v3105_v63 = vadd.f32 1.0, %v5746_v52 }
 0x8f8   :  { %5747 = vtanh.f32 %v3110_v47  ;;  %3120 = vst [vmem:[#allocation13] sm:$0xff] %v3110_v47 }
 0x8f9   :  { %5749 = vrcp.f32 %v3105_v63 }
 0x8fa   :  { %5850 = shalt.err (!%p5847_p8)
}
 0x8fb   :  { %s5851_s20 = scalar_lea.hbm %s6849_s5, 128 }
 0x8fc   :  { %p5852_p9 = scmp.ne.s32.totalorder %s6849_s5, %s5851_s20  ;;  %p5855_p10 = scmp.lt.u32.totalorder %s5851_s20, %s6849_s5 }
 0x8fe   :  { %p5857_p11 = pnand %p5855_p10, %p5852_p9 }
 0x900   :  { %5860 = shalt.err (!%p5857_p11)
}
 0x901   :  { %3142 = dma.vmem_to_hbm [thread:$0]  %s3140_s16, 128, %s6849_s5, [#allocation14]  }
 0x902   :  { %s5905_s28 = smov [#allocation12]   ;;  %v5748_v17 = vpop.eup %5747 }
 0x903   :  { %s3126_s29 = sshll.u32 %s5905_s28, 4  ;;  %v5750_v15 = vpop.eup %5749  ;;  %s3127_s29 = int_to_ptr.vmem [resolvable:$true] %s3126_s29 }
 0x904   :  { %v3112_v51 = vmul.f32 %v5750_v15, %v5748_v17  ;;  %s5861_s0 = scalar_lea.vmem %s3127_s29, 1024  ;;  %p5866_p13 = scmp.lt.s32.totalorder %s3127_s29, %s3127_s29 }
 0x905   :  { %p5862_p12 = scmp.ne.s32.totalorder %s3127_s29, %s5861_s0  ;;  %p5867_p0 = scmp.lt.s32.totalorder %s5861_s0, %s5861_s0 }
 0x906   :  { %3114 = vst [vmem:[#allocation12 + $0x38] sm:$0xff] %v3112_v51 }
 0x907   :  { %p5868_p1 = por %p5867_p0, %p5866_p13 }
 0x909   :  { %p5869_p2 = pnand %p5868_p1, %p5862_p12 }
 0x90b   :  { %5872 = shalt.err (!%p5869_p2)
}
 0x90c   :  { %s5873_s6 = scalar_lea.hbm %s6848_s4, 1024 }
 0x90d   :  { %p5874_p3 = scmp.ne.s32.totalorder %s6848_s4, %s5873_s6  ;;  %p5877_p4 = scmp.lt.u32.totalorder %s5873_s6, %s6848_s4 }
 0x90f   :  { %p5879_p5 = pnand %p5877_p4, %p5874_p3 }
 0x911   :  { %5882 = shalt.err (!%p5879_p5)
}
 0x912   :  { %3132 = dma.vmem_to_hbm [thread:$0]  %s3127_s29, 1024, %s6848_s4, [#allocation6], %s5899_s2, %s5899_s2, %s5900_s14  }
 0x913   :  { %5889 = dma.done.wait [#allocation6], 1024  }
 0x914   :  { %5890 = vsyncadd [#allocation6], 4294966272 }
 0x915   :  { %5891 = dma.done.wait [#allocation14], 128  }
 0x916   :  { %5892 = vsyncadd [#allocation14], 4294967168 }
 0x917   :  { %3149 = vsyncpa [#allocation5], 1 }
 0x918   :  { %3150 = vsyncpa [#allocation8], 1 }
 0x919   :  { %3151 = vsyncpa [#allocation11], 1 }
 0x91a   :  { %3152 = vsyncpa [#allocation6], 1 }
 0x91b   :  { %3153 = vsyncpa [#allocation14], 1 }

</bundles_post_ra>
